<compile_context>
chip_gen: v6e
topology: v6e:2x2x1
jax: 0.10.0
libtpu: 0.0.40
codegen_flags: <defaults>
</compile_context>

<pallas_src>
import math

import numpy as np
import jax
import jax.numpy as jnp
from jax.experimental import pallas as pl
from jax.experimental.pallas import tpu as pltpu


# ----------------------------------------------------------------------------
# Deterministic "parameters": Gaussian window (as gaussian()/create_window())
# and the lane-direction conv / pool matrices (zero padding folded in).
# ----------------------------------------------------------------------------
def _gaussian_1d(window_size, sigma):
    g = np.array([math.exp(-((x - window_size // 2) ** 2) / (2.0 * sigma ** 2))
                  for x in range(window_size)], dtype=np.float64)
    return (g / g.sum()).astype(np.float32)


def _conv_matrix(size_in, win, gauss):
    """Truncated-Toeplitz matrix: (G @ x) == cross-corr conv1d(x, gauss, pad=win//2)."""
    pad = win // 2
    size_out = size_in + 2 * pad - win + 1
    m = np.zeros((size_out, size_in), dtype=np.float32)
    for i in range(size_out):
        for u in range(win):
            j = i + u - pad
            if 0 <= j < size_in:
                m[i, j] = gauss[u]
    return m


def _pool_matrix(size_in):
    """(size_in//2, size_in): (P @ x) == avg_pool1d(x, k=2, s=2), floor mode."""
    half = size_in // 2
    m = np.zeros((half, size_in), dtype=np.float32)
    for i in range(half):
        m[i, 2 * i] = 0.5
        m[i, 2 * i + 1] = 0.5
    return m


def _vmem_limit_bytes():
    try:
        cap = pltpu.get_tpu_info().vmem_capacity_bytes
    except Exception:
        cap = 64 * 1024 * 1024        # conservative fallback (v7x-sized)
    return int(min(100 * 1024 * 1024, cap * 3 // 4))


def _choose_block(p, h, w, with_pool, vmem_limit):
    """Planes per grid step: layout-legal, VMEM-feasible, prefer even step count."""
    per_plane = 128 * h * w                        # rough live bytes per plane
    budget = max(per_plane, vmem_limit // 2)

    def layout_ok(d):
        if d == p:                                  # full-array block is always legal
            return True
        if (d * h) % 8 != 0:
            return False
        if with_pool and (d * (h // 2)) % 8 != 0:
            return False
        return True

    divisors = [d for d in range(1, p + 1) if p % d == 0 and layout_ok(d)]
    fits = [d for d in divisors if d * per_plane <= budget and d <= 8] or [min(divisors)]
    even_steps = [d for d in fits if (p // d) % 2 == 0]   # v7x: 2 TensorCores
    return max(even_steps) if even_steps else max(fits)


# ----------------------------------------------------------------------------
# Pallas kernel: one SSIM level for a block of B planes per grid step.
# ----------------------------------------------------------------------------
def _make_ssim_level_kernel(c1, c2, B, h, w, out_h, out_w, with_pool):
    h2, w2 = h // 2, w // 2

    def kernel(*refs):
        if with_pool:
            x1_ref, x2_ref, gh_ref, gw_ref, pw_ref, ssim_ref, mcs_ref, p1_ref, p2_ref = refs
        else:
            x1_ref, x2_ref, gh_ref, gw_ref, ssim_ref, mcs_ref = refs

        x1 = x1_ref[...].astype(jnp.float32)          # (B*h, w)
        x2 = x2_ref[...].astype(jnp.float32)
        gh = gh_ref[...]                              # (out_h, h)  bf16
        gw = gw_ref[...]                              # (w, out_w)  bf16

        # Five SSIM source maps for all B planes stacked along sublanes:
        # rows [(m*B + b)*h : (m*B + b + 1)*h) hold map m of plane b.
        maps = jnp.concatenate([x1, x2, x1 * x1, x2 * x2, x1 * x2], axis=0)   # (5Bh, w)

        # Lane-direction Gaussian conv: ONE bf16 MXU matmul for every map/plane.
        t = jnp.dot(maps.astype(jnp.bfloat16), gw,
                    preferred_element_type=jnp.float32)                        # (5Bh, out_w)
        tb = t.astype(jnp.bfloat16)

        # Sublane-direction conv: one bf16 matmul per (map, plane) block.
        # TODO(synk): banded/strip-tiled gh for multi-megapixel planes.
        conv = [[None] * B for _ in range(5)]
        for m in range(5):
            for b in range(B):
                r0 = (m * B + b) * h
                conv[m][b] = jnp.dot(gh, tb[r0:r0 + h, :],
                                     preferred_element_type=jnp.float32)       # (out_h, out_w)

        # Batched elementwise SSIM math (planes stacked back along sublanes, f32).
        mu1 = jnp.concatenate(conv[0], axis=0)        # (B*out_h, out_w)
        mu2 = jnp.concatenate(conv[1], axis=0)
        s11 = jnp.concatenate(conv[2], axis=0)
        s22 = jnp.concatenate(conv[3], axis=0)
        s12 = jnp.concatenate(conv[4], axis=0)

        mu1_sq = mu1 * mu1
        mu2_sq = mu2 * mu2
        mu1_mu2 = mu1 * mu2
        sigma1_sq = s11 - mu1_sq
        sigma2_sq = s22 - mu2_sq
        sigma12 = s12 - mu1_mu2

        v1 = 2.0 * sigma12 + c2
        v2 = sigma1_sq + sigma2_sq + c2
        # Shared EUP reciprocals instead of two full-map divides.
        mcs_map = v1 * pl.reciprocal(v2, approx=True)
        ssim_map = mcs_map * (2.0 * mu1_mu2 + c1) * pl.reciprocal(
            mu1_sq + mu2_sq + c1, approx=True)

        # Lane-dense per-plane partial sums; the per-camera mean is finished in JAX.
        for b in range(B):
            r0 = b * out_h
            s_sum = jnp.sum(ssim_map[r0:r0 + out_h, :])
            m_sum = jnp.sum(mcs_map[r0:r0 + out_h, :])
            ssim_ref[b, :, :] = jnp.full((1, 128), s_sum, jnp.float32)
            mcs_ref[b, :, :] = jnp.full((1, 128), m_sum, jnp.float32)

        if with_pool:
            pw = pw_ref[...]                          # (w, w2) bf16

            def pool(x_in_ref):
                if h % 2 == 0:
                    # h even -> global even/odd rows line up with per-plane rows,
                    # so one pair of stride-2 loads pools the whole block.
                    ev = x_in_ref[pl.ds(0, B * h2, 2), :].astype(jnp.float32)
                    od = x_in_ref[pl.ds(1, B * h2, 2), :].astype(jnp.float32)
                    rows = (ev + od) * 0.5                                    # (B*h2, w)
                else:
                    parts = []
                    for b in range(B):
                        ev = x_in_ref[pl.ds(b * h, h2, 2), :].astype(jnp.float32)
                        od = x_in_ref[pl.ds(b * h + 1, h2, 2), :].astype(jnp.float32)
                        parts.append((ev + od) * 0.5)
                    rows = jnp.concatenate(parts, axis=0)
                # Lane half of the 2x2 avg pool as a single bf16 matmul.
                return jnp.dot(rows.astype(jnp.bfloat16), pw,
                               preferred_element_type=jnp.float32)            # (B*h2, w2)

            p1_ref[...] = pool(x1_ref).astype(p1_ref.dtype)
            p2_ref[...] = pool(x2_ref).astype(p2_ref.dtype)

    return kernel


def _ssim_level(x1, x2, planes, h, w, max_val, with_pool, vmem_limit):
    """One MS-SSIM level over a (planes*h, w) slab.

    Returns (ssim_sum_per_plane (P,), mcs_sum_per_plane (P,),
             elements_per_plane, pooled_x1, pooled_x2)."""
    win = min(h, w, 11)                  # PyTorch: min(w, h, 11)
    sigma = 1.5 * win / 11.0
    gauss = _gaussian_1d(win, sigma)
    pad = win // 2
    out_h = h + 2 * pad - win + 1
    out_w = w + 2 * pad - win + 1
    c1 = (0.01 * max_val) ** 2
    c2 = (0.03 * max_val) ** 2

    gh = jnp.asarray(_conv_matrix(h, win, gauss), dtype=jnp.bfloat16)      # (out_h, h)
    gw = jnp.asarray(_conv_matrix(w, win, gauss).T, dtype=jnp.bfloat16)    # (w, out_w)

    B = _choose_block(planes, h, w, with_pool, vmem_limit)
    nsteps = planes // B

    inputs = [x1, x2, gh, gw]
    # NOTE: gh/gw/pw have constant index maps, so they are only DMA'd once;
    # pipeline_mode=pl.Buffered(1) could reclaim their second VMEM buffer.
    in_specs = [
        pl.BlockSpec((B * h, w), lambda i: (i, 0)),
        pl.BlockSpec((B * h, w), lambda i: (i, 0)),
        pl.BlockSpec((out_h, h), lambda i: (0, 0)),
        pl.BlockSpec((w, out_w), lambda i: (0, 0)),
    ]
    out_shape = [
        jax.ShapeDtypeStruct((planes, 1, 128), jnp.float32),   # ssim partial sums
        jax.ShapeDtypeStruct((planes, 1, 128), jnp.float32),   # mcs partial sums
    ]
    out_specs = [
        pl.BlockSpec((B, 1, 128), lambda i: (i, 0, 0)),
        pl.BlockSpec((B, 1, 128), lambda i: (i, 0, 0)),
    ]

    if with_pool:
        h2, w2 = h // 2, w // 2
        pw = jnp.asarray(_pool_matrix(w).T, dtype=jnp.bfloat16)            # (w, w2)
        inputs.append(pw)
        in_specs.append(pl.BlockSpec((w, w2), lambda i: (0, 0)))
        out_shape += [jax.ShapeDtypeStruct((planes * h2, w2), jnp.bfloat16)] * 2
        out_specs += [pl.BlockSpec((B * h2, w2), lambda i: (i, 0))] * 2

    outs = pl.pallas_call(
        _make_ssim_level_kernel(c1, c2, B, h, w, out_h, out_w, with_pool),
        grid=(nsteps,),
        out_shape=tuple(out_shape),
        in_specs=in_specs,
        out_specs=tuple(out_specs),
        compiler_params=pltpu.CompilerParams(
            dimension_semantics=("parallel",),
            vmem_limit_bytes=vmem_limit,
        ),
    )(*inputs)

    s_sums = outs[0][:, 0, 0]
    m_sums = outs[1][:, 0, 0]
    if with_pool:
        return s_sums, m_sums, out_h * out_w, outs[2], outs[3]
    return s_sums, m_sums, out_h * out_w, None, None


# ----------------------------------------------------------------------------
# MS-SSIM over both cameras at once.
# ----------------------------------------------------------------------------
_MS_WEIGHTS = [0.0448, 0.2856, 0.3001, 0.2363, 0.1333]


def ms_ssim(img1, img2, levels=5, max_val=1.0):
    """img1, img2: (num_camera, N, C, H, W). Returns per-camera MS-SSIM, shape (num_camera,)."""
    ncam, n, c, h, w = img1.shape
    planes = ncam * n * c
    planes_per_cam = n * c
    x1 = img1.reshape(planes * h, w).astype(jnp.float32)
    x2 = img2.reshape(planes * h, w).astype(jnp.float32)

    vmem_limit = _vmem_limit_bytes()
    msssim, mcs = [], []
    cur_h, cur_w = h, w
    for lvl in range(levels):
        with_pool = lvl < levels - 1
        s_sums, m_sums, count, x1n, x2n = _ssim_level(
            x1, x2, planes, cur_h, cur_w, max_val, with_pool, vmem_limit)
        denom = float(planes_per_cam * count)
        msssim.append(s_sums.reshape(ncam, planes_per_cam).sum(axis=1) / denom)
        mcs.append(m_sums.reshape(ncam, planes_per_cam).sum(axis=1) / denom)
        if with_pool:
            x1, x2 = x1n, x2n           # bf16 pooled slabs feed the next level
            cur_h, cur_w = cur_h // 2, cur_w // 2

    value = jnp.ones((ncam,), jnp.float32)
    for i in range(levels - 1):
        value = value * (mcs[i] ** _MS_WEIGHTS[i])
    value = value * (msssim[levels - 1] ** _MS_WEIGHTS[levels - 1])
    return value


# ----------------------------------------------------------------------------
# Pallas kernel: fused sum(log(x)) for ALL cameras in one launch.
# Input is an (ncam, 8k, 128) aligned slab padded with ones (log(1) = 0).
# ----------------------------------------------------------------------------
def _sum_log_kernel(x_ref, out_ref):
    out_ref[...] = jnp.full((1, 1, 128), jnp.sum(jnp.log(x_ref[...])), jnp.float32)


def _bpp_log_sums(likelihood_dicts):
    ncam = len(likelihood_dicts)
    flats = [jnp.concatenate([jnp.ravel(a).astype(jnp.float32) for a in d.values()])
             for d in likelihood_dicts]
    kmax = max(int(f.shape[0]) for f in flats)
    rows = -(-kmax // 128)
    rows = -(-rows // 8) * 8                 # (8, 128)-aligned slab
    padded = rows * 128
    slabs = []
    for f in flats:
        k = int(f.shape[0])
        if padded > k:
            f = jnp.concatenate([f, jnp.ones((padded - k,), jnp.float32)])
        slabs.append(f.reshape(1, rows, 128))
    x = jnp.concatenate(slabs, axis=0)       # (ncam, rows, 128)
    # TODO(synk): for very large likelihood tensors add a row-block grid axis with
    # an accumulator; codec latents are small so one slab per camera is fine here.
    out = pl.pallas_call(
        _sum_log_kernel,
        grid=(ncam,),
        out_shape=jax.ShapeDtypeStruct((ncam, 1, 128), jnp.float32),
        in_specs=[pl.BlockSpec((1, rows, 128), lambda i: (i, 0, 0))],
        out_specs=pl.BlockSpec((1, 1, 128), lambda i: (i, 0, 0)),
        compiler_params=pltpu.CompilerParams(
            dimension_semantics=("parallel",),
        ),
    )(x)
    return out[:, 0, 0]


# ----------------------------------------------------------------------------
# Multi_MS_SSIM_Loss.forward
# ----------------------------------------------------------------------------
def multi_ms_ssim_loss(output, target, lmbda, max_val=1.0):
    """Forward of Multi_MS_SSIM_Loss.

    output: {'x_hat': [NCHW, ...], 'likelihoods': [{name: array, ...}, ...]}
    target: [NCHW, ...]   (one entry per camera)
    """
    num_camera = len(target)
    n, _, h, w = target[0].shape
    num_pixels = n * h * w

    img_hat = jnp.stack(output['x_hat'], axis=0)     # (num_camera, N, C, H, W)
    img_tgt = jnp.stack(target, axis=0)
    ms_vals = ms_ssim(img_hat, img_tgt, levels=5, max_val=max_val)   # (num_camera,)

    log_sums = _bpp_log_sums(output['likelihoods'])                  # (num_camera,)

    out = {}
    out['bpp_loss'] = jnp.float32(0.0)
    out['ms_ssim_loss'] = jnp.float32(0.0)
    out['ms_db'] = jnp.float32(0.0)

    for i in range(num_camera):
        bpp_i = log_sums[i] / (-math.log(2) * num_pixels)
        out['bpp' + str(i)] = bpp_i

        ms_i = 1.0 - ms_vals[i]
        out['ms_ssim' + str(i)] = ms_i

        out['bpp_loss'] = out['bpp_loss'] + bpp_i / num_camera
        out['ms_ssim_loss'] = out['ms_ssim_loss'] + lmbda * ms_i / num_camera

        # PyTorch uses a python `if ms_ssim_i > 0:`; equivalent data-dependent select.
        ms_db_i = jnp.where(ms_i > 0,
                            10.0 * jnp.log10(1.0 / jnp.maximum(ms_i, jnp.float32(1e-30))),
                            jnp.float32(0.0))
        out['ms_db' + str(i)] = ms_db_i
        out['ms_db'] = out['ms_db'] + ms_db_i / num_camera

    out['loss'] = out['ms_ssim_loss'] + out['bpp_loss']
    return out


# ----------------------------------------------------------------------------
# Demo
# ----------------------------------------------------------------------------
if __name__ == "__main__":
    key = jax.random.PRNGKey(0)
    N, C, H, W = 2, 3, 32, 32        # channel must be 3 (MS_SSIM hard-codes it)
    num_camera = 2
    lmbda = 8.73

    keys = jax.random.split(key, 8)
    target = [jax.random.uniform(keys[0], (N, C, H, W), jnp.float32),
              jax.random.uniform(keys[1], (N, C, H, W), jnp.float32)]
    x_hat = [jnp.clip(target[0] + 0.05 * jax.random.normal(keys[2], (N, C, H, W)), 0.0, 1.0),
             jnp.clip(target[1] + 0.05 * jax.random.normal(keys[3], (N, C, H, W)), 0.0, 1.0)]
    likelihoods = [
        {"y": jax.random.uniform(keys[4], (N, 8, H // 4, W // 4), jnp.float32, 0.05, 1.0),
         "z": jax.random.uniform(keys[5], (N, 4, H // 16, W // 16), jnp.float32, 0.05, 1.0)},
        {"y": jax.random.uniform(keys[6], (N, 8, H // 4, W // 4), jnp.float32, 0.05, 1.0),
         "z": jax.random.uniform(keys[7], (N, 4, H // 16, W // 16), jnp.float32, 0.05, 1.0)},
    ]
    output = {"x_hat": x_hat, "likelihoods": likelihoods}

    out = multi_ms_ssim_loss(output, target, lmbda, max_val=1.0)
    jax.block_until_ready(out["loss"])
    print("KERNEL_OK")
</pallas_src>

<mosaic_0001>
module attributes {stable_mosaic.version = 11 : i64} {
  func.func @kernel(%arg0: i32, %arg1: memref<192x32xf32, #tpu.memory_space<vmem>>, %arg2: memref<192x32xf32, #tpu.memory_space<vmem>>, %arg3: memref<32x32xbf16, #tpu.memory_space<vmem>>, %arg4: memref<32x32xbf16, #tpu.memory_space<vmem>>, %arg5: memref<32x16xbf16, #tpu.memory_space<vmem>>, %arg6: memref<6x1x128xf32, #tpu.memory_space<vmem>>, %arg7: memref<6x1x128xf32, #tpu.memory_space<vmem>>, %arg8: memref<96x16xbf16, #tpu.memory_space<vmem>>, %arg9: memref<96x16xbf16, #tpu.memory_space<vmem>>) attributes {dimension_semantics = [#tpu.dimension_semantics<parallel>], iteration_bounds = array<i64: 2>, scalar_prefetch = 0 : i64, scratch_operands = 0 : i64, tpu.core_type = #tpu.core_type<tc>, window_params = [{transform_indices = @transform_0, window_bounds = array<i64: 192, 32>}, {transform_indices = @transform_1, window_bounds = array<i64: 192, 32>}, {pipeline_mode = #tpu.pipeline_mode<synchronous>, transform_indices = @transform_2, window_bounds = array<i64: 32, 32>}, {pipeline_mode = #tpu.pipeline_mode<synchronous>, transform_indices = @transform_3, window_bounds = array<i64: 32, 32>}, {pipeline_mode = #tpu.pipeline_mode<synchronous>, transform_indices = @transform_4, window_bounds = array<i64: 32, 16>}, {transform_indices = @transform_5, window_bounds = array<i64: 6, 1, 128>}, {transform_indices = @transform_6, window_bounds = array<i64: 6, 1, 128>}, {transform_indices = @transform_7, window_bounds = array<i64: 96, 16>}, {transform_indices = @transform_8, window_bounds = array<i64: 96, 16>}]} {
    %c0 = arith.constant 0 : index
    %c0_0 = arith.constant 0 : index
    %0 = vector.load %arg1[%c0, %c0_0] : memref<192x32xf32, #tpu.memory_space<vmem>>, vector<192x32xf32>
    %c0_1 = arith.constant 0 : index
    %c0_2 = arith.constant 0 : index
    %1 = vector.load %arg2[%c0_1, %c0_2] : memref<192x32xf32, #tpu.memory_space<vmem>>, vector<192x32xf32>
    %c0_3 = arith.constant 0 : index
    %c0_4 = arith.constant 0 : index
    %2 = vector.load %arg3[%c0_3, %c0_4] : memref<32x32xbf16, #tpu.memory_space<vmem>>, vector<32x32xbf16>
    %c0_5 = arith.constant 0 : index
    %c0_6 = arith.constant 0 : index
    %3 = vector.load %arg4[%c0_5, %c0_6] : memref<32x32xbf16, #tpu.memory_space<vmem>>, vector<32x32xbf16>
    %4 = arith.mulf %0, %0 : vector<192x32xf32>
    %5 = arith.mulf %1, %1 : vector<192x32xf32>
    %6 = arith.mulf %0, %1 : vector<192x32xf32>
    %7 = tpu.concatenate %0, %1, %4, %5, %6 in 0 : vector<192x32xf32>, vector<192x32xf32>, vector<192x32xf32>, vector<192x32xf32>, vector<192x32xf32> -> vector<960x32xf32>
    %8 = arith.truncf %7 : vector<960x32xf32> to vector<960x32xbf16>
    %cst = arith.constant dense<0.000000e+00> : vector<960x32xf32>
    %9 = tpu.matmul %8, %3, %cst {dimension_numbers = #tpu.dot_dimension_numbers<[1], [0], [0], [1], [0, 0, 1, 1], [], []>} : vector<960x32xbf16>, vector<32x32xbf16>, vector<960x32xf32> -> vector<960x32xf32>
    %10 = arith.truncf %9 : vector<960x32xf32> to vector<960x32xbf16>
    %11 = vector.extract_strided_slice %10 {offsets = [0, 0], sizes = [32, 32], strides = [1, 1]} : vector<960x32xbf16> to vector<32x32xbf16>
    %cst_7 = arith.constant dense<0.000000e+00> : vector<32x32xf32>
    %12 = tpu.matmul %2, %11, %cst_7 {dimension_numbers = #tpu.dot_dimension_numbers<[1], [0], [0], [1], [0, 0, 1, 1], [], []>} : vector<32x32xbf16>, vector<32x32xbf16>, vector<32x32xf32> -> vector<32x32xf32>
    %13 = vector.extract_strided_slice %10 {offsets = [32, 0], sizes = [32, 32], strides = [1, 1]} : vector<960x32xbf16> to vector<32x32xbf16>
    %cst_8 = arith.constant dense<0.000000e+00> : vector<32x32xf32>
    %14 = tpu.matmul %2, %13, %cst_8 {dimension_numbers = #tpu.dot_dimension_numbers<[1], [0], [0], [1], [0, 0, 1, 1], [], []>} : vector<32x32xbf16>, vector<32x32xbf16>, vector<32x32xf32> -> vector<32x32xf32>
    %15 = vector.extract_strided_slice %10 {offsets = [64, 0], sizes = [32, 32], strides = [1, 1]} : vector<960x32xbf16> to vector<32x32xbf16>
    %cst_9 = arith.constant dense<0.000000e+00> : vector<32x32xf32>
    %16 = tpu.matmul %2, %15, %cst_9 {dimension_numbers = #tpu.dot_dimension_numbers<[1], [0], [0], [1], [0, 0, 1, 1], [], []>} : vector<32x32xbf16>, vector<32x32xbf16>, vector<32x32xf32> -> vector<32x32xf32>
    %17 = vector.extract_strided_slice %10 {offsets = [96, 0], sizes = [32, 32], strides = [1, 1]} : vector<960x32xbf16> to vector<32x32xbf16>
    %cst_10 = arith.constant dense<0.000000e+00> : vector<32x32xf32>
    %18 = tpu.matmul %2, %17, %cst_10 {dimension_numbers = #tpu.dot_dimension_numbers<[1], [0], [0], [1], [0, 0, 1, 1], [], []>} : vector<32x32xbf16>, vector<32x32xbf16>, vector<32x32xf32> -> vector<32x32xf32>
    %19 = vector.extract_strided_slice %10 {offsets = [128, 0], sizes = [32, 32], strides = [1, 1]} : vector<960x32xbf16> to vector<32x32xbf16>
    %cst_11 = arith.constant dense<0.000000e+00> : vector<32x32xf32>
    %20 = tpu.matmul %2, %19, %cst_11 {dimension_numbers = #tpu.dot_dimension_numbers<[1], [0], [0], [1], [0, 0, 1, 1], [], []>} : vector<32x32xbf16>, vector<32x32xbf16>, vector<32x32xf32> -> vector<32x32xf32>
    %21 = vector.extract_strided_slice %10 {offsets = [160, 0], sizes = [32, 32], strides = [1, 1]} : vector<960x32xbf16> to vector<32x32xbf16>
    %cst_12 = arith.constant dense<0.000000e+00> : vector<32x32xf32>
    %22 = tpu.matmul %2, %21, %cst_12 {dimension_numbers = #tpu.dot_dimension_numbers<[1], [0], [0], [1], [0, 0, 1, 1], [], []>} : vector<32x32xbf16>, vector<32x32xbf16>, vector<32x32xf32> -> vector<32x32xf32>
    %23 = vector.extract_strided_slice %10 {offsets = [192, 0], sizes = [32, 32], strides = [1, 1]} : vector<960x32xbf16> to vector<32x32xbf16>
    %cst_13 = arith.constant dense<0.000000e+00> : vector<32x32xf32>
    %24 = tpu.matmul %2, %23, %cst_13 {dimension_numbers = #tpu.dot_dimension_numbers<[1], [0], [0], [1], [0, 0, 1, 1], [], []>} : vector<32x32xbf16>, vector<32x32xbf16>, vector<32x32xf32> -> vector<32x32xf32>
    %25 = vector.extract_strided_slice %10 {offsets = [224, 0], sizes = [32, 32], strides = [1, 1]} : vector<960x32xbf16> to vector<32x32xbf16>
    %cst_14 = arith.constant dense<0.000000e+00> : vector<32x32xf32>
    %26 = tpu.matmul %2, %25, %cst_14 {dimension_numbers = #tpu.dot_dimension_numbers<[1], [0], [0], [1], [0, 0, 1, 1], [], []>} : vector<32x32xbf16>, vector<32x32xbf16>, vector<32x32xf32> -> vector<32x32xf32>
    %27 = vector.extract_strided_slice %10 {offsets = [256, 0], sizes = [32, 32], strides = [1, 1]} : vector<960x32xbf16> to vector<32x32xbf16>
    %cst_15 = arith.constant dense<0.000000e+00> : vector<32x32xf32>
    %28 = tpu.matmul %2, %27, %cst_15 {dimension_numbers = #tpu.dot_dimension_numbers<[1], [0], [0], [1], [0, 0, 1, 1], [], []>} : vector<32x32xbf16>, vector<32x32xbf16>, vector<32x32xf32> -> vector<32x32xf32>
    %29 = vector.extract_strided_slice %10 {offsets = [288, 0], sizes = [32, 32], strides = [1, 1]} : vector<960x32xbf16> to vector<32x32xbf16>
    %cst_16 = arith.constant dense<0.000000e+00> : vector<32x32xf32>
    %30 = tpu.matmul %2, %29, %cst_16 {dimension_numbers = #tpu.dot_dimension_numbers<[1], [0], [0], [1], [0, 0, 1, 1], [], []>} : vector<32x32xbf16>, vector<32x32xbf16>, vector<32x32xf32> -> vector<32x32xf32>
    %31 = vector.extract_strided_slice %10 {offsets = [320, 0], sizes = [32, 32], strides = [1, 1]} : vector<960x32xbf16> to vector<32x32xbf16>
    %cst_17 = arith.constant dense<0.000000e+00> : vector<32x32xf32>
    %32 = tpu.matmul %2, %31, %cst_17 {dimension_numbers = #tpu.dot_dimension_numbers<[1], [0], [0], [1], [0, 0, 1, 1], [], []>} : vector<32x32xbf16>, vector<32x32xbf16>, vector<32x32xf32> -> vector<32x32xf32>
    %33 = vector.extract_strided_slice %10 {offsets = [352, 0], sizes = [32, 32], strides = [1, 1]} : vector<960x32xbf16> to vector<32x32xbf16>
    %cst_18 = arith.constant dense<0.000000e+00> : vector<32x32xf32>
    %34 = tpu.matmul %2, %33, %cst_18 {dimension_numbers = #tpu.dot_dimension_numbers<[1], [0], [0], [1], [0, 0, 1, 1], [], []>} : vector<32x32xbf16>, vector<32x32xbf16>, vector<32x32xf32> -> vector<32x32xf32>
    %35 = vector.extract_strided_slice %10 {offsets = [384, 0], sizes = [32, 32], strides = [1, 1]} : vector<960x32xbf16> to vector<32x32xbf16>
    %cst_19 = arith.constant dense<0.000000e+00> : vector<32x32xf32>
    %36 = tpu.matmul %2, %35, %cst_19 {dimension_numbers = #tpu.dot_dimension_numbers<[1], [0], [0], [1], [0, 0, 1, 1], [], []>} : vector<32x32xbf16>, vector<32x32xbf16>, vector<32x32xf32> -> vector<32x32xf32>
    %37 = vector.extract_strided_slice %10 {offsets = [416, 0], sizes = [32, 32], strides = [1, 1]} : vector<960x32xbf16> to vector<32x32xbf16>
    %cst_20 = arith.constant dense<0.000000e+00> : vector<32x32xf32>
    %38 = tpu.matmul %2, %37, %cst_20 {dimension_numbers = #tpu.dot_dimension_numbers<[1], [0], [0], [1], [0, 0, 1, 1], [], []>} : vector<32x32xbf16>, vector<32x32xbf16>, vector<32x32xf32> -> vector<32x32xf32>
    %39 = vector.extract_strided_slice %10 {offsets = [448, 0], sizes = [32, 32], strides = [1, 1]} : vector<960x32xbf16> to vector<32x32xbf16>
    %cst_21 = arith.constant dense<0.000000e+00> : vector<32x32xf32>
    %40 = tpu.matmul %2, %39, %cst_21 {dimension_numbers = #tpu.dot_dimension_numbers<[1], [0], [0], [1], [0, 0, 1, 1], [], []>} : vector<32x32xbf16>, vector<32x32xbf16>, vector<32x32xf32> -> vector<32x32xf32>
    %41 = vector.extract_strided_slice %10 {offsets = [480, 0], sizes = [32, 32], strides = [1, 1]} : vector<960x32xbf16> to vector<32x32xbf16>
    %cst_22 = arith.constant dense<0.000000e+00> : vector<32x32xf32>
    %42 = tpu.matmul %2, %41, %cst_22 {dimension_numbers = #tpu.dot_dimension_numbers<[1], [0], [0], [1], [0, 0, 1, 1], [], []>} : vector<32x32xbf16>, vector<32x32xbf16>, vector<32x32xf32> -> vector<32x32xf32>
    %43 = vector.extract_strided_slice %10 {offsets = [512, 0], sizes = [32, 32], strides = [1, 1]} : vector<960x32xbf16> to vector<32x32xbf16>
    %cst_23 = arith.constant dense<0.000000e+00> : vector<32x32xf32>
    %44 = tpu.matmul %2, %43, %cst_23 {dimension_numbers = #tpu.dot_dimension_numbers<[1], [0], [0], [1], [0, 0, 1, 1], [], []>} : vector<32x32xbf16>, vector<32x32xbf16>, vector<32x32xf32> -> vector<32x32xf32>
    %45 = vector.extract_strided_slice %10 {offsets = [544, 0], sizes = [32, 32], strides = [1, 1]} : vector<960x32xbf16> to vector<32x32xbf16>
    %cst_24 = arith.constant dense<0.000000e+00> : vector<32x32xf32>
    %46 = tpu.matmul %2, %45, %cst_24 {dimension_numbers = #tpu.dot_dimension_numbers<[1], [0], [0], [1], [0, 0, 1, 1], [], []>} : vector<32x32xbf16>, vector<32x32xbf16>, vector<32x32xf32> -> vector<32x32xf32>
    %47 = vector.extract_strided_slice %10 {offsets = [576, 0], sizes = [32, 32], strides = [1, 1]} : vector<960x32xbf16> to vector<32x32xbf16>
    %cst_25 = arith.constant dense<0.000000e+00> : vector<32x32xf32>
    %48 = tpu.matmul %2, %47, %cst_25 {dimension_numbers = #tpu.dot_dimension_numbers<[1], [0], [0], [1], [0, 0, 1, 1], [], []>} : vector<32x32xbf16>, vector<32x32xbf16>, vector<32x32xf32> -> vector<32x32xf32>
    %49 = vector.extract_strided_slice %10 {offsets = [608, 0], sizes = [32, 32], strides = [1, 1]} : vector<960x32xbf16> to vector<32x32xbf16>
    %cst_26 = arith.constant dense<0.000000e+00> : vector<32x32xf32>
    %50 = tpu.matmul %2, %49, %cst_26 {dimension_numbers = #tpu.dot_dimension_numbers<[1], [0], [0], [1], [0, 0, 1, 1], [], []>} : vector<32x32xbf16>, vector<32x32xbf16>, vector<32x32xf32> -> vector<32x32xf32>
    %51 = vector.extract_strided_slice %10 {offsets = [640, 0], sizes = [32, 32], strides = [1, 1]} : vector<960x32xbf16> to vector<32x32xbf16>
    %cst_27 = arith.constant dense<0.000000e+00> : vector<32x32xf32>
    %52 = tpu.matmul %2, %51, %cst_27 {dimension_numbers = #tpu.dot_dimension_numbers<[1], [0], [0], [1], [0, 0, 1, 1], [], []>} : vector<32x32xbf16>, vector<32x32xbf16>, vector<32x32xf32> -> vector<32x32xf32>
    %53 = vector.extract_strided_slice %10 {offsets = [672, 0], sizes = [32, 32], strides = [1, 1]} : vector<960x32xbf16> to vector<32x32xbf16>
    %cst_28 = arith.constant dense<0.000000e+00> : vector<32x32xf32>
    %54 = tpu.matmul %2, %53, %cst_28 {dimension_numbers = #tpu.dot_dimension_numbers<[1], [0], [0], [1], [0, 0, 1, 1], [], []>} : vector<32x32xbf16>, vector<32x32xbf16>, vector<32x32xf32> -> vector<32x32xf32>
    %55 = vector.extract_strided_slice %10 {offsets = [704, 0], sizes = [32, 32], strides = [1, 1]} : vector<960x32xbf16> to vector<32x32xbf16>
    %cst_29 = arith.constant dense<0.000000e+00> : vector<32x32xf32>
    %56 = tpu.matmul %2, %55, %cst_29 {dimension_numbers = #tpu.dot_dimension_numbers<[1], [0], [0], [1], [0, 0, 1, 1], [], []>} : vector<32x32xbf16>, vector<32x32xbf16>, vector<32x32xf32> -> vector<32x32xf32>
    %57 = vector.extract_strided_slice %10 {offsets = [736, 0], sizes = [32, 32], strides = [1, 1]} : vector<960x32xbf16> to vector<32x32xbf16>
    %cst_30 = arith.constant dense<0.000000e+00> : vector<32x32xf32>
    %58 = tpu.matmul %2, %57, %cst_30 {dimension_numbers = #tpu.dot_dimension_numbers<[1], [0], [0], [1], [0, 0, 1, 1], [], []>} : vector<32x32xbf16>, vector<32x32xbf16>, vector<32x32xf32> -> vector<32x32xf32>
    %59 = vector.extract_strided_slice %10 {offsets = [768, 0], sizes = [32, 32], strides = [1, 1]} : vector<960x32xbf16> to vector<32x32xbf16>
    %cst_31 = arith.constant dense<0.000000e+00> : vector<32x32xf32>
    %60 = tpu.matmul %2, %59, %cst_31 {dimension_numbers = #tpu.dot_dimension_numbers<[1], [0], [0], [1], [0, 0, 1, 1], [], []>} : vector<32x32xbf16>, vector<32x32xbf16>, vector<32x32xf32> -> vector<32x32xf32>
    %61 = vector.extract_strided_slice %10 {offsets = [800, 0], sizes = [32, 32], strides = [1, 1]} : vector<960x32xbf16> to vector<32x32xbf16>
    %cst_32 = arith.constant dense<0.000000e+00> : vector<32x32xf32>
    %62 = tpu.matmul %2, %61, %cst_32 {dimension_numbers = #tpu.dot_dimension_numbers<[1], [0], [0], [1], [0, 0, 1, 1], [], []>} : vector<32x32xbf16>, vector<32x32xbf16>, vector<32x32xf32> -> vector<32x32xf32>
    %63 = vector.extract_strided_slice %10 {offsets = [832, 0], sizes = [32, 32], strides = [1, 1]} : vector<960x32xbf16> to vector<32x32xbf16>
    %cst_33 = arith.constant dense<0.000000e+00> : vector<32x32xf32>
    %64 = tpu.matmul %2, %63, %cst_33 {dimension_numbers = #tpu.dot_dimension_numbers<[1], [0], [0], [1], [0, 0, 1, 1], [], []>} : vector<32x32xbf16>, vector<32x32xbf16>, vector<32x32xf32> -> vector<32x32xf32>
    %65 = vector.extract_strided_slice %10 {offsets = [864, 0], sizes = [32, 32], strides = [1, 1]} : vector<960x32xbf16> to vector<32x32xbf16>
    %cst_34 = arith.constant dense<0.000000e+00> : vector<32x32xf32>
    %66 = tpu.matmul %2, %65, %cst_34 {dimension_numbers = #tpu.dot_dimension_numbers<[1], [0], [0], [1], [0, 0, 1, 1], [], []>} : vector<32x32xbf16>, vector<32x32xbf16>, vector<32x32xf32> -> vector<32x32xf32>
    %67 = vector.extract_strided_slice %10 {offsets = [896, 0], sizes = [32, 32], strides = [1, 1]} : vector<960x32xbf16> to vector<32x32xbf16>
    %cst_35 = arith.constant dense<0.000000e+00> : vector<32x32xf32>
    %68 = tpu.matmul %2, %67, %cst_35 {dimension_numbers = #tpu.dot_dimension_numbers<[1], [0], [0], [1], [0, 0, 1, 1], [], []>} : vector<32x32xbf16>, vector<32x32xbf16>, vector<32x32xf32> -> vector<32x32xf32>
    %69 = vector.extract_strided_slice %10 {offsets = [928, 0], sizes = [32, 32], strides = [1, 1]} : vector<960x32xbf16> to vector<32x32xbf16>
    %cst_36 = arith.constant dense<0.000000e+00> : vector<32x32xf32>
    %70 = tpu.matmul %2, %69, %cst_36 {dimension_numbers = #tpu.dot_dimension_numbers<[1], [0], [0], [1], [0, 0, 1, 1], [], []>} : vector<32x32xbf16>, vector<32x32xbf16>, vector<32x32xf32> -> vector<32x32xf32>
    %71 = tpu.concatenate %12, %14, %16, %18, %20, %22 in 0 : vector<32x32xf32>, vector<32x32xf32>, vector<32x32xf32>, vector<32x32xf32>, vector<32x32xf32>, vector<32x32xf32> -> vector<192x32xf32>
    %72 = tpu.concatenate %24, %26, %28, %30, %32, %34 in 0 : vector<32x32xf32>, vector<32x32xf32>, vector<32x32xf32>, vector<32x32xf32>, vector<32x32xf32>, vector<32x32xf32> -> vector<192x32xf32>
    %73 = tpu.concatenate %36, %38, %40, %42, %44, %46 in 0 : vector<32x32xf32>, vector<32x32xf32>, vector<32x32xf32>, vector<32x32xf32>, vector<32x32xf32>, vector<32x32xf32> -> vector<192x32xf32>
    %74 = tpu.concatenate %48, %50, %52, %54, %56, %58 in 0 : vector<32x32xf32>, vector<32x32xf32>, vector<32x32xf32>, vector<32x32xf32>, vector<32x32xf32>, vector<32x32xf32> -> vector<192x32xf32>
    %75 = tpu.concatenate %60, %62, %64, %66, %68, %70 in 0 : vector<32x32xf32>, vector<32x32xf32>, vector<32x32xf32>, vector<32x32xf32>, vector<32x32xf32>, vector<32x32xf32> -> vector<192x32xf32>
    %76 = arith.mulf %71, %71 : vector<192x32xf32>
    %77 = arith.mulf %72, %72 : vector<192x32xf32>
    %78 = arith.mulf %71, %72 : vector<192x32xf32>
    %79 = arith.subf %73, %76 : vector<192x32xf32>
    %80 = arith.subf %74, %77 : vector<192x32xf32>
    %81 = arith.subf %75, %78 : vector<192x32xf32>
    %cst_37 = arith.constant 2.000000e+00 : f32
    %82 = vector.broadcast %cst_37 : f32 to vector<192x32xf32>
    %83 = arith.mulf %82, %81 : vector<192x32xf32>
    %cst_38 = arith.constant 8.99999984E-4 : f32
    %84 = vector.broadcast %cst_38 : f32 to vector<192x32xf32>
    %85 = arith.addf %83, %84 : vector<192x32xf32>
    %86 = arith.addf %79, %80 : vector<192x32xf32>
    %cst_39 = arith.constant 8.99999984E-4 : f32
    %87 = vector.broadcast %cst_39 : f32 to vector<192x32xf32>
    %88 = arith.addf %86, %87 : vector<192x32xf32>
    %89 = tpu.reciprocal %88 {approx = true} : vector<192x32xf32> -> vector<192x32xf32>
    %90 = arith.mulf %85, %89 : vector<192x32xf32>
    %cst_40 = arith.constant 2.000000e+00 : f32
    %91 = vector.broadcast %cst_40 : f32 to vector<192x32xf32>
    %92 = arith.mulf %91, %78 : vector<192x32xf32>
    %cst_41 = arith.constant 9.99999974E-5 : f32
    %93 = vector.broadcast %cst_41 : f32 to vector<192x32xf32>
    %94 = arith.addf %92, %93 : vector<192x32xf32>
    %95 = arith.mulf %90, %94 : vector<192x32xf32>
    %96 = arith.addf %76, %77 : vector<192x32xf32>
    %cst_42 = arith.constant 9.99999974E-5 : f32
    %97 = vector.broadcast %cst_42 : f32 to vector<192x32xf32>
    %98 = arith.addf %96, %97 : vector<192x32xf32>
    %99 = tpu.reciprocal %98 {approx = true} : vector<192x32xf32> -> vector<192x32xf32>
    %100 = arith.mulf %95, %99 : vector<192x32xf32>
    %101 = vector.extract_strided_slice %100 {offsets = [0, 0], sizes = [32, 32], strides = [1, 1]} : vector<192x32xf32> to vector<32x32xf32>
    %102 = vector.shape_cast %101 : vector<32x32xf32> to vector<1x32x32xf32>
    %cst_43 = arith.constant dense<0.000000e+00> : vector<1xf32>
    %103 = vector.multi_reduction <add>, %102, %cst_43 [1, 2] : vector<1x32x32xf32> to vector<1xf32>
    %104 = vector.shape_cast %103 : vector<1xf32> to vector<1x1x1xf32>
    %105 = vector.extract %104[0, 0, 0] : f32 from vector<1x1x1xf32>
    %106 = vector.extract_strided_slice %90 {offsets = [0, 0], sizes = [32, 32], strides = [1, 1]} : vector<192x32xf32> to vector<32x32xf32>
    %107 = vector.shape_cast %106 : vector<32x32xf32> to vector<1x32x32xf32>
    %cst_44 = arith.constant dense<0.000000e+00> : vector<1xf32>
    %108 = vector.multi_reduction <add>, %107, %cst_44 [1, 2] : vector<1x32x32xf32> to vector<1xf32>
    %109 = vector.shape_cast %108 : vector<1xf32> to vector<1x1x1xf32>
    %110 = vector.extract %109[0, 0, 0] : f32 from vector<1x1x1xf32>
    %111 = vector.broadcast %105 : f32 to vector<1x128xf32>
    %c0_45 = arith.constant 0 : index
    %c0_46 = arith.constant 0 : index
    %c0_47 = arith.constant 0 : index
    %112 = vector.load %arg6[%c0_45, %c0_46, %c0_47] : memref<6x1x128xf32, #tpu.memory_space<vmem>>, vector<1x1x128xf32>
    %113 = vector.shape_cast %112 : vector<1x1x128xf32> to vector<1x128xf32>
    %114 = vector.shape_cast %111 : vector<1x128xf32> to vector<1x1x128xf32>
    tpu.vector_store %arg6[%c0_45, %c0_46, %c0_47], %114 {strides = array<i32>} : memref<6x1x128xf32, #tpu.memory_space<vmem>>, vector<1x1x128xf32>,
    %115 = vector.broadcast %110 : f32 to vector<1x128xf32>
    %c0_48 = arith.constant 0 : index
    %c0_49 = arith.constant 0 : index
    %c0_50 = arith.constant 0 : index
    %116 = vector.load %arg7[%c0_48, %c0_49, %c0_50] : memref<6x1x128xf32, #tpu.memory_space<vmem>>, vector<1x1x128xf32>
    %117 = vector.shape_cast %116 : vector<1x1x128xf32> to vector<1x128xf32>
    %118 = vector.shape_cast %115 : vector<1x128xf32> to vector<1x1x128xf32>
    tpu.vector_store %arg7[%c0_48, %c0_49, %c0_50], %118 {strides = array<i32>} : memref<6x1x128xf32, #tpu.memory_space<vmem>>, vector<1x1x128xf32>,
    %119 = vector.extract_strided_slice %100 {offsets = [32, 0], sizes = [32, 32], strides = [1, 1]} : vector<192x32xf32> to vector<32x32xf32>
    %120 = vector.shape_cast %119 : vector<32x32xf32> to vector<1x32x32xf32>
    %cst_51 = arith.constant dense<0.000000e+00> : vector<1xf32>
    %121 = vector.multi_reduction <add>, %120, %cst_51 [1, 2] : vector<1x32x32xf32> to vector<1xf32>
    %122 = vector.shape_cast %121 : vector<1xf32> to vector<1x1x1xf32>
    %123 = vector.extract %122[0, 0, 0] : f32 from vector<1x1x1xf32>
    %124 = vector.extract_strided_slice %90 {offsets = [32, 0], sizes = [32, 32], strides = [1, 1]} : vector<192x32xf32> to vector<32x32xf32>
    %125 = vector.shape_cast %124 : vector<32x32xf32> to vector<1x32x32xf32>
    %cst_52 = arith.constant dense<0.000000e+00> : vector<1xf32>
    %126 = vector.multi_reduction <add>, %125, %cst_52 [1, 2] : vector<1x32x32xf32> to vector<1xf32>
    %127 = vector.shape_cast %126 : vector<1xf32> to vector<1x1x1xf32>
    %128 = vector.extract %127[0, 0, 0] : f32 from vector<1x1x1xf32>
    %129 = vector.broadcast %123 : f32 to vector<1x128xf32>
    %c1 = arith.constant 1 : index
    %c0_53 = arith.constant 0 : index
    %c0_54 = arith.constant 0 : index
    %130 = vector.load %arg6[%c1, %c0_53, %c0_54] : memref<6x1x128xf32, #tpu.memory_space<vmem>>, vector<1x1x128xf32>
    %131 = vector.shape_cast %130 : vector<1x1x128xf32> to vector<1x128xf32>
    %132 = vector.shape_cast %129 : vector<1x128xf32> to vector<1x1x128xf32>
    tpu.vector_store %arg6[%c1, %c0_53, %c0_54], %132 {strides = array<i32>} : memref<6x1x128xf32, #tpu.memory_space<vmem>>, vector<1x1x128xf32>,
    %133 = vector.broadcast %128 : f32 to vector<1x128xf32>
    %c1_55 = arith.constant 1 : index
    %c0_56 = arith.constant 0 : index
    %c0_57 = arith.constant 0 : index
    %134 = vector.load %arg7[%c1_55, %c0_56, %c0_57] : memref<6x1x128xf32, #tpu.memory_space<vmem>>, vector<1x1x128xf32>
    %135 = vector.shape_cast %134 : vector<1x1x128xf32> to vector<1x128xf32>
    %136 = vector.shape_cast %133 : vector<1x128xf32> to vector<1x1x128xf32>
    tpu.vector_store %arg7[%c1_55, %c0_56, %c0_57], %136 {strides = array<i32>} : memref<6x1x128xf32, #tpu.memory_space<vmem>>, vector<1x1x128xf32>,
    %137 = vector.extract_strided_slice %100 {offsets = [64, 0], sizes = [32, 32], strides = [1, 1]} : vector<192x32xf32> to vector<32x32xf32>
    %138 = vector.shape_cast %137 : vector<32x32xf32> to vector<1x32x32xf32>
    %cst_58 = arith.constant dense<0.000000e+00> : vector<1xf32>
    %139 = vector.multi_reduction <add>, %138, %cst_58 [1, 2] : vector<1x32x32xf32> to vector<1xf32>
    %140 = vector.shape_cast %139 : vector<1xf32> to vector<1x1x1xf32>
    %141 = vector.extract %140[0, 0, 0] : f32 from vector<1x1x1xf32>
    %142 = vector.extract_strided_slice %90 {offsets = [64, 0], sizes = [32, 32], strides = [1, 1]} : vector<192x32xf32> to vector<32x32xf32>
    %143 = vector.shape_cast %142 : vector<32x32xf32> to vector<1x32x32xf32>
    %cst_59 = arith.constant dense<0.000000e+00> : vector<1xf32>
    %144 = vector.multi_reduction <add>, %143, %cst_59 [1, 2] : vector<1x32x32xf32> to vector<1xf32>
    %145 = vector.shape_cast %144 : vector<1xf32> to vector<1x1x1xf32>
    %146 = vector.extract %145[0, 0, 0] : f32 from vector<1x1x1xf32>
    %147 = vector.broadcast %141 : f32 to vector<1x128xf32>
    %c2 = arith.constant 2 : index
    %c0_60 = arith.constant 0 : index
    %c0_61 = arith.constant 0 : index
    %148 = vector.load %arg6[%c2, %c0_60, %c0_61] : memref<6x1x128xf32, #tpu.memory_space<vmem>>, vector<1x1x128xf32>
    %149 = vector.shape_cast %148 : vector<1x1x128xf32> to vector<1x128xf32>
    %150 = vector.shape_cast %147 : vector<1x128xf32> to vector<1x1x128xf32>
    tpu.vector_store %arg6[%c2, %c0_60, %c0_61], %150 {strides = array<i32>} : memref<6x1x128xf32, #tpu.memory_space<vmem>>, vector<1x1x128xf32>,
    %151 = vector.broadcast %146 : f32 to vector<1x128xf32>
    %c2_62 = arith.constant 2 : index
    %c0_63 = arith.constant 0 : index
    %c0_64 = arith.constant 0 : index
    %152 = vector.load %arg7[%c2_62, %c0_63, %c0_64] : memref<6x1x128xf32, #tpu.memory_space<vmem>>, vector<1x1x128xf32>
    %153 = vector.shape_cast %152 : vector<1x1x128xf32> to vector<1x128xf32>
    %154 = vector.shape_cast %151 : vector<1x128xf32> to vector<1x1x128xf32>
    tpu.vector_store %arg7[%c2_62, %c0_63, %c0_64], %154 {strides = array<i32>} : memref<6x1x128xf32, #tpu.memory_space<vmem>>, vector<1x1x128xf32>,
    %155 = vector.extract_strided_slice %100 {offsets = [96, 0], sizes = [32, 32], strides = [1, 1]} : vector<192x32xf32> to vector<32x32xf32>
    %156 = vector.shape_cast %155 : vector<32x32xf32> to vector<1x32x32xf32>
    %cst_65 = arith.constant dense<0.000000e+00> : vector<1xf32>
    %157 = vector.multi_reduction <add>, %156, %cst_65 [1, 2] : vector<1x32x32xf32> to vector<1xf32>
    %158 = vector.shape_cast %157 : vector<1xf32> to vector<1x1x1xf32>
    %159 = vector.extract %158[0, 0, 0] : f32 from vector<1x1x1xf32>
    %160 = vector.extract_strided_slice %90 {offsets = [96, 0], sizes = [32, 32], strides = [1, 1]} : vector<192x32xf32> to vector<32x32xf32>
    %161 = vector.shape_cast %160 : vector<32x32xf32> to vector<1x32x32xf32>
    %cst_66 = arith.constant dense<0.000000e+00> : vector<1xf32>
    %162 = vector.multi_reduction <add>, %161, %cst_66 [1, 2] : vector<1x32x32xf32> to vector<1xf32>
    %163 = vector.shape_cast %162 : vector<1xf32> to vector<1x1x1xf32>
    %164 = vector.extract %163[0, 0, 0] : f32 from vector<1x1x1xf32>
    %165 = vector.broadcast %159 : f32 to vector<1x128xf32>
    %c3 = arith.constant 3 : index
    %c0_67 = arith.constant 0 : index
    %c0_68 = arith.constant 0 : index
    %166 = vector.load %arg6[%c3, %c0_67, %c0_68] : memref<6x1x128xf32, #tpu.memory_space<vmem>>, vector<1x1x128xf32>
    %167 = vector.shape_cast %166 : vector<1x1x128xf32> to vector<1x128xf32>
    %168 = vector.shape_cast %165 : vector<1x128xf32> to vector<1x1x128xf32>
    tpu.vector_store %arg6[%c3, %c0_67, %c0_68], %168 {strides = array<i32>} : memref<6x1x128xf32, #tpu.memory_space<vmem>>, vector<1x1x128xf32>,
    %169 = vector.broadcast %164 : f32 to vector<1x128xf32>
    %c3_69 = arith.constant 3 : index
    %c0_70 = arith.constant 0 : index
    %c0_71 = arith.constant 0 : index
    %170 = vector.load %arg7[%c3_69, %c0_70, %c0_71] : memref<6x1x128xf32, #tpu.memory_space<vmem>>, vector<1x1x128xf32>
    %171 = vector.shape_cast %170 : vector<1x1x128xf32> to vector<1x128xf32>
    %172 = vector.shape_cast %169 : vector<1x128xf32> to vector<1x1x128xf32>
    tpu.vector_store %arg7[%c3_69, %c0_70, %c0_71], %172 {strides = array<i32>} : memref<6x1x128xf32, #tpu.memory_space<vmem>>, vector<1x1x128xf32>,
    %173 = vector.extract_strided_slice %100 {offsets = [128, 0], sizes = [32, 32], strides = [1, 1]} : vector<192x32xf32> to vector<32x32xf32>
    %174 = vector.shape_cast %173 : vector<32x32xf32> to vector<1x32x32xf32>
    %cst_72 = arith.constant dense<0.000000e+00> : vector<1xf32>
    %175 = vector.multi_reduction <add>, %174, %cst_72 [1, 2] : vector<1x32x32xf32> to vector<1xf32>
    %176 = vector.shape_cast %175 : vector<1xf32> to vector<1x1x1xf32>
    %177 = vector.extract %176[0, 0, 0] : f32 from vector<1x1x1xf32>
    %178 = vector.extract_strided_slice %90 {offsets = [128, 0], sizes = [32, 32], strides = [1, 1]} : vector<192x32xf32> to vector<32x32xf32>
    %179 = vector.shape_cast %178 : vector<32x32xf32> to vector<1x32x32xf32>
    %cst_73 = arith.constant dense<0.000000e+00> : vector<1xf32>
    %180 = vector.multi_reduction <add>, %179, %cst_73 [1, 2] : vector<1x32x32xf32> to vector<1xf32>
    %181 = vector.shape_cast %180 : vector<1xf32> to vector<1x1x1xf32>
    %182 = vector.extract %181[0, 0, 0] : f32 from vector<1x1x1xf32>
    %183 = vector.broadcast %177 : f32 to vector<1x128xf32>
    %c4 = arith.constant 4 : index
    %c0_74 = arith.constant 0 : index
    %c0_75 = arith.constant 0 : index
    %184 = vector.load %arg6[%c4, %c0_74, %c0_75] : memref<6x1x128xf32, #tpu.memory_space<vmem>>, vector<1x1x128xf32>
    %185 = vector.shape_cast %184 : vector<1x1x128xf32> to vector<1x128xf32>
    %186 = vector.shape_cast %183 : vector<1x128xf32> to vector<1x1x128xf32>
    tpu.vector_store %arg6[%c4, %c0_74, %c0_75], %186 {strides = array<i32>} : memref<6x1x128xf32, #tpu.memory_space<vmem>>, vector<1x1x128xf32>,
    %187 = vector.broadcast %182 : f32 to vector<1x128xf32>
    %c4_76 = arith.constant 4 : index
    %c0_77 = arith.constant 0 : index
    %c0_78 = arith.constant 0 : index
    %188 = vector.load %arg7[%c4_76, %c0_77, %c0_78] : memref<6x1x128xf32, #tpu.memory_space<vmem>>, vector<1x1x128xf32>
    %189 = vector.shape_cast %188 : vector<1x1x128xf32> to vector<1x128xf32>
    %190 = vector.shape_cast %187 : vector<1x128xf32> to vector<1x1x128xf32>
    tpu.vector_store %arg7[%c4_76, %c0_77, %c0_78], %190 {strides = array<i32>} : memref<6x1x128xf32, #tpu.memory_space<vmem>>, vector<1x1x128xf32>,
    %191 = vector.extract_strided_slice %100 {offsets = [160, 0], sizes = [32, 32], strides = [1, 1]} : vector<192x32xf32> to vector<32x32xf32>
    %192 = vector.shape_cast %191 : vector<32x32xf32> to vector<1x32x32xf32>
    %cst_79 = arith.constant dense<0.000000e+00> : vector<1xf32>
    %193 = vector.multi_reduction <add>, %192, %cst_79 [1, 2] : vector<1x32x32xf32> to vector<1xf32>
    %194 = vector.shape_cast %193 : vector<1xf32> to vector<1x1x1xf32>
    %195 = vector.extract %194[0, 0, 0] : f32 from vector<1x1x1xf32>
    %196 = vector.extract_strided_slice %90 {offsets = [160, 0], sizes = [32, 32], strides = [1, 1]} : vector<192x32xf32> to vector<32x32xf32>
    %197 = vector.shape_cast %196 : vector<32x32xf32> to vector<1x32x32xf32>
    %cst_80 = arith.constant dense<0.000000e+00> : vector<1xf32>
    %198 = vector.multi_reduction <add>, %197, %cst_80 [1, 2] : vector<1x32x32xf32> to vector<1xf32>
    %199 = vector.shape_cast %198 : vector<1xf32> to vector<1x1x1xf32>
    %200 = vector.extract %199[0, 0, 0] : f32 from vector<1x1x1xf32>
    %201 = vector.broadcast %195 : f32 to vector<1x128xf32>
    %c5 = arith.constant 5 : index
    %c0_81 = arith.constant 0 : index
    %c0_82 = arith.constant 0 : index
    %202 = vector.load %arg6[%c5, %c0_81, %c0_82] : memref<6x1x128xf32, #tpu.memory_space<vmem>>, vector<1x1x128xf32>
    %203 = vector.shape_cast %202 : vector<1x1x128xf32> to vector<1x128xf32>
    %204 = vector.shape_cast %201 : vector<1x128xf32> to vector<1x1x128xf32>
    tpu.vector_store %arg6[%c5, %c0_81, %c0_82], %204 {strides = array<i32>} : memref<6x1x128xf32, #tpu.memory_space<vmem>>, vector<1x1x128xf32>,
    %205 = vector.broadcast %200 : f32 to vector<1x128xf32>
    %c5_83 = arith.constant 5 : index
    %c0_84 = arith.constant 0 : index
    %c0_85 = arith.constant 0 : index
    %206 = vector.load %arg7[%c5_83, %c0_84, %c0_85] : memref<6x1x128xf32, #tpu.memory_space<vmem>>, vector<1x1x128xf32>
    %207 = vector.shape_cast %206 : vector<1x1x128xf32> to vector<1x128xf32>
    %208 = vector.shape_cast %205 : vector<1x128xf32> to vector<1x1x128xf32>
    tpu.vector_store %arg7[%c5_83, %c0_84, %c0_85], %208 {strides = array<i32>} : memref<6x1x128xf32, #tpu.memory_space<vmem>>, vector<1x1x128xf32>,
    %c0_86 = arith.constant 0 : index
    %c0_87 = arith.constant 0 : index
    %209 = vector.load %arg5[%c0_86, %c0_87] : memref<32x16xbf16, #tpu.memory_space<vmem>>, vector<32x16xbf16>
    %c0_88 = arith.constant 0 : index
    %c0_89 = arith.constant 0 : index
    %210 = tpu.strided_load %arg1[%c0_88, %c0_89] {strides = array<i32: 2, 1>} : memref<192x32xf32, #tpu.memory_space<vmem>>, vector<96x32xf32>
    %c1_90 = arith.constant 1 : index
    %c0_91 = arith.constant 0 : index
    %211 = tpu.strided_load %arg1[%c1_90, %c0_91] {strides = array<i32: 2, 1>} : memref<192x32xf32, #tpu.memory_space<vmem>>, vector<96x32xf32>
    %212 = arith.addf %210, %211 : vector<96x32xf32>
    %cst_92 = arith.constant 5.000000e-01 : f32
    %213 = vector.broadcast %cst_92 : f32 to vector<96x32xf32>
    %214 = arith.mulf %212, %213 : vector<96x32xf32>
    %215 = arith.truncf %214 : vector<96x32xf32> to vector<96x32xbf16>
    %cst_93 = arith.constant dense<0.000000e+00> : vector<96x16xf32>
    %216 = tpu.matmul %215, %209, %cst_93 {dimension_numbers = #tpu.dot_dimension_numbers<[1], [0], [0], [1], [0, 0, 1, 1], [], []>} : vector<96x32xbf16>, vector<32x16xbf16>, vector<96x16xf32> -> vector<96x16xf32>
    %217 = arith.truncf %216 : vector<96x16xf32> to vector<96x16xbf16>
    %c0_94 = arith.constant 0 : index
    %c0_95 = arith.constant 0 : index
    %218 = vector.load %arg8[%c0_94, %c0_95] : memref<96x16xbf16, #tpu.memory_space<vmem>>, vector<96x16xbf16>
    tpu.vector_store %arg8[%c0_94, %c0_95], %217 {strides = array<i32>} : memref<96x16xbf16, #tpu.memory_space<vmem>>, vector<96x16xbf16>,
    %c0_96 = arith.constant 0 : index
    %c0_97 = arith.constant 0 : index
    %219 = tpu.strided_load %arg2[%c0_96, %c0_97] {strides = array<i32: 2, 1>} : memref<192x32xf32, #tpu.memory_space<vmem>>, vector<96x32xf32>
    %c1_98 = arith.constant 1 : index
    %c0_99 = arith.constant 0 : index
    %220 = tpu.strided_load %arg2[%c1_98, %c0_99] {strides = array<i32: 2, 1>} : memref<192x32xf32, #tpu.memory_space<vmem>>, vector<96x32xf32>
    %221 = arith.addf %219, %220 : vector<96x32xf32>
    %cst_100 = arith.constant 5.000000e-01 : f32
    %222 = vector.broadcast %cst_100 : f32 to vector<96x32xf32>
    %223 = arith.mulf %221, %222 : vector<96x32xf32>
    %224 = arith.truncf %223 : vector<96x32xf32> to vector<96x32xbf16>
    %cst_101 = arith.constant dense<0.000000e+00> : vector<96x16xf32>
    %225 = tpu.matmul %224, %209, %cst_101 {dimension_numbers = #tpu.dot_dimension_numbers<[1], [0], [0], [1], [0, 0, 1, 1], [], []>} : vector<96x32xbf16>, vector<32x16xbf16>, vector<96x16xf32> -> vector<96x16xf32>
    %226 = arith.truncf %225 : vector<96x16xf32> to vector<96x16xbf16>
    %c0_102 = arith.constant 0 : index
    %c0_103 = arith.constant 0 : index
    %227 = vector.load %arg9[%c0_102, %c0_103] : memref<96x16xbf16, #tpu.memory_space<vmem>>, vector<96x16xbf16>
    tpu.vector_store %arg9[%c0_102, %c0_103], %226 {strides = array<i32>} : memref<96x16xbf16, #tpu.memory_space<vmem>>, vector<96x16xbf16>,
    return
  }
  func.func @transform_0(%arg0: i32) -> (i32, i32) {
    %c0_i32 = arith.constant 0 : i32
    %c0_i32_0 = arith.constant 0 : i32
    return %arg0, %c0_i32 : i32, i32
  }
  func.func @transform_1(%arg0: i32) -> (i32, i32) {
    %c0_i32 = arith.constant 0 : i32
    %c0_i32_0 = arith.constant 0 : i32
    return %arg0, %c0_i32 : i32, i32
  }
  func.func @transform_2(%arg0: i32) -> (i32, i32) {
    %c0_i32 = arith.constant 0 : i32
    %c0_i32_0 = arith.constant 0 : i32
    %c0_i32_1 = arith.constant 0 : i32
    return %c0_i32, %c0_i32_0 : i32, i32
  }
  func.func @transform_3(%arg0: i32) -> (i32, i32) {
    %c0_i32 = arith.constant 0 : i32
    %c0_i32_0 = arith.constant 0 : i32
    %c0_i32_1 = arith.constant 0 : i32
    return %c0_i32, %c0_i32_0 : i32, i32
  }
  func.func @transform_4(%arg0: i32) -> (i32, i32) {
    %c0_i32 = arith.constant 0 : i32
    %c0_i32_0 = arith.constant 0 : i32
    %c0_i32_1 = arith.constant 0 : i32
    return %c0_i32, %c0_i32_0 : i32, i32
  }
  func.func @transform_5(%arg0: i32) -> (i32, i32, i32) {
    %c0_i32 = arith.constant 0 : i32
    %c0_i32_0 = arith.constant 0 : i32
    %c0_i32_1 = arith.constant 0 : i32
    return %arg0, %c0_i32, %c0_i32_0 : i32, i32, i32
  }
  func.func @transform_6(%arg0: i32) -> (i32, i32, i32) {
    %c0_i32 = arith.constant 0 : i32
    %c0_i32_0 = arith.constant 0 : i32
    %c0_i32_1 = arith.constant 0 : i32
    return %arg0, %c0_i32, %c0_i32_0 : i32, i32, i32
  }
  func.func @transform_7(%arg0: i32) -> (i32, i32) {
    %c0_i32 = arith.constant 0 : i32
    %c0_i32_0 = arith.constant 0 : i32
    return %arg0, %c0_i32 : i32, i32
  }
  func.func @transform_8(%arg0: i32) -> (i32, i32) {
    %c0_i32 = arith.constant 0 : i32
    %c0_i32_0 = arith.constant 0 : i32
    return %arg0, %c0_i32 : i32, i32
  }
}

</mosaic_0001>

<bundles_post_ra>
// kernel: tpu_custom_call.1
= control target key start
LH: loop header
LB: loop body
LE: loop exit
PB: predicated region body
PF: predicated region fallthrough
CT: control target
= control target key end

     0   :  { %s7257_s0 = inlined_call_operand.vmem [shape: f32[384,32], index: 0, kind: input, shape index: {}]   ;;  %s7258_s1 = inlined_call_operand.vmem [shape: f32[384,32], index: 1, kind: input, shape index: {}]   ;;  %s7259_s2 = inlined_call_operand.vmem [shape: bf16[32,32], index: 2, kind: input, shape index: {}]   ;;  %s7260_s3 = inlined_call_operand.vmem [shape: bf16[32,32], index: 3, kind: input, shape index: {}]   ;;  %s7261_s4 = inlined_call_operand.vmem [shape: bf16[32,16], index: 4, kind: input, shape index: {}]   ;;  %s7262_s5 = inlined_call_operand.hbm [shape: f32[12,1,128], index: 5, kind: output, shape index: {0}]   ;;  %s7263_s6 = inlined_call_operand.hbm [shape: f32[12,1,128], index: 6, kind: output, shape index: {1}]   ;;  %s7264_s7 = inlined_call_operand.vmem [shape: bf16[192,16], index: 7, kind: output, shape index: {2}]   ;;  %s7265_s8 = inlined_call_operand.vmem [shape: bf16[192,16], index: 8, kind: output, shape index: {3}]  }
   0x1   :  { %7329 = sst [smem:[#allocation81_spill]] %s7257_s0 }
   0x2   :  { %7330 = sst [smem:[#allocation82_spill]] %s7258_s1 }
   0x3   :  { %7331 = sst [smem:[#allocation83_spill]] %s7259_s2 }
   0x4   :  { %14 = vsyncpa [#allocation3], 0 }
   0x5   :  { %16 = vsyncpa [#allocation3 + $0x1], 0 }
   0x6   :  { %17 = vsyncpa [#allocation5], 0 }
   0x7   :  { %19 = vsyncpa [#allocation5 + $0x1], 0  ;;  %s5352_s27 = smov 0   ;;  %s5354_s28 = smov 0  }
   0x8   :  { %s5356_s29 = smov 0   ;;  %s5358_s30 = smov 0  }
   0x9 LB: > { %s5373_s9 = sadd.s32 4294967295, %s5301_s30   ;;  %s4188_s10 = sadd.s32 4294967294, %s5301_s30   ;;  %s5301_s30 = sphi %s5358_s30, %s7612_s30   ;;  %s5297_s29 = sphi %s5356_s29, %s7611_s29   ;;  %s5293_s28 = sphi %s5354_s28, %s7610_s28   ;;  %s5289_s27 = sphi %s5352_s27, %s7609_s27  }
   0xa   : > { %s5377_s11 = sadd.s32 1, %s5301_s30   ;;  %s147_s12 = sadd.s32 1, %s5297_s29 }
   0xb   : > { %s144_s13 = ssub.s32 %s5301_s30, %s5377_s11  ;;  %p157_p0 = scmp.ne.s32.totalorder %s5297_s29, %s5293_s28 }
   0xc   : > { %p145_p1 = scmp.eq.s32.totalorder %s144_s13, 0  ;;  %p158_p2 = scmp.eq.s32.totalorder %s5373_s9, 1 }
   0xd   : > { %p163_p3 = scmp.ne.s32.totalorder %s5293_s28, %s5289_s27  ;;  %p164_p4 = scmp.eq.s32.totalorder %s4188_s10, 1 }
   0xe   : > { %s5388_s14 = scalar_select %p145_p1, %s5297_s29, %s147_s12  }
   0xf   : > { %p5390_p5 = por %p158_p2, %p157_p0  ;;  %p5394_p6 = por %p164_p4, %p163_p3 }
  0x10   : > { %p4191_p7 = scmp.ge.s32.totalorder %s5301_s30, 1  ;;  %p287_p8 = scmp.lt.s32.totalorder %s5301_s30, 3 }
  0x12   : > { %p288_p9 = pnand %p4191_p7, %p287_p8 }
  0x14   : > { %291 = sbr.rel (%p288_p9) target bundleno = 939 (0x3ab), region = 40 }
  0x19   : > { %v5109_v0 = vld [vmem:[%s7260_s3 + $0x8] sm:$0xff]   ;;  %s341_s19 = smul.u32 24, %s5373_s9  ;;  %v5110_v1 = vld [vmem:[%s7260_s3] sm:$0xff]   ;;  %s7334_s0 = sld [smem:[#allocation81_spill]]  ;;  %vm568_vm0 = vcmask 261120   ;;  %vm3730_vm1 = vcmask 125952  }
  0x1a   : > { %4642 = vmatprep.subr.bf16.mxu0 %v5109_v0  ;;  %s7335_s1 = sld [smem:[#allocation82_spill]]  ;;  %s355_s24 = smul.u32 12, %s5373_s9 }
  0x1b   : > { %p342_p10 = scmp.lt.s32.totalorder %s341_s19, 47  ;;  %4643 = vmatpush3.bf16.msra.mxu0 %v5109_v0  ;;  %s7342_s2 = sld [smem:[#allocation83_spill]] }
  0x1c   : > { %4644 = vmatprep.subr.bf16.mxu0 %v5110_v1  ;;  %p356_p11 = scmp.lt.s32.totalorder %s355_s24, 23 }
  0x1d   : > { %s7614_s19 = smov (!%p342_p10, %s341_s19), 47 }
  0x1e   : > { %s4192_s22 = sshll.u32 %s7614_s19, 3  ;;  %s7616_s24 = smov (!%p356_p11, %s355_s24), 23 }
  0x1f   : > { %4645 = vmatpush3.bf16.msra.mxu0 %v5110_v1  ;;  %s5410_s25 = scalar_lea.vmem %s7334_s0, %s4192_s22  ;;  %s7154_s19 = sand.u32 1, %s5293_s28  }
  0x20   : > { %s5415_s12 = scalar_lea.vmem %s7335_s1, %s4192_s22  ;;  %v368_v2 = vld [vmem:[%s5410_s25] sm:$0xff]  ;;  %v369_v3 = vld [vmem:[%s5410_s25 + $0x8] sm:$0xff]  ;;  %v5433_v10 = vld [vmem:[%s5410_s25 + $0x10] sm:$0xff]  ;;  %s5038_s20 = smul.u32 6, %s7154_s19 }
  0x21   : > { %v5420_v4 = vld [vmem:[%s5415_s12] sm:$0xff]  ;;  %v5423_v5 = vld [vmem:[%s5415_s12 + $0x8] sm:$0xff]  ;;  %v5425_v6 = vmul.f32 %v368_v2, %v368_v2  ;;  %v5427_v7 = vmul.f32 %v369_v3, %v369_v3  ;;  %v496_v9 = vpack.c.bf16 %v369_v3, %v368_v2  ;;  %v5436_v11 = vld [vmem:[%s5410_s25 + $0x18] sm:$0xff]  ;;  %v5451_v16 = vmul.f32 %v5433_v10, %v5433_v10  ;;  %s3980_s1 = scalar_lea.sflag [#allocation3], %s7154_s19 }
  0x22   : > { %v5430_v8 = vmul.f32 %v5420_v4, %v368_v2  ;;  %v5439_v12 = vmul.f32 %v5423_v5, %v369_v3  ;;  %v497_v13 = vpack.c.bf16 %v5436_v11, %v5433_v10  ;;  %v5444_v14 = vld [vmem:[%s5410_s25 + $0x20] sm:$0xff]  ;;  %v5447_v15 = vld [vmem:[%s5410_s25 + $0x28] sm:$0xff]  ;;  %v5460_v19 = vmul.f32 %v5436_v11, %v5436_v11  ;;  %v5465_v20 = vld [vmem:[%s5410_s25 + $0x30] sm:$0xff]  ;;  %s7157_s23 = scalar_lea.vmem [#allocation2], %s5038_s20 }
  0x23   : > { %4646 = vmatprep.mubr.msk.bf16.mxu0 %vm568_vm0, %v496_v9  ;;  %v498_v17 = vpack.c.bf16 %v5447_v15, %v5444_v14  ;;  %v5468_v21 = vld [vmem:[%s5410_s25 + $0x38] sm:$0xff]  ;;  %v5473_v23 = vld [vmem:[%s5410_s25 + $0x40] sm:$0xff]  ;;  %v5476_v24 = vld [vmem:[%s5410_s25 + $0x48] sm:$0xff]  ;;  %v5544_v52 = vmul.f32 %v5420_v4, %v5420_v4  ;;  %v5548_v53 = vmul.f32 %v5423_v5, %v5423_v5 }
  0x24   : > { %7336 = vst [vmem:[#allocation8_spill] sm:$0xff] %v5430_v8  ;;  %7337 = vst [vmem:[#allocation9_spill] sm:$0xff] %v5439_v12  ;;  %4647 = vmatmul.mubr.msk.bf16.vlgmr.msra.gmra.mxu0 %vm568_vm0, %v497_v13  ;;  %v499_v25 = vpack.c.bf16 %v5468_v21, %v5465_v20  ;;  %v500_v26 = vpack.c.bf16 %v5476_v24, %v5473_v23  ;;  %v386_v27 = vld [vmem:[%s5410_s25 + $0x90] sm:$0xff]  ;;  %v387_v28 = vld [vmem:[%s5410_s25 + $0x98] sm:$0xff] }
  0x25   : > { %4650 = vmatprep.mubr.msk.bf16.mxu0 %vm568_vm0, %v498_v17  ;;  %v5484_v29 = vmul.f32 %v386_v27, %v386_v27  ;;  %v5488_v30 = vld [vmem:[%s5410_s25 + $0x50] sm:$0xff]  ;;  %v5490_v31 = vmul.f32 %v387_v28, %v387_v28  ;;  %v5494_v32 = vld [vmem:[%s5410_s25 + $0x58] sm:$0xff]  ;;  %v5497_v33 = vld [vmem:[%s5410_s25 + $0x60] sm:$0xff]  ;;  %v505_v58 = vpack.c.bf16 %v387_v28, %v386_v27 }
  0x26   : > { %v5500_v34 = vld [vmem:[%s5410_s25 + $0x68] sm:$0xff]  ;;  %v390_v35 = vld [vmem:[%s5410_s25 + $0xb0] sm:$0xff]  ;;  %v5507_v37 = vld [vmem:[%s5415_s12 + $0x98] sm:$0xff]  ;;  %v501_v45 = vpack.c.bf16 %v5494_v32, %v5488_v30 }
  0x27   : > { %v5504_v36 = vld [vmem:[%s5415_s12 + $0x90] sm:$0xff]  ;;  %v391_v39 = vld [vmem:[%s5410_s25 + $0xb8] sm:$0xff]  ;;  %v5516_v41 = vmul.f32 %v5507_v37, %v387_v28  ;;  %v5524_v44 = vmul.f32 %v390_v35, %v390_v35  ;;  %v502_v46 = vpack.c.bf16 %v5500_v34, %v5497_v33  ;;  %v5557_v56 = vld [vmem:[%s5415_s12 + $0x20] sm:$0xff]  ;;  %v5634_v28 = vmul.f32 %v5507_v37, %v5507_v37 }
  0x28   : > { %v5513_v40 = vmul.f32 %v5504_v36, %v386_v27  ;;  %v5519_v42 = vld [vmem:[%s5415_s12 + $0xb0] sm:$0xff]  ;;  %v5522_v43 = vld [vmem:[%s5415_s12 + $0xb8] sm:$0xff]  ;;  %v5540_v51 = vmul.f32 %v391_v39, %v391_v39  ;;  %v5560_v57 = vld [vmem:[%s5415_s12 + $0x28] sm:$0xff]  ;;  %v5577_v63 = vmul.f32 %v5557_v56, %v5557_v56  ;;  %v5630_v27 = vmul.f32 %v5504_v36, %v5504_v36 }
  0x29   : > { %v5531_v47 = vld [vmem:[%s5415_s12 + $0x10] sm:$0xff]  ;;  %v5534_v48 = vmul.f32 %v5519_v42, %v390_v35  ;;  %v5537_v49 = vmul.f32 %v5522_v43, %v391_v39  ;;  %v395_v50 = vld [vmem:[%s5415_s12 + $0x18] sm:$0xff]  ;;  %v5581_v0 = vmul.f32 %v5560_v57, %v5560_v57  ;;  %v5599_v13 = vld [vmem:[%s5410_s25 + $0x80] sm:$0xff] }
  0x2a   : > { %v5552_v54 = vmul.f32 %v5531_v47, %v5531_v47  ;;  %v5554_v55 = vmul.f32 %v395_v50, %v395_v50  ;;  %v5568_v60 = vld [vmem:[%s5415_s12 + $0x30] sm:$0xff]  ;;  %v5571_v61 = vld [vmem:[%s5415_s12 + $0x38] sm:$0xff]  ;;  %v5602_v17 = vld [vmem:[%s5410_s25 + $0x88] sm:$0xff] }
  0x2b   : > { %v5585_v1 = vld [vmem:[%s5410_s25 + $0x70] sm:$0xff]  ;;  %v5588_v2 = vld [vmem:[%s5410_s25 + $0x78] sm:$0xff]  ;;  %v5592_v3 = vmul.f32 %v5568_v60, %v5568_v60  ;;  %v5596_v9 = vmul.f32 %v5571_v61, %v5571_v61  ;;  %v5615_v62 = vld [vmem:[%s5410_s25 + $0xa0] sm:$0xff]  ;;  %v5722_v8 = vmul.f32 %v5571_v61, %v5468_v21 }
  0x2c   : > { %4651 = vmatmul.mubr.msk.bf16.gmra.mxu0 %vm568_vm0, %v499_v25  ;;  %v5618_v59 = vld [vmem:[%s5410_s25 + $0xa8] sm:$0xff]  ;;  %v5674_v38 = vld [vmem:[%s5415_s12 + $0x60] sm:$0xff]  ;;  %v5695_v12 = vld [vmem:[%s5415_s12 + $0x70] sm:$0xff] }
  0x2d   : > { %4654 = vmatprep.mubr.msk.bf16.mxu0 %vm568_vm0, %v500_v26  ;;  %v506_v25 = vpack.c.bf16 %v5618_v59, %v5615_v62  ;;  %v507_v26 = vpack.c.bf16 %v391_v39, %v390_v35  ;;  %v509_v35 = vpack.c.bf16 %v395_v50, %v5531_v47  ;;  %v5649_v39 = vmul.f32 %v5522_v43, %v5522_v43  ;;  %v5677_v22 = vld [vmem:[%s5415_s12 + $0x68] sm:$0xff] }
  0x2f   : > { %7339 = vst [vmem:[#allocation11_spill] sm:$0xff] %v5649_v39  ;;  %v5743_v39 = vld [vmem:[%s7342_s2] sm:$0xff]  }
  0x30   : > { %4770 = vmatprep.mubr.msk.bf16.mxu1 %vm568_vm0, %v5743_v39 }
  0x34   : > { %4655 = vmatmul.mubr.msk.bf16.gmra.mxu0 %vm568_vm0, %v501_v45  ;;  %v503_v45 = vpack.c.bf16 %v5588_v2, %v5585_v1 }
  0x35   : > { %4658 = vmatprep.mubr.msk.bf16.mxu0 %vm568_vm0, %v502_v46  ;;  %v504_v46 = vpack.c.bf16 %v5602_v17, %v5599_v13 }
  0x3c   : > { %4659 = vmatmul.mubr.msk.bf16.gmra.mxu0 %vm568_vm0, %v503_v45  ;;  %v508_v45 = vpack.c.bf16 %v5423_v5, %v5420_v4  ;;  %v510_v4 = vpack.c.bf16 %v5560_v57, %v5557_v56  ;;  %v5645_v5 = vmul.f32 %v5519_v42, %v5519_v42 }
  0x3d   : > { %4662 = vmatprep.mubr.msk.bf16.mxu0 %vm568_vm0, %v504_v46  ;;  %v5671_v46 = vld [vmem:[%s5415_s12 + $0x58] sm:$0xff] }
  0x3e   : > { %7338 = vst [vmem:[#allocation10_spill] sm:$0xff] %v5645_v5  ;;  %v5698_v5 = vld [vmem:[%s5415_s12 + $0x78] sm:$0xff] }
  0x44   : > { %4663 = vmatmul.mubr.msk.bf16.gmra.mxu0 %vm568_vm0, %v505_v58  ;;  %v5668_v58 = vld [vmem:[%s5415_s12 + $0x50] sm:$0xff] }
  0x45   : > { %4666 = vmatprep.mubr.msk.bf16.mxu0 %vm568_vm0, %v506_v25  ;;  %v5652_v25 = vld [vmem:[%s5415_s12 + $0x40] sm:$0xff]  ;;  %v513_v18 = vpack.c.bf16 %v5671_v46, %v5668_v58 }
  0x4c   : > { %4667 = vmatmul.mubr.msk.bf16.gmra.mxu0 %vm568_vm0, %v507_v26  ;;  %v5655_v26 = vld [vmem:[%s5415_s12 + $0x48] sm:$0xff] }
  0x4d   : > { %4670 = vmatprep.mubr.msk.bf16.mxu0 %vm568_vm0, %v508_v45  ;;  %v511_v45 = vpack.c.bf16 %v5571_v61, %v5568_v60  ;;  %v517_v61 = vpack.c.bf16 %v5507_v37, %v5504_v36  ;;  %v7343_v36 = vpack.c.bf16 %v5427_v7, %v5425_v6  ;;  %v428_v37 = vmul.f32 %v5444_v14, %v5444_v14 }
  0x4e   : > { %v430_v6 = vmul.f32 %v5465_v20, %v5465_v20  ;;  %v431_v7 = vmul.f32 %v5468_v21, %v5468_v21  ;;  %v436_v21 = vmul.f32 %v5497_v33, %v5497_v33 }
  0x54   : > { %4671 = vmatmul.mubr.msk.bf16.gmra.mxu0 %vm568_vm0, %v509_v35  ;;  %v512_v35 = vpack.c.bf16 %v5655_v26, %v5652_v25 }
  0x55   : > { %4674 = vmatprep.mubr.msk.bf16.mxu0 %vm568_vm0, %v510_v4  ;;  %v5686_v4 = vmul.f32 %v395_v50, %v5436_v11  ;;  %v5704_v11 = vld [vmem:[%s5415_s12 + $0x88] sm:$0xff]  ;;  %v5712_v50 = vmul.f32 %v5560_v57, %v5447_v15 }
  0x57   : > { %7341 = vst [vmem:[#allocation13_spill] sm:$0xff] %v5686_v4  ;;  %v5733_v4 = vld [vmem:[%s5415_s12 + $0xa0] sm:$0xff] }
  0x5c   : > { %4675 = vmatmul.mubr.msk.bf16.gmra.mxu0 %vm568_vm0, %v511_v45  ;;  %v5683_v45 = vmul.f32 %v5531_v47, %v5433_v10  ;;  %v5701_v10 = vld [vmem:[%s5415_s12 + $0x80] sm:$0xff]  ;;  %v5708_v47 = vmul.f32 %v5557_v56, %v5444_v14  ;;  %v432_v14 = vmul.f32 %v5473_v23, %v5473_v23 }
  0x5d   : > { %4678 = vmatprep.mubr.msk.bf16.mxu0 %vm568_vm0, %v512_v35  ;;  %v514_v35 = vpack.c.bf16 %v5677_v22, %v5674_v38 }
  0x5e   : > { %7340 = vst [vmem:[#allocation12_spill] sm:$0xff] %v5683_v45  ;;  %v516_v45 = vpack.c.bf16 %v5704_v11, %v5701_v10 }
  0x64   : > { %4679 = vmatmul.mubr.msk.bf16.gmra.mxu0 %vm568_vm0, %v513_v18  ;;  %v515_v18 = vpack.c.bf16 %v5698_v5, %v5695_v12 }
  0x65   : > { %4682 = vmatprep.mubr.msk.bf16.mxu0 %vm568_vm0, %v514_v35  ;;  %v5718_v35 = vmul.f32 %v5568_v60, %v5465_v20  ;;  %v5736_v60 = vld [vmem:[%s5415_s12 + $0xa8] sm:$0xff]  ;;  %v435_v20 = vmul.f32 %v5494_v32, %v5494_v32 }
  0x66   : > { %v518_v56 = vpack.c.bf16 %v5736_v60, %v5733_v4 }
  0x6c   : > { %4683 = vmatmul.mubr.msk.bf16.gmra.mxu0 %vm568_vm0, %v515_v18  ;;  %v429_v18 = vmul.f32 %v5447_v15, %v5447_v15  ;;  %v433_v15 = vmul.f32 %v5476_v24, %v5476_v24 }
  0x6d   : > { %4686 = vmatprep.mubr.msk.bf16.mxu0 %vm568_vm0, %v516_v45  ;;  %v519_v45 = vpack.c.bf16 %v5522_v43, %v5519_v42  ;;  %v7344_v42 = vpack.c.bf16 %v5460_v19, %v5451_v16  ;;  %v523_v43 = vpack.c.bf16 %v431_v7, %v430_v6  ;;  %v555_v16 = vpack.c.bf16 %v5537_v49, %v5534_v48 }
  0x6e   : > { %v522_v57 = vpack.c.bf16 %v429_v18, %v428_v37  ;;  %v434_v19 = vmul.f32 %v5488_v30, %v5488_v30  ;;  %v438_v37 = vmul.f32 %v5585_v1, %v5585_v1  ;;  %v439_v18 = vmul.f32 %v5588_v2, %v5588_v2 }
  0x6f   : > { %v441_v6 = vmul.f32 %v5602_v17, %v5602_v17 }
  0x70   : > { %v527_v7 = vpack.c.bf16 %v439_v18, %v438_v37  ;;  %v465_v37 = vmul.f32 %v5704_v11, %v5704_v11 }
  0x74   : > { %4687 = vmatmul.mubr.msk.bf16.gmra.mxu0 %vm568_vm0, %v517_v61  ;;  %v524_v61 = vpack.c.bf16 %v433_v15, %v432_v14  ;;  %v444_v15 = vmul.f32 %v5615_v62, %v5615_v62 }
  0x75   : > { %4690 = vmatprep.mubr.msk.bf16.mxu0 %vm568_vm0, %v518_v56  ;;  %v553_v56 = vpack.c.bf16 %v5516_v41, %v5513_v40 }
  0x7c   : > { %4691 = vmatmul.mubr.msk.bf16.gmra.mxu0 %vm568_vm0, %v519_v45  ;;  %v525_v45 = vpack.c.bf16 %v435_v20, %v434_v19  ;;  %v7345_v19 = vpack.c.bf16 %v5490_v31, %v5484_v29  ;;  %v7346_v20 = vpack.c.bf16 %v5540_v51, %v5524_v44  ;;  %v7349_v29 = vpack.c.bf16 %v5581_v0, %v5577_v63 }
  0x7d   : > { %4694 = vmatprep.mubr.msk.bf16.mxu0 %vm568_vm0, %v7343_v36  ;;  %v456_v31 = vmul.f32 %v5652_v25, %v5652_v25  ;;  %v457_v44 = vmul.f32 %v5655_v26, %v5655_v26  ;;  %v461_v63 = vmul.f32 %v5677_v22, %v5677_v22 }
  0x7f   : > { %v536_v51 = vpack.c.bf16 %v457_v44, %v456_v31  ;;  %v7358_v31 = vld [vmem:[#allocation13_spill] sm:$0xff]  ;;  %v7359_v44 = vld [vmem:[#allocation12_spill] sm:$0xff] }
  0x84   : > { %4695 = vmatmul.mubr.msk.bf16.gmra.mxu0 %vm568_vm0, %v7344_v42  ;;  %v440_v42 = vmul.f32 %v5599_v13, %v5599_v13 }
  0x85   : > { %4698 = vmatprep.mubr.msk.bf16.mxu0 %vm568_vm0, %v522_v57  ;;  %v437_v57 = vmul.f32 %v5500_v34, %v5500_v34 }
  0x86   : > { %v528_v14 = vpack.c.bf16 %v441_v6, %v440_v42  ;;  %v468_v6 = vmul.f32 %v5733_v4, %v5733_v4 }
  0x87   : > { %v526_v36 = vpack.c.bf16 %v437_v57, %v436_v21  ;;  %v7347_v21 = vpack.c.bf16 %v5548_v53, %v5544_v52  ;;  %v7348_v57 = vpack.c.bf16 %v5554_v55, %v5552_v54  ;;  %v7350_v52 = vpack.c.bf16 %v5596_v9, %v5592_v3 }
  0x88   : > { %v458_v53 = vmul.f32 %v5668_v58, %v5668_v58  ;;  %v459_v54 = vmul.f32 %v5671_v46, %v5671_v46  ;;  %v460_v55 = vmul.f32 %v5674_v38, %v5674_v38  ;;  %v462_v3 = vmul.f32 %v5695_v12, %v5695_v12 }
  0x89   : > { %v463_v9 = vmul.f32 %v5698_v5, %v5698_v5 }
  0x8a   : > { %v537_v0 = vpack.c.bf16 %v459_v54, %v458_v53 }
  0x8b   : > { %v539_v18 = vpack.c.bf16 %v463_v9, %v462_v3  ;;  %v7362_v9 = vpack.c.bf16 %v5722_v8, %v5718_v35  ;;  %v5900_v8 = vld [vmem:[%s7342_s2 + $0x8] sm:$0xff]  }
  0x8c   : > { %4699 = vmatmul.mubr.msk.bf16.gmra.mxu0 %vm568_vm0, %v523_v43  ;;  %v445_v43 = vmul.f32 %v5618_v59, %v5618_v59 }
  0x8d   : > { %4702 = vmatprep.mubr.msk.bf16.mxu0 %vm568_vm0, %v524_v61 }
  0x8e   : > { %v530_v61 = vpack.c.bf16 %v445_v43, %v444_v15  ;;  %v7351_v15 = vpack.c.bf16 %v5634_v28, %v5630_v27  ;;  %v7352_v43 = vld [vmem:[#allocation11_spill] sm:$0xff]  ;;  %v7361_v27 = vpack.c.bf16 %v5712_v50, %v5708_v47  ;;  %v480_v28 = vmul.f32 %v5652_v25, %v5473_v23 }
  0x8f   : > { %v482_v23 = vmul.f32 %v5668_v58, %v5488_v30  ;;  %v485_v47 = vmul.f32 %v5677_v22, %v5500_v34  ;;  %v486_v22 = vmul.f32 %v5695_v12, %v5585_v1  ;;  %v487_v34 = vmul.f32 %v5698_v5, %v5588_v2 }
  0x94   : > { %4703 = vmatmul.mubr.msk.bf16.gmra.mxu0 %vm568_vm0, %v525_v45  ;;  %v538_v45 = vpack.c.bf16 %v461_v63, %v460_v55 }
  0x95   : > { %4706 = vmatprep.mubr.msk.bf16.mxu0 %vm568_vm0, %v526_v36  ;;  %v464_v36 = vmul.f32 %v5701_v10, %v5701_v10 }
  0x97   : > { %v540_v42 = vpack.c.bf16 %v465_v37, %v464_v36  ;;  %v488_v36 = vmul.f32 %v5701_v10, %v5599_v13  ;;  %v489_v37 = vmul.f32 %v5704_v11, %v5602_v17  ;;  %v492_v17 = vmul.f32 %v5733_v4, %v5615_v62 }
  0x98   : > { %v493_v10 = vmul.f32 %v5736_v60, %v5618_v59 }
  0x9c   : > { %4707 = vmatmul.mubr.msk.bf16.gmra.mxu0 %vm568_vm0, %v527_v7  ;;  %v469_v7 = vmul.f32 %v5736_v60, %v5736_v60 }
  0x9d   : > { %4710 = vmatprep.mubr.msk.bf16.mxu0 %vm568_vm0, %v528_v14 }
  0x9e   : > { %v542_v14 = vpack.c.bf16 %v469_v7, %v468_v6  ;;  %v552_v6 = vpack.c.bf16 %v489_v37, %v488_v36 }
  0xa4   : > { %4711 = vmatmul.mubr.msk.bf16.gmra.mxu0 %vm568_vm0, %v7345_v19 }
  0xa5   : > { %4714 = vmatprep.mubr.msk.bf16.mxu0 %vm568_vm0, %v530_v61  ;;  %v7353_v61 = vld [vmem:[#allocation10_spill] sm:$0xff] }
  0xa6   : > { %v7354_v19 = vpack.c.bf16 %v7352_v43, %v7353_v61 }
  0xac   : > { %4715 = vmatmul.mubr.msk.bf16.gmra.mxu0 %vm568_vm0, %v7346_v20  ;;  %v7355_v20 = vld [vmem:[#allocation9_spill] sm:$0xff] }
  0xad   : > { %4718 = vmatprep.mubr.msk.bf16.mxu0 %vm568_vm0, %v7347_v21  ;;  %v7356_v21 = vld [vmem:[#allocation8_spill] sm:$0xff] }
  0xb4   : > { %4719 = vmatmul.mubr.msk.bf16.gmra.mxu0 %vm568_vm0, %v7348_v57  ;;  %v7357_v57 = vpack.c.bf16 %v7355_v20, %v7356_v21 }
  0xb5   : > { %4722 = vmatprep.mubr.msk.bf16.mxu0 %vm568_vm0, %v7349_v29 }
  0xbc   : > { %4723 = vmatmul.mubr.msk.bf16.gmra.mxu0 %vm568_vm0, %v7350_v52  ;;  %v481_v52 = vmul.f32 %v5655_v26, %v5476_v24  ;;  %v483_v24 = vmul.f32 %v5671_v46, %v5494_v32  ;;  %v484_v26 = vmul.f32 %v5674_v38, %v5497_v33 }
  0xbd   : > { %4726 = vmatprep.mubr.msk.bf16.mxu0 %vm568_vm0, %v536_v51  ;;  %v7360_v51 = vpack.c.bf16 %v7358_v31, %v7359_v44 }
  0xbe   : > { %v548_v63 = vpack.c.bf16 %v481_v52, %v480_v28  ;;  %v549_v30 = vpack.c.bf16 %v483_v24, %v482_v23  ;;  %v550_v46 = vpack.c.bf16 %v485_v47, %v484_v26 }
  0xc4   : > { %4727 = vmatmul.mubr.msk.bf16.gmra.mxu0 %vm568_vm0, %v537_v0 }
  0xc5   : > { %4730 = vmatprep.mubr.msk.bf16.mxu0 %vm568_vm0, %v538_v45 }
  0xcc   : > { %4731 = vmatmul.mubr.msk.bf16.gmra.mxu0 %vm568_vm0, %v539_v18 }
  0xcd   : > { %4734 = vmatprep.mubr.msk.bf16.mxu0 %vm568_vm0, %v540_v42  ;;  %v551_v42 = vpack.c.bf16 %v487_v34, %v486_v22 }
  0xd4   : > { %4735 = vmatmul.mubr.msk.bf16.gmra.mxu0 %vm568_vm0, %v7351_v15  ;;  %v554_v15 = vpack.c.bf16 %v493_v10, %v492_v17 }
  0xd5   : > { %4738 = vmatprep.mubr.msk.bf16.mxu0 %vm568_vm0, %v542_v14 }
  0xdc   : > { %4739 = vmatmul.mubr.msk.bf16.gmra.mxu0 %vm568_vm0, %v7354_v19 }
  0xdd   : > { %4742 = vmatprep.mubr.msk.bf16.mxu0 %vm568_vm0, %v7357_v57 }
  0xe4   : > { %v4648_v29 = vpop.f32.mrf.mxu0  ;;  %4743 = vmatmul.mubr.msk.bf16.gmra.mxu0 %vm568_vm0, %v7360_v51 }
  0xe5   : > { %4746 = vmatprep.mubr.msk.bf16.mxu0 %vm568_vm0, %v7361_v27 }
  0xe6   : > { %v783_v53 = vpop.f32.mrf.mxu0 }
  0xe8   : > { %v4649_v54 = vpop.f32.mrf.mxu0 }
  0xe9   : > { %v1263_v55 = vpack.c.bf16 %v4649_v54, %v4648_v29 }
  0xea   : > { %v786_v0 = vpop.f32.mrf.mxu0 }
  0xeb   : > { %v1262_v45 = vpack.c.bf16 %v786_v0, %v783_v53  ;;  %4766 = vmatprep.subr.bf16.mxu1 %v1263_v55 }
  0xec   : > { %v4652_v3 = vpop.f32.mrf.mxu0  ;;  %4747 = vmatmul.mubr.msk.bf16.gmra.mxu0 %vm568_vm0, %v7362_v9  ;;  %4767 = vmatpush3.bf16.msra.mxu1 %v1263_v55 }
  0xed   : > { %4768 = vmatprep.subr.bf16.mxu1 %v1262_v45  ;;  %4750 = vmatprep.mubr.msk.bf16.mxu0 %vm568_vm0, %v548_v63 }
  0xee   : > { %v799_v25 = vpop.f32.mrf.mxu0 }
  0xf0   : > { %v4653_v50 = vpop.f32.mrf.mxu0  ;;  %4769 = vmatpush3.bf16.msra.mxu1 %v1262_v45 }
  0xf1   : > { %v1265_v58 = vpack.c.bf16 %v4653_v50, %v4652_v3 }
  0xf2   : > { %v802_v32 = vpop.f32.mrf.mxu0 }
  0xf3   : > { %v1264_v35 = vpack.c.bf16 %v802_v32, %v799_v25  ;;  %4771 = vmatmul.mubr.msk.bf16.vlgmr.msra.gmra.mxu1 %vm568_vm0, %v5900_v8  ;;  %4774 = vmatprep.subr.bf16.mxu1 %v1265_v58  ;;  %v5966_v32 = vld [vmem:[%s7261_s4 + $0x8] sm:$0xff]  }
  0xf4   : > { %v4656_v33 = vpop.f32.mrf.mxu0  ;;  %4751 = vmatmul.mubr.msk.bf16.gmra.mxu0 %vm568_vm0, %v549_v30  ;;  %4775 = vmatpush3.bf16.msra.mxu1 %v1265_v58 }
  0xf5   : > { %4776 = vmatprep.subr.bf16.mxu1 %v1264_v35  ;;  %4778 = vmatprep.mubr.msk.bf16.mxu1 %vm568_vm0, %v5743_v39 }
  0xf6   : > { %v815_v38 = vpop.f32.mrf.mxu0  ;;  %4754 = vmatprep.mubr.msk.bf16.mxu0 %vm568_vm0, %v550_v46  ;;  %5006 = vmatprep.subr.bf16.mxu0 %v5966_v32 }
  0xf7   : > { %5007 = vmatpush3.bf16.msra.mxu0 %v5966_v32 }
  0xf8   : > { %v4657_v18 = vpop.f32.mrf.mxu0  ;;  %4777 = vmatpush3.bf16.msra.mxu1 %v1264_v35 }
  0xf9   : > { %v1267_v12 = vpack.c.bf16 %v4657_v18, %v4656_v33 }
  0xfa   : > { %v818_v1 = vpop.f32.mrf.mxu0 }
  0xfb   : > { %v1266_v2 = vpack.c.bf16 %v818_v1, %v815_v38  ;;  %4779 = vmatmul.mubr.msk.bf16.vlgmr.msra.gmra.mxu1 %vm568_vm0, %v5900_v8  ;;  %4782 = vmatprep.subr.bf16.mxu1 %v1267_v12 }
  0xfc   : > { %v4660_v5 = vpop.f32.mrf.mxu0  ;;  %4755 = vmatmul.mubr.msk.bf16.gmra.mxu0 %vm568_vm0, %v551_v42  ;;  %4783 = vmatpush3.bf16.msra.mxu1 %v1267_v12 }
  0xfd   : > { %4784 = vmatprep.subr.bf16.mxu1 %v1266_v2  ;;  %4786 = vmatprep.mubr.msk.bf16.mxu1 %vm568_vm0, %v5743_v39 }
  0xfe   : > { %v831_v13 = vpop.f32.mrf.mxu0  ;;  %4758 = vmatprep.mubr.msk.bf16.mxu0 %vm568_vm0, %v552_v6 }
 0x100   : > { %v4661_v11 = vpop.f32.mrf.mxu0  ;;  %4785 = vmatpush3.bf16.msra.mxu1 %v1266_v2 }
 0x101   : > { %v1269_v7 = vpack.c.bf16 %v4661_v11, %v4660_v5 }
 0x102   : > { %v834_v14 = vpop.f32.mrf.mxu0 }
 0x103   : > { %v1268_v43 = vpack.c.bf16 %v834_v14, %v831_v13  ;;  %4787 = vmatmul.mubr.msk.bf16.vlgmr.msra.gmra.mxu1 %vm568_vm0, %v5900_v8  ;;  %4790 = vmatprep.subr.bf16.mxu1 %v1269_v7 }
 0x104   : > { %v4664_v61 = vpop.f32.mrf.mxu0  ;;  %4759 = vmatmul.mubr.msk.bf16.gmra.mxu0 %vm568_vm0, %v553_v56  ;;  %4791 = vmatpush3.bf16.msra.mxu1 %v1269_v7 }
 0x105   : > { %4792 = vmatprep.subr.bf16.mxu1 %v1268_v43  ;;  %4794 = vmatprep.mubr.msk.bf16.mxu1 %vm568_vm0, %v5743_v39 }
 0x106   : > { %v847_v59 = vpop.f32.mrf.mxu0  ;;  %4762 = vmatprep.mubr.msk.bf16.mxu0 %vm568_vm0, %v554_v15 }
 0x108   : > { %v4665_v62 = vpop.f32.mrf.mxu0  ;;  %4793 = vmatpush3.bf16.msra.mxu1 %v1268_v43 }
 0x109   : > { %v1271_v4 = vpack.c.bf16 %v4665_v62, %v4664_v61 }
 0x10a   : > { %v850_v60 = vpop.f32.mrf.mxu0 }
 0x10b   : > { %v1270_v19 = vpack.c.bf16 %v850_v60, %v847_v59  ;;  %4795 = vmatmul.mubr.msk.bf16.vlgmr.msra.gmra.mxu1 %vm568_vm0, %v5900_v8  ;;  %4798 = vmatprep.subr.bf16.mxu1 %v1271_v4 }
 0x10c   : > { %v4668_v40 = vpop.f32.mrf.mxu0  ;;  %4763 = vmatmul.mubr.msk.bf16.gmra.mxu0 %vm568_vm0, %v555_v16  ;;  %4799 = vmatpush3.bf16.msra.mxu1 %v1271_v4 }
 0x10d   : > { %4800 = vmatprep.subr.bf16.mxu1 %v1270_v19  ;;  %4802 = vmatprep.mubr.msk.bf16.mxu1 %vm568_vm0, %v5743_v39 }
 0x10e   : > { %v863_v41 = vpop.f32.mrf.mxu0 }
 0x110   : > { %v4669_v56 = vpop.f32.mrf.mxu0  ;;  %4801 = vmatpush3.bf16.msra.mxu1 %v1270_v19 }
 0x111   : > { %v1273_v20 = vpack.c.bf16 %v4669_v56, %v4668_v40 }
 0x112   : > { %v866_v21 = vpop.f32.mrf.mxu0 }
 0x113   : > { %v1272_v57 = vpack.c.bf16 %v866_v21, %v863_v41  ;;  %4803 = vmatmul.mubr.msk.bf16.vlgmr.msra.gmra.mxu1 %vm568_vm0, %v5900_v8  ;;  %4806 = vmatprep.subr.bf16.mxu1 %v1273_v20 }
 0x114   : > { %v4672_v29 = vpop.f32.mrf.mxu0  ;;  %4807 = vmatpush3.bf16.msra.mxu1 %v1273_v20  ;;  %4810 = vmatprep.mubr.msk.bf16.mxu1 %vm568_vm0, %v5743_v39 }
 0x115   : > { %4808 = vmatprep.subr.bf16.mxu1 %v1272_v57 }
 0x116   : > { %v879_v48 = vpop.f32.mrf.mxu0 }
 0x118   : > { %v4673_v49 = vpop.f32.mrf.mxu0  ;;  %4809 = vmatpush3.bf16.msra.mxu1 %v1272_v57 }
 0x119   : > { %v1275_v16 = vpack.c.bf16 %v4673_v49, %v4672_v29 }
 0x11a   : > { %v882_v31 = vpop.f32.mrf.mxu0 }
 0x11b   : > { %v1274_v44 = vpack.c.bf16 %v882_v31, %v879_v48  ;;  %4811 = vmatmul.mubr.msk.bf16.vlgmr.msra.gmra.mxu1 %vm568_vm0, %v5900_v8  ;;  %4814 = vmatprep.subr.bf16.mxu1 %v1275_v16 }
 0x11c   : > { %v4676_v51 = vpop.f32.mrf.mxu0  ;;  %4815 = vmatpush3.bf16.msra.mxu1 %v1275_v16  ;;  %4818 = vmatprep.mubr.msk.bf16.mxu1 %vm568_vm0, %v5743_v39 }
 0x11d   : > { %4816 = vmatprep.subr.bf16.mxu1 %v1274_v44 }
 0x11e   : > { %v895_v27 = vpop.f32.mrf.mxu0 }
 0x120   : > { %v4677_v28 = vpop.f32.mrf.mxu0  ;;  %4817 = vmatpush3.bf16.msra.mxu1 %v1274_v44 }
 0x121   : > { %v1277_v52 = vpack.c.bf16 %v4677_v28, %v4676_v51 }
 0x122   : > { %v898_v53 = vpop.f32.mrf.mxu0 }
 0x123   : > { %v1276_v54 = vpack.c.bf16 %v898_v53, %v895_v27  ;;  %4819 = vmatmul.mubr.msk.bf16.vlgmr.msra.gmra.mxu1 %vm568_vm0, %v5900_v8  ;;  %4822 = vmatprep.subr.bf16.mxu1 %v1277_v52 }
 0x124   : > { %v4680_v55 = vpop.f32.mrf.mxu0  ;;  %4823 = vmatpush3.bf16.msra.mxu1 %v1277_v52  ;;  %4826 = vmatprep.mubr.msk.bf16.mxu1 %vm568_vm0, %v5743_v39 }
 0x125   : > { %4824 = vmatprep.subr.bf16.mxu1 %v1276_v54 }
 0x126   : > { %v911_v63 = vpop.f32.mrf.mxu0 }
 0x128   : > { %v4681_v0 = vpop.f32.mrf.mxu0  ;;  %4825 = vmatpush3.bf16.msra.mxu1 %v1276_v54 }
 0x129   : > { %v1279_v45 = vpack.c.bf16 %v4681_v0, %v4680_v55 }
 0x12a   : > { %v914_v3 = vpop.f32.mrf.mxu0 }
 0x12b   : > { %v1278_v9 = vpack.c.bf16 %v914_v3, %v911_v63  ;;  %4827 = vmatmul.mubr.msk.bf16.vlgmr.msra.gmra.mxu1 %vm568_vm0, %v5900_v8  ;;  %4830 = vmatprep.subr.bf16.mxu1 %v1279_v45 }
 0x12c   : > { %v4684_v23 = vpop.f32.mrf.mxu0  ;;  %4831 = vmatpush3.bf16.msra.mxu1 %v1279_v45  ;;  %4834 = vmatprep.mubr.msk.bf16.mxu1 %vm568_vm0, %v5743_v39 }
 0x12d   : > { %4832 = vmatprep.subr.bf16.mxu1 %v1278_v9 }
 0x12e   : > { %v927_v24 = vpop.f32.mrf.mxu0 }
 0x130   : > { %v4685_v25 = vpop.f32.mrf.mxu0  ;;  %4833 = vmatpush3.bf16.msra.mxu1 %v1278_v9 }
 0x131   : > { %v1281_v26 = vpack.c.bf16 %v4685_v25, %v4684_v23 }
 0x132   : > { %v930_v47 = vpop.f32.mrf.mxu0 }
 0x133   : > { %v1280_v50 = vpack.c.bf16 %v930_v47, %v927_v24  ;;  %4835 = vmatmul.mubr.msk.bf16.vlgmr.msra.gmra.mxu1 %vm568_vm0, %v5900_v8  ;;  %4838 = vmatprep.subr.bf16.mxu1 %v1281_v26 }
 0x134   : > { %v4688_v30 = vpop.f32.mrf.mxu0  ;;  %4839 = vmatpush3.bf16.msra.mxu1 %v1281_v26  ;;  %4842 = vmatprep.mubr.msk.bf16.mxu1 %vm568_vm0, %v5743_v39 }
 0x135   : > { %4840 = vmatprep.subr.bf16.mxu1 %v1280_v50 }
 0x136   : > { %v943_v58 = vpop.f32.mrf.mxu0 }
 0x138   : > { %v4689_v46 = vpop.f32.mrf.mxu0  ;;  %4841 = vmatpush3.bf16.msra.mxu1 %v1280_v50 }
 0x139   : > { %v1283_v35 = vpack.c.bf16 %v4689_v46, %v4688_v30 }
 0x13a   : > { %v946_v33 = vpop.f32.mrf.mxu0 }
 0x13b   : > { %v1282_v22 = vpack.c.bf16 %v946_v33, %v943_v58  ;;  %4843 = vmatmul.mubr.msk.bf16.vlgmr.msra.gmra.mxu1 %vm568_vm0, %v5900_v8  ;;  %4846 = vmatprep.subr.bf16.mxu1 %v1283_v35 }
 0x13c   : > { %v4692_v34 = vpop.f32.mrf.mxu0  ;;  %4847 = vmatpush3.bf16.msra.mxu1 %v1283_v35  ;;  %4850 = vmatprep.mubr.msk.bf16.mxu1 %vm568_vm0, %v5743_v39 }
 0x13d   : > { %4848 = vmatprep.subr.bf16.mxu1 %v1282_v22 }
 0x13e   : > { %v959_v38 = vpop.f32.mrf.mxu0 }
 0x140   : > { %v4693_v36 = vpop.f32.mrf.mxu0  ;;  %4849 = vmatpush3.bf16.msra.mxu1 %v1282_v22 }
 0x141   : > { %v1285_v37 = vpack.c.bf16 %v4693_v36, %v4692_v34 }
 0x142   : > { %v962_v18 = vpop.f32.mrf.mxu0 }
 0x143   : > { %v1284_v42 = vpack.c.bf16 %v962_v18, %v959_v38  ;;  %4851 = vmatmul.mubr.msk.bf16.vlgmr.msra.gmra.mxu1 %vm568_vm0, %v5900_v8  ;;  %4854 = vmatprep.subr.bf16.mxu1 %v1285_v37 }
 0x144   : > { %v4696_v12 = vpop.f32.mrf.mxu0  ;;  %4855 = vmatpush3.bf16.msra.mxu1 %v1285_v37  ;;  %4858 = vmatprep.mubr.msk.bf16.mxu1 %vm568_vm0, %v5743_v39 }
 0x145   : > { %4856 = vmatprep.subr.bf16.mxu1 %v1284_v42 }
 0x146   : > { %v975_v1 = vpop.f32.mrf.mxu0 }
 0x148   : > { %v4697_v6 = vpop.f32.mrf.mxu0  ;;  %4857 = vmatpush3.bf16.msra.mxu1 %v1284_v42 }
 0x149   : > { %v1287_v2 = vpack.c.bf16 %v4697_v6, %v4696_v12 }
 0x14a   : > { %v978_v5 = vpop.f32.mrf.mxu0 }
 0x14b   : > { %v1286_v13 = vpack.c.bf16 %v978_v5, %v975_v1  ;;  %4859 = vmatmul.mubr.msk.bf16.vlgmr.msra.gmra.mxu1 %vm568_vm0, %v5900_v8  ;;  %4862 = vmatprep.subr.bf16.mxu1 %v1287_v2 }
 0x14c   : > { %v4700_v17 = vpop.f32.mrf.mxu0  ;;  %4863 = vmatpush3.bf16.msra.mxu1 %v1287_v2  ;;  %4866 = vmatprep.mubr.msk.bf16.mxu1 %vm568_vm0, %v5743_v39 }
 0x14d   : > { %4864 = vmatprep.subr.bf16.mxu1 %v1286_v13 }
 0x14e   : > { %v991_v10 = vpop.f32.mrf.mxu0 }
 0x150   : > { %v4701_v11 = vpop.f32.mrf.mxu0  ;;  %4865 = vmatpush3.bf16.msra.mxu1 %v1286_v13 }
 0x151   : > { %v1289_v7 = vpack.c.bf16 %v4701_v11, %v4700_v17 }
 0x152   : > { %v994_v14 = vpop.f32.mrf.mxu0 }
 0x153   : > { %v1288_v15 = vpack.c.bf16 %v994_v14, %v991_v10  ;;  %4867 = vmatmul.mubr.msk.bf16.vlgmr.msra.gmra.mxu1 %vm568_vm0, %v5900_v8  ;;  %4870 = vmatprep.subr.bf16.mxu1 %v1289_v7 }
 0x154   : > { %v4704_v43 = vpop.f32.mrf.mxu0  ;;  %4871 = vmatpush3.bf16.msra.mxu1 %v1289_v7  ;;  %4874 = vmatprep.mubr.msk.bf16.mxu1 %vm568_vm0, %v5743_v39 }
 0x155   : > { %4872 = vmatprep.subr.bf16.mxu1 %v1288_v15 }
 0x156   : > { %v1007_v61 = vpop.f32.mrf.mxu0 }
 0x158   : > { %v4705_v59 = vpop.f32.mrf.mxu0  ;;  %4873 = vmatpush3.bf16.msra.mxu1 %v1288_v15 }
 0x159   : > { %v1291_v62 = vpack.c.bf16 %v4705_v59, %v4704_v43 }
 0x15a   : > { %v1010_v4 = vpop.f32.mrf.mxu0 }
 0x15b   : > { %v1290_v60 = vpack.c.bf16 %v1010_v4, %v1007_v61  ;;  %4875 = vmatmul.mubr.msk.bf16.vlgmr.msra.gmra.mxu1 %vm568_vm0, %v5900_v8  ;;  %4878 = vmatprep.subr.bf16.mxu1 %v1291_v62 }
 0x15c   : > { %v4708_v19 = vpop.f32.mrf.mxu0  ;;  %4879 = vmatpush3.bf16.msra.mxu1 %v1291_v62  ;;  %4882 = vmatprep.mubr.msk.bf16.mxu1 %vm568_vm0, %v5743_v39 }
 0x15d   : > { %4880 = vmatprep.subr.bf16.mxu1 %v1290_v60 }
 0x15e   : > { %v1023_v40 = vpop.f32.mrf.mxu0 }
 0x160   : > { %v4709_v41 = vpop.f32.mrf.mxu0  ;;  %4881 = vmatpush3.bf16.msra.mxu1 %v1290_v60 }
 0x161   : > { %v1293_v56 = vpack.c.bf16 %v4709_v41, %v4708_v19 }
 0x162   : > { %v1026_v20 = vpop.f32.mrf.mxu0 }
 0x163   : > { %v1292_v21 = vpack.c.bf16 %v1026_v20, %v1023_v40  ;;  %4883 = vmatmul.mubr.msk.bf16.vlgmr.msra.gmra.mxu1 %vm568_vm0, %v5900_v8  ;;  %4886 = vmatprep.subr.bf16.mxu1 %v1293_v56  ;;  %v6033_v40 = vld [vmem:[%s7261_s4] sm:$0xff]  }
 0x164   : > { %v4712_v57 = vpop.f32.mrf.mxu0  ;;  %4887 = vmatpush3.bf16.msra.mxu1 %v1293_v56  ;;  %4890 = vmatprep.mubr.msk.bf16.mxu1 %vm568_vm0, %v5743_v39 }
 0x165   : > { %4888 = vmatprep.subr.bf16.mxu1 %v1292_v21  ;;  %5008 = vmatprep.subr.bf16.mxu0 %v6033_v40 }
 0x166   : > { %v1039_v29 = vpop.f32.mrf.mxu0  ;;  %5009 = vmatpush3.bf16.msra.mxu0 %v6033_v40 }
 0x168   : > { %v4713_v48 = vpop.f32.mrf.mxu0  ;;  %4889 = vmatpush3.bf16.msra.mxu1 %v1292_v21 }
 0x169   : > { %v1295_v49 = vpack.c.bf16 %v4713_v48, %v4712_v57 }
 0x16a   : > { %v1042_v16 = vpop.f32.mrf.mxu0 }
 0x16b   : > { %v1294_v31 = vpack.c.bf16 %v1042_v16, %v1039_v29  ;;  %4891 = vmatmul.mubr.msk.bf16.vlgmr.msra.gmra.mxu1 %vm568_vm0, %v5900_v8  ;;  %4894 = vmatprep.subr.bf16.mxu1 %v1295_v49 }
 0x16c   : > { %v4716_v44 = vpop.f32.mrf.mxu0  ;;  %4895 = vmatpush3.bf16.msra.mxu1 %v1295_v49  ;;  %4898 = vmatprep.mubr.msk.bf16.mxu1 %vm568_vm0, %v5743_v39 }
 0x16d   : > { %4896 = vmatprep.subr.bf16.mxu1 %v1294_v31 }
 0x16e   : > { %v1055_v51 = vpop.f32.mrf.mxu0 }
 0x170   : > { %v4717_v27 = vpop.f32.mrf.mxu0  ;;  %4897 = vmatpush3.bf16.msra.mxu1 %v1294_v31 }
 0x171   : > { %v1297_v28 = vpack.c.bf16 %v4717_v27, %v4716_v44 }
 0x172   : > { %v1058_v52 = vpop.f32.mrf.mxu0 }
 0x173   : > { %v1296_v53 = vpack.c.bf16 %v1058_v52, %v1055_v51  ;;  %4899 = vmatmul.mubr.msk.bf16.vlgmr.msra.gmra.mxu1 %vm568_vm0, %v5900_v8  ;;  %4902 = vmatprep.subr.bf16.mxu1 %v1297_v28 }
 0x174   : > { %v4720_v54 = vpop.f32.mrf.mxu0  ;;  %4903 = vmatpush3.bf16.msra.mxu1 %v1297_v28  ;;  %4906 = vmatprep.mubr.msk.bf16.mxu1 %vm568_vm0, %v5743_v39 }
 0x175   : > { %4904 = vmatprep.subr.bf16.mxu1 %v1296_v53 }
 0x176   : > { %v1071_v55 = vpop.f32.mrf.mxu0 }
 0x178   : > { %v4721_v63 = vpop.f32.mrf.mxu0  ;;  %4905 = vmatpush3.bf16.msra.mxu1 %v1296_v53 }
 0x179   : > { %v1299_v0 = vpack.c.bf16 %v4721_v63, %v4720_v54 }
 0x17a   : > { %v1074_v45 = vpop.f32.mrf.mxu0 }
 0x17b   : > { %v1298_v3 = vpack.c.bf16 %v1074_v45, %v1071_v55  ;;  %4907 = vmatmul.mubr.msk.bf16.vlgmr.msra.gmra.mxu1 %vm568_vm0, %v5900_v8  ;;  %4910 = vmatprep.subr.bf16.mxu1 %v1299_v0 }
 0x17c   : > { %v4724_v9 = vpop.f32.mrf.mxu0  ;;  %4911 = vmatpush3.bf16.msra.mxu1 %v1299_v0  ;;  %4914 = vmatprep.mubr.msk.bf16.mxu1 %vm568_vm0, %v5743_v39 }
 0x17d   : > { %4912 = vmatprep.subr.bf16.mxu1 %v1298_v3 }
 0x17e   : > { %v1087_v23 = vpop.f32.mrf.mxu0 }
 0x180   : > { %v4725_v24 = vpop.f32.mrf.mxu0  ;;  %4913 = vmatpush3.bf16.msra.mxu1 %v1298_v3 }
 0x181   : > { %v1301_v25 = vpack.c.bf16 %v4725_v24, %v4724_v9 }
 0x182   : > { %v1090_v26 = vpop.f32.mrf.mxu0 }
 0x183   : > { %v1300_v47 = vpack.c.bf16 %v1090_v26, %v1087_v23  ;;  %4915 = vmatmul.mubr.msk.bf16.vlgmr.msra.gmra.mxu1 %vm568_vm0, %v5900_v8  ;;  %4918 = vmatprep.subr.bf16.mxu1 %v1301_v25 }
 0x184   : > { %v4728_v50 = vpop.f32.mrf.mxu0  ;;  %4919 = vmatpush3.bf16.msra.mxu1 %v1301_v25  ;;  %4922 = vmatprep.mubr.msk.bf16.mxu1 %vm568_vm0, %v5743_v39 }
 0x185   : > { %4920 = vmatprep.subr.bf16.mxu1 %v1300_v47 }
 0x186   : > { %v1103_v30 = vpop.f32.mrf.mxu0 }
 0x188   : > { %v4729_v58 = vpop.f32.mrf.mxu0  ;;  %4921 = vmatpush3.bf16.msra.mxu1 %v1300_v47 }
 0x189   : > { %v1303_v46 = vpack.c.bf16 %v4729_v58, %v4728_v50 }
 0x18a   : > { %v1106_v35 = vpop.f32.mrf.mxu0 }
 0x18b   : > { %v1302_v33 = vpack.c.bf16 %v1106_v35, %v1103_v30  ;;  %4923 = vmatmul.mubr.msk.bf16.vlgmr.msra.gmra.mxu1 %vm568_vm0, %v5900_v8  ;;  %4926 = vmatprep.subr.bf16.mxu1 %v1303_v46 }
 0x18c   : > { %v4732_v22 = vpop.f32.mrf.mxu0  ;;  %4927 = vmatpush3.bf16.msra.mxu1 %v1303_v46  ;;  %4930 = vmatprep.mubr.msk.bf16.mxu1 %vm568_vm0, %v5743_v39 }
 0x18d   : > { %4928 = vmatprep.subr.bf16.mxu1 %v1302_v33 }
 0x18e   : > { %v1119_v34 = vpop.f32.mrf.mxu0 }
 0x190   : > { %v4733_v38 = vpop.f32.mrf.mxu0  ;;  %4929 = vmatpush3.bf16.msra.mxu1 %v1302_v33 }
 0x191   : > { %v1305_v36 = vpack.c.bf16 %v4733_v38, %v4732_v22 }
 0x192   : > { %v1122_v37 = vpop.f32.mrf.mxu0 }
 0x193   : > { %v1304_v18 = vpack.c.bf16 %v1122_v37, %v1119_v34  ;;  %4931 = vmatmul.mubr.msk.bf16.vlgmr.msra.gmra.mxu1 %vm568_vm0, %v5900_v8  ;;  %4934 = vmatprep.subr.bf16.mxu1 %v1305_v36 }
 0x194   : > { %v4736_v42 = vpop.f32.mrf.mxu0  ;;  %4935 = vmatpush3.bf16.msra.mxu1 %v1305_v36  ;;  %4938 = vmatprep.mubr.msk.bf16.mxu1 %vm568_vm0, %v5743_v39 }
 0x195   : > { %4936 = vmatprep.subr.bf16.mxu1 %v1304_v18 }
 0x196   : > { %v1135_v12 = vpop.f32.mrf.mxu0 }
 0x198   : > { %v4737_v1 = vpop.f32.mrf.mxu0  ;;  %4937 = vmatpush3.bf16.msra.mxu1 %v1304_v18 }
 0x199   : > { %v1307_v6 = vpack.c.bf16 %v4737_v1, %v4736_v42 }
 0x19a   : > { %v1138_v2 = vpop.f32.mrf.mxu0 }
 0x19b   : > { %v1306_v5 = vpack.c.bf16 %v1138_v2, %v1135_v12  ;;  %4939 = vmatmul.mubr.msk.bf16.vlgmr.msra.gmra.mxu1 %vm568_vm0, %v5900_v8  ;;  %4942 = vmatprep.subr.bf16.mxu1 %v1307_v6 }
 0x19c   : > { %v4740_v13 = vpop.f32.mrf.mxu0  ;;  %4943 = vmatpush3.bf16.msra.mxu1 %v1307_v6  ;;  %4946 = vmatprep.mubr.msk.bf16.mxu1 %vm568_vm0, %v5743_v39 }
 0x19d   : > { %4944 = vmatprep.subr.bf16.mxu1 %v1306_v5 }
 0x19e   : > { %v1151_v17 = vpop.f32.mrf.mxu0 }
 0x1a0   : > { %v4741_v10 = vpop.f32.mrf.mxu0  ;;  %4945 = vmatpush3.bf16.msra.mxu1 %v1306_v5 }
 0x1a1   : > { %v1309_v11 = vpack.c.bf16 %v4741_v10, %v4740_v13 }
 0x1a2   : > { %v1154_v7 = vpop.f32.mrf.mxu0 }
 0x1a3   : > { %v1308_v14 = vpack.c.bf16 %v1154_v7, %v1151_v17  ;;  %4947 = vmatmul.mubr.msk.bf16.vlgmr.msra.gmra.mxu1 %vm568_vm0, %v5900_v8  ;;  %4950 = vmatprep.subr.bf16.mxu1 %v1309_v11 }
 0x1a4   : > { %v4744_v15 = vpop.f32.mrf.mxu0  ;;  %4951 = vmatpush3.bf16.msra.mxu1 %v1309_v11  ;;  %4954 = vmatprep.mubr.msk.bf16.mxu1 %vm568_vm0, %v5743_v39 }
 0x1a5   : > { %4952 = vmatprep.subr.bf16.mxu1 %v1308_v14 }
 0x1a6   : > { %v1167_v43 = vpop.f32.mrf.mxu0 }
 0x1a8   : > { %v4745_v61 = vpop.f32.mrf.mxu0  ;;  %4953 = vmatpush3.bf16.msra.mxu1 %v1308_v14 }
 0x1a9   : > { %v1311_v59 = vpack.c.bf16 %v4745_v61, %v4744_v15 }
 0x1aa   : > { %v1170_v62 = vpop.f32.mrf.mxu0 }
 0x1ab   : > { %v1310_v4 = vpack.c.bf16 %v1170_v62, %v1167_v43  ;;  %4955 = vmatmul.mubr.msk.bf16.vlgmr.msra.gmra.mxu1 %vm568_vm0, %v5900_v8  ;;  %4958 = vmatprep.subr.bf16.mxu1 %v1311_v59 }
 0x1ac   : > { %v4748_v60 = vpop.f32.mrf.mxu0  ;;  %4959 = vmatpush3.bf16.msra.mxu1 %v1311_v59  ;;  %4962 = vmatprep.mubr.msk.bf16.mxu1 %vm568_vm0, %v5743_v39 }
 0x1ad   : > { %4960 = vmatprep.subr.bf16.mxu1 %v1310_v4 }
 0x1ae   : > { %v1183_v19 = vpop.f32.mrf.mxu0 }
 0x1b0   : > { %v4749_v41 = vpop.f32.mrf.mxu0  ;;  %4961 = vmatpush3.bf16.msra.mxu1 %v1310_v4 }
 0x1b1   : > { %v1313_v56 = vpack.c.bf16 %v4749_v41, %v4748_v60 }
 0x1b2   : > { %v1186_v20 = vpop.f32.mrf.mxu0 }
 0x1b3   : > { %v1312_v21 = vpack.c.bf16 %v1186_v20, %v1183_v19  ;;  %v6037_v57 = vpop.f32.mrf.mxu1  ;;  %4963 = vmatmul.mubr.msk.bf16.vlgmr.msra.gmra.mxu1 %vm568_vm0, %v5900_v8  ;;  %4966 = vmatprep.subr.bf16.mxu1 %v1313_v56 }
 0x1b4   : > { %v4752_v29 = vpop.f32.mrf.mxu0  ;;  %4967 = vmatpush3.bf16.msra.mxu1 %v1313_v56  ;;  %4970 = vmatprep.mubr.msk.bf16.mxu1 %vm568_vm0, %v5743_v39  ;;  %v6113_v15 = vmul.f32 %v6037_v57, %v6037_v57 }
 0x1b5   : > { %v6043_v48 = vpop.f32.mrf.mxu1  ;;  %4968 = vmatprep.subr.bf16.mxu1 %v1312_v21 }
 0x1b6   : > { %v1199_v49 = vpop.f32.mrf.mxu0  ;;  %v6122_v61 = vmul.f32 %v6043_v48, %v6043_v48 }
 0x1b7   : > { %v6045_v16 = vpop.f32.mrf.mxu1 }
 0x1b8   : > { %v4753_v31 = vpop.f32.mrf.mxu0  ;;  %4969 = vmatpush3.bf16.msra.mxu1 %v1312_v21 }
 0x1b9   : > { %v1315_v44 = vpack.c.bf16 %v4753_v31, %v4752_v29  ;;  %v6047_v51 = vpop.f32.mrf.mxu1 }
 0x1ba   : > { %v1202_v27 = vpop.f32.mrf.mxu0 }
 0x1bb   : > { %v1314_v28 = vpack.c.bf16 %v1202_v27, %v1199_v49  ;;  %v6049_v52 = vpop.f32.mrf.mxu1  ;;  %4971 = vmatmul.mubr.msk.bf16.vlgmr.msra.gmra.mxu1 %vm568_vm0, %v5900_v8  ;;  %4974 = vmatprep.subr.bf16.mxu1 %v1315_v44 }
 0x1bc   : > { %v4756_v53 = vpop.f32.mrf.mxu0  ;;  %4975 = vmatpush3.bf16.msra.mxu1 %v1315_v44  ;;  %4978 = vmatprep.mubr.msk.bf16.mxu1 %vm568_vm0, %v5743_v39  ;;  %v6161_v31 = vmul.f32 %v6049_v52, %v6049_v52 }
 0x1bd   : > { %v6055_v54 = vpop.f32.mrf.mxu1  ;;  %4976 = vmatprep.subr.bf16.mxu1 %v1314_v28 }
 0x1be   : > { %v1215_v55 = vpop.f32.mrf.mxu0 }
 0x1bf   : > { %v6057_v63 = vpop.f32.mrf.mxu1 }
 0x1c0   : > { %v4757_v0 = vpop.f32.mrf.mxu0  ;;  %4977 = vmatpush3.bf16.msra.mxu1 %v1314_v28 }
 0x1c1   : > { %v1317_v45 = vpack.c.bf16 %v4757_v0, %v4756_v53  ;;  %v6059_v3 = vpop.f32.mrf.mxu1  ;;  %v6174_v53 = vmul.f32 %v6055_v54, %v6055_v54 }
 0x1c2   : > { %v1218_v9 = vpop.f32.mrf.mxu0 }
 0x1c3   : > { %v1316_v23 = vpack.c.bf16 %v1218_v9, %v1215_v55  ;;  %v6061_v24 = vpop.f32.mrf.mxu1  ;;  %4979 = vmatmul.mubr.msk.bf16.vlgmr.msra.gmra.mxu1 %vm568_vm0, %v5900_v8  ;;  %4982 = vmatprep.subr.bf16.mxu1 %v1317_v45  ;;  %7365 = vst [vmem:[#allocation9_spill] sm:$0xff] %v6174_v53  ;;  %v6191_v9 = vmul.f32 %v6057_v63, %v6057_v63 }
 0x1c4   : > { %v4760_v25 = vpop.f32.mrf.mxu0  ;;  %4983 = vmatpush3.bf16.msra.mxu1 %v1317_v45  ;;  %4986 = vmatprep.mubr.msk.bf16.mxu1 %vm568_vm0, %v5743_v39 }
 0x1c5   : > { %v6067_v26 = vpop.f32.mrf.mxu1  ;;  %4984 = vmatprep.subr.bf16.mxu1 %v1316_v23  ;;  %7367 = vst [vmem:[#allocation13_spill] sm:$0xff] %v6191_v9 }
 0x1c6   : > { %v1231_v47 = vpop.f32.mrf.mxu0 }
 0x1c7   : > { %v6069_v50 = vpop.f32.mrf.mxu1 }
 0x1c8   : > { %v4761_v30 = vpop.f32.mrf.mxu0  ;;  %4985 = vmatpush3.bf16.msra.mxu1 %v1316_v23 }
 0x1c9   : > { %v1319_v58 = vpack.c.bf16 %v4761_v30, %v4760_v25  ;;  %v6071_v46 = vpop.f32.mrf.mxu1 }
 0x1ca   : > { %v1234_v35 = vpop.f32.mrf.mxu0 }
 0x1cb   : > { %v1318_v33 = vpack.c.bf16 %v1234_v35, %v1231_v47  ;;  %v6073_v22 = vpop.f32.mrf.mxu1  ;;  %4987 = vmatmul.mubr.msk.bf16.vlgmr.msra.gmra.mxu1 %vm568_vm0, %v5900_v8  ;;  %4990 = vmatprep.subr.bf16.mxu1 %v1319_v58 }
 0x1cc   : > { %v4764_v34 = vpop.f32.mrf.mxu0  ;;  %4991 = vmatpush3.bf16.msra.mxu1 %v1319_v58  ;;  %4994 = vmatprep.mubr.msk.bf16.mxu1 %vm568_vm0, %v5743_v39 }
 0x1cd   : > { %v6079_v38 = vpop.f32.mrf.mxu1  ;;  %4992 = vmatprep.subr.bf16.mxu1 %v1318_v33 }
 0x1ce   : > { %v1247_v36 = vpop.f32.mrf.mxu0 }
 0x1cf   : > { %v6081_v37 = vpop.f32.mrf.mxu1 }
 0x1d0   : > { %v4765_v18 = vpop.f32.mrf.mxu0  ;;  %4993 = vmatpush3.bf16.msra.mxu1 %v1318_v33 }
 0x1d1   : > { %v1321_v42 = vpack.c.bf16 %v4765_v18, %v4764_v34  ;;  %v6083_v12 = vpop.f32.mrf.mxu1  ;;  %v6213_v34 = vmul.f32 %v6061_v24, %v6061_v24 }
 0x1d2   : > { %v1250_v1 = vpop.f32.mrf.mxu0 }
 0x1d3   : > { %v1320_v6 = vpack.c.bf16 %v1250_v1, %v1247_v36  ;;  %v6085_v2 = vpop.f32.mrf.mxu1  ;;  %4995 = vmatmul.mubr.msk.bf16.vlgmr.msra.gmra.mxu1 %vm568_vm0, %v5900_v8  ;;  %4998 = vmatprep.subr.bf16.mxu1 %v1321_v42  ;;  %7373 = vst [vmem:[#allocation18_spill] sm:$0xff] %v6213_v34  ;;  %v6226_v1 = vmul.f32 %v6067_v26, %v6067_v26 }
 0x1d4   : > { %4999 = vmatpush3.bf16.msra.mxu1 %v1321_v42  ;;  %5002 = vmatprep.mubr.msk.bf16.mxu1 %vm568_vm0, %v5743_v39 }
 0x1d5   : > { %v6091_v5 = vpop.f32.mrf.mxu1  ;;  %5000 = vmatprep.subr.bf16.mxu1 %v1320_v6  ;;  %7376 = vst [vmem:[#allocation21_spill] sm:$0xff] %v6226_v1 }
 0x1d7   : > { %v6093_v13 = vpop.f32.mrf.mxu1 }
 0x1d8   : > { %5001 = vmatpush3.bf16.msra.mxu1 %v1320_v6 }
 0x1d9   : > { %v6095_v17 = vpop.f32.mrf.mxu1  ;;  %5022 = vmatprep.subr.bf16.mxu1 %v5966_v32 }
 0x1db   : > { %v6098_v10 = vpop.f32.mrf.mxu1  ;;  %5003 = vmatmul.mubr.msk.bf16.vlgmr.msra.gmra.mxu1 %vm568_vm0, %v5900_v8 }
 0x1dc   : > { %5023 = vmatpush3.bf16.msra.mxu1 %v5966_v32 }
 0x1dd   : > { %v6103_v11 = vpop.f32.mrf.mxu1  ;;  %5024 = vmatprep.subr.bf16.mxu1 %v6033_v40 }
 0x1df   : > { %v6106_v39 = vpop.f32.mrf.mxu1 }
 0x1e0   : > { %5025 = vmatpush3.bf16.msra.mxu1 %v6033_v40  ;;  %v6139_v40 = vmul.f32 %v6045_v16, %v6045_v16 }
 0x1e1   : > { %v6109_v7 = vpop.f32.mrf.mxu1 }
 0x1e3   : > { %v4820_v14 = vpop.f32.mrf.mxu1 }
 0x1e4   : > { %v6115_v43 = vmul.f32 %v4820_v14, %v4820_v14  ;;  %v6118_v8 = vmul.f32 %v4820_v14, %v6037_v57  ;;  %v6150_v57 = vmul.f32 %v6047_v51, %v6047_v51 }
 0x1e5   : > { %v1666_v32 = vpop.f32.mrf.mxu1 }
 0x1e6   : > { %v6126_v59 = vadd.f32 %v6115_v43, %v6113_v15  ;;  %v6128_v62 = vmul.f32 %v1666_v32, %v1666_v32  ;;  %v6131_v4 = vmul.f32 %v1666_v32, %v6043_v48 }
 0x1e7   : > { %v4821_v60 = vpop.f32.mrf.mxu1 }
 0x1e8   : > { %v6135_v19 = vadd.f32 %v6128_v62, %v6122_v61  ;;  %v6141_v41 = vmul.f32 %v4821_v60, %v4821_v60  ;;  %v6144_v56 = vmul.f32 %v4821_v60, %v6045_v16  ;;  %v6243_v60 = vmul.f32 %v6069_v50, %v6069_v50 }
 0x1e9   : > { %v1669_v20 = vpop.f32.mrf.mxu1 }
 0x1ea   : > { %v6146_v21 = vmul.f32 %v1669_v20, %v1669_v20  ;;  %v6154_v29 = vadd.f32 %v6141_v41, %v6139_v40  ;;  %v6157_v48 = vmul.f32 %v1669_v20, %v6047_v51  ;;  %7380 = vst [vmem:[#allocation25_spill] sm:$0xff] %v6243_v60 }
 0x1eb   : > { %v4828_v49 = vpop.f32.mrf.mxu1 }
 0x1ec   : > { %7363 = vst [vmem:[#allocation11_spill] sm:$0xff] %v6157_v48  ;;  %v6163_v16 = vmul.f32 %v4828_v49, %v4828_v49  ;;  %v6166_v44 = vmul.f32 %v4828_v49, %v6049_v52  ;;  %v6170_v27 = vadd.f32 %v6146_v21, %v6150_v57  ;;  %v4332_v48 = vld [vmem:[%s5410_s25 + $0x30] ss:$2 sm:$0xff] }
 0x1ed   : > { %v1715_v28 = vpop.f32.mrf.mxu1 }
 0x1ee   : > { %7364 = vst [vmem:[#allocation10_spill] sm:$0xff] %v6166_v44  ;;  %v6178_v51 = vadd.f32 %v6163_v16, %v6161_v31  ;;  %v6180_v55 = vmul.f32 %v1715_v28, %v1715_v28  ;;  %v6183_v0 = vmul.f32 %v1715_v28, %v6055_v54  ;;  %v6202_v54 = vmul.f32 %v6059_v3, %v6059_v3 }
 0x1ef   : > { %v4829_v52 = vpop.f32.mrf.mxu1 }
 0x1f0   : > { %7366 = vst [vmem:[#allocation8_spill] sm:$0xff] %v6183_v0  ;;  %v6187_v45 = vadd.f32 %v6180_v55, %v6174_v53  ;;  %v6193_v23 = vmul.f32 %v4829_v52, %v4829_v52  ;;  %v6196_v25 = vmul.f32 %v4829_v52, %v6057_v63  ;;  %7371 = vst [vmem:[#allocation16_spill] sm:$0xff] %v6202_v54 }
 0x1f1   : > { %v1718_v47 = vpop.f32.mrf.mxu1 }
 0x1f2   : > { %7368 = vst [vmem:[#allocation12_spill] sm:$0xff] %v6193_v23  ;;  %7369 = vst [vmem:[#allocation14_spill] sm:$0xff] %v6196_v25  ;;  %v6198_v30 = vmul.f32 %v1718_v47, %v1718_v47  ;;  %v6206_v58 = vadd.f32 %v6193_v23, %v6191_v9  ;;  %v6209_v35 = vmul.f32 %v1718_v47, %v6059_v3  ;;  %v3494_v9 = vld [vmem:[%s5410_s25] ss:$2 sm:$0xff]  ;;  %v4344_v23 = vld [vmem:[%s5410_s25 + $0x31] ss:$2 sm:$0xff] }
 0x1f3   : > { %v4836_v33 = vpop.f32.mrf.mxu1  ;;  %v6258_v47 = vmul.f32 %v6073_v22, %v6073_v22 }
 0x1f4   : > { %7370 = vst [vmem:[#allocation15_spill] sm:$0xff] %v6198_v30  ;;  %7372 = vst [vmem:[#allocation17_spill] sm:$0xff] %v6209_v35  ;;  %v6215_v63 = vmul.f32 %v4836_v33, %v4836_v33  ;;  %v6218_v36 = vmul.f32 %v4836_v33, %v6061_v24  ;;  %v6222_v18 = vadd.f32 %v6198_v30, %v6202_v54  ;;  %v4341_v54 = vld [vmem:[%s5410_s25 + $0x1] ss:$2 sm:$0xff] }
 0x1f5   : > { %v1764_v42 = vpop.f32.mrf.mxu1  ;;  %7384 = vst [vmem:[#allocation29_spill] sm:$0xff] %v6258_v47 }
 0x1f6   : > { %7374 = vst [vmem:[#allocation19_spill] sm:$0xff] %v6215_v63  ;;  %7375 = vst [vmem:[#allocation20_spill] sm:$0xff] %v6218_v36  ;;  %v6230_v3 = vadd.f32 %v6215_v63, %v6213_v34  ;;  %v6232_v6 = vmul.f32 %v1764_v42, %v1764_v42  ;;  %v6235_v14 = vmul.f32 %v1764_v42, %v6067_v26  ;;  %v3743_v34 = vld [vmem:[%s5415_s12] ss:$2 sm:$0xff] }
 0x1f7   : > { %v4837_v24 = vpop.f32.mrf.mxu1 }
 0x1f8   : > { %7377 = vst [vmem:[#allocation22_spill] sm:$0xff] %v6232_v6  ;;  %7378 = vst [vmem:[#allocation23_spill] sm:$0xff] %v6235_v14  ;;  %v6239_v32 = vadd.f32 %v6232_v6, %v6226_v1  ;;  %v6245_v20 = vmul.f32 %v4837_v24, %v4837_v24  ;;  %v6248_v49 = vmul.f32 %v4837_v24, %v6069_v50  ;;  %v4385_v1 = vld [vmem:[%s5415_s12 + $0x11] ss:$2 sm:$0xff] }
 0x1f9   : > { %v6250_v28 = vpop.f32.mrf.mxu1  ;;  %v6267_v50 = vmul.f32 %v6079_v38, %v6079_v38 }
 0x1fa   : > { %7379 = vst [vmem:[#allocation24_spill] sm:$0xff] %v6239_v32  ;;  %7381 = vst [vmem:[#allocation26_spill] sm:$0xff] %v6245_v20  ;;  %v6254_v26 = vadd.f32 %v6245_v20, %v6243_v60 }
 0x1fb   : > { %7382 = vst [vmem:[#allocation27_spill] sm:$0xff] %v6248_v49  ;;  %v4844_v52 = vpop.f32.mrf.mxu1  ;;  %7387 = vst [vmem:[#allocation32_spill] sm:$0xff] %v6267_v50 }
 0x1fc   : > { %7383 = vst [vmem:[#allocation28_spill] sm:$0xff] %v6254_v26  ;;  %v6260_v33 = vmul.f32 %v4844_v52, %v4844_v52  ;;  %v6263_v42 = vmul.f32 %v4844_v52, %v6073_v22  ;;  %v6284_v22 = vmul.f32 %v6081_v37, %v6081_v37 }
 0x1fd   : > { %v1813_v14 = vpop.f32.mrf.mxu1 }
 0x1fe   : > { %7385 = vst [vmem:[#allocation30_spill] sm:$0xff] %v6260_v33  ;;  %7386 = vst [vmem:[#allocation31_spill] sm:$0xff] %v6263_v42  ;;  %v6271_v24 = vadd.f32 %v6260_v33, %v6258_v47  ;;  %v6273_v49 = vmul.f32 %v1813_v14, %v1813_v14  ;;  %v6276_v36 = vmul.f32 %v1813_v14, %v6079_v38 }
 0x1ff   : > { %v4845_v35 = vpop.f32.mrf.mxu1  ;;  %7392 = vst [vmem:[#allocation37_spill] sm:$0xff] %v6284_v22 }
 0x200   : > { %7388 = vst [vmem:[#allocation33_spill] sm:$0xff] %v6271_v24  ;;  %7389 = vst [vmem:[#allocation34_spill] sm:$0xff] %v6273_v49  ;;  %v6280_v20 = vadd.f32 %v6273_v49, %v6267_v50  ;;  %v6286_v52 = vmul.f32 %v4845_v35, %v4845_v35  ;;  %v6289_v42 = vmul.f32 %v4845_v35, %v6081_v37  ;;  %v4384_v24 = vld [vmem:[%s5415_s12 + $0x1] ss:$2 sm:$0xff]  ;;  %v4379_v50 = vld [vmem:[%s5415_s12 + $0x70] ss:$2 sm:$0xff] }
 0x201   : > { %7390 = vst [vmem:[#allocation35_spill] sm:$0xff] %v6276_v36  ;;  %v6291_v33 = vpop.f32.mrf.mxu1  ;;  %v6299_v36 = vmul.f32 %v6085_v2, %v6085_v2  ;;  %v6308_v37 = vmul.f32 %v6091_v5, %v6091_v5  ;;  %v3790_v60 = vadd.f32 %v4384_v24, %v3743_v34  ;;  %v4386_v34 = vld [vmem:[%s5415_s12 + $0x21] ss:$2 sm:$0xff] }
 0x202   : > { %7391 = vst [vmem:[#allocation36_spill] sm:$0xff] %v6280_v20  ;;  %7393 = vst [vmem:[#allocation38_spill] sm:$0xff] %v6286_v52  ;;  %v6295_v38 = vadd.f32 %v6286_v52, %v6284_v22 }
 0x203   : > { %7394 = vst [vmem:[#allocation39_spill] sm:$0xff] %v6289_v42  ;;  %7395 = vst [vmem:[#allocation40_spill] sm:$0xff] %v6291_v33  ;;  %v4852_v14 = vpop.f32.mrf.mxu1  ;;  %v3544_v33 = vadd.f32 %v4344_v23, %v4332_v48  ;;  %v4333_v48 = vld [vmem:[%s5410_s25 + $0x40] ss:$2 sm:$0xff]  ;;  %v4334_v23 = vld [vmem:[%s5410_s25 + $0x50] ss:$2 sm:$0xff] }
 0x204   : > { %7396 = vst [vmem:[#allocation41_spill] sm:$0xff] %v6295_v38  ;;  %v6301_v49 = vmul.f32 %v4852_v14, %v4852_v14  ;;  %v6304_v25 = vmul.f32 %v4852_v14, %v6085_v2  ;;  %7399 = vst [vmem:[#allocation44_spill] sm:$0xff] %v6308_v37  ;;  %v6325_v2 = vmul.f32 %v6093_v13, %v6093_v13 }
 0x205   : > { %v1862_v6 = vpop.f32.mrf.mxu1  ;;  %v3556_v47 = vmul.f32 0.5, %v3544_v33 }
 0x206   : > { %7397 = vst [vmem:[#allocation42_spill] sm:$0xff] %v6301_v49  ;;  %7398 = vst [vmem:[#allocation43_spill] sm:$0xff] %v6304_v25  ;;  %v6312_v35 = vadd.f32 %v6301_v49, %v6299_v36  ;;  %v6314_v42 = vmul.f32 %v1862_v6, %v1862_v6  ;;  %v6317_v52 = vmul.f32 %v1862_v6, %v6091_v5 }
 0x207   : > { %v4853_v0 = vpop.f32.mrf.mxu1  ;;  %7404 = vst [vmem:[#allocation49_spill] sm:$0xff] %v6325_v2 }
 0x208   : > { %7400 = vst [vmem:[#allocation45_spill] sm:$0xff] %v6312_v35  ;;  %7401 = vst [vmem:[#allocation46_spill] sm:$0xff] %v6314_v42  ;;  %v6321_v38 = vadd.f32 %v6314_v42, %v6308_v37  ;;  %v6327_v14 = vmul.f32 %v4853_v0, %v4853_v0  ;;  %v6330_v25 = vmul.f32 %v4853_v0, %v6093_v13 }
 0x209   : > { %7402 = vst [vmem:[#allocation47_spill] sm:$0xff] %v6317_v52  ;;  %v6332_v49 = vpop.f32.mrf.mxu1  ;;  %v6340_v52 = vmul.f32 %v6098_v10, %v6098_v10  ;;  %v6349_v13 = vmul.f32 %v6103_v11, %v6103_v11 }
 0x20a   : > { %7403 = vst [vmem:[#allocation48_spill] sm:$0xff] %v6321_v38  ;;  %7405 = vst [vmem:[#allocation50_spill] sm:$0xff] %v6327_v14  ;;  %v6336_v5 = vadd.f32 %v6327_v14, %v6325_v2 }
 0x20b   : > { %7406 = vst [vmem:[#allocation51_spill] sm:$0xff] %v6330_v25  ;;  %7407 = vst [vmem:[#allocation52_spill] sm:$0xff] %v6332_v49  ;;  %v4860_v6 = vpop.f32.mrf.mxu1  ;;  %v3541_v49 = vadd.f32 %v4341_v54, %v3494_v9 }
 0x20c   : > { %7408 = vst [vmem:[#allocation53_spill] sm:$0xff] %v6336_v5  ;;  %v6342_v42 = vmul.f32 %v4860_v6, %v4860_v6  ;;  %v6345_v38 = vmul.f32 %v4860_v6, %v6098_v10  ;;  %v6366_v10 = vmul.f32 %v6106_v39, %v6106_v39 }
 0x20d   : > { %v1911_v35 = vpop.f32.mrf.mxu1  ;;  %v3553_v30 = vmul.f32 0.5, %v3541_v49  ;;  %v4375_v49 = vld [vmem:[%s5415_s12 + $0x30] ss:$2 sm:$0xff] }
 0x20e   : > { %7409 = vst [vmem:[#allocation54_spill] sm:$0xff] %v6342_v42  ;;  %7410 = vst [vmem:[#allocation55_spill] sm:$0xff] %v6345_v38  ;;  %v6353_v0 = vadd.f32 %v6342_v42, %v6340_v52  ;;  %v6355_v25 = vmul.f32 %v1911_v35, %v1911_v35  ;;  %v6358_v14 = vmul.f32 %v1911_v35, %v6103_v11 }
 0x20f   : > { %v4861_v5 = vpop.f32.mrf.mxu1 }
 0x210   : > { %7411 = vst [vmem:[#allocation56_spill] sm:$0xff] %v6353_v0  ;;  %7412 = vst [vmem:[#allocation57_spill] sm:$0xff] %v6355_v25  ;;  %v6362_v63 = vadd.f32 %v6355_v25, %v6349_v13  ;;  %v6368_v6 = vmul.f32 %v4861_v5, %v4861_v5  ;;  %v6371_v38 = vmul.f32 %v4861_v5, %v6106_v39 }
 0x211   : > { %7413 = vst [vmem:[#allocation58_spill] sm:$0xff] %v6358_v14  ;;  %v1914_v42 = vpop.f32.mrf.mxu1  ;;  %v6375_v0 = vmul.f32 %v6109_v7, %v6109_v7 }
 0x212   : > { %7414 = vst [vmem:[#allocation59_spill] sm:$0xff] %v6362_v63  ;;  %7415 = vst [vmem:[#allocation60_spill] sm:$0xff] %v6368_v6  ;;  %v6377_v11 = vmul.f32 %v1914_v42, %v1914_v42  ;;  %v6381_v35 = vadd.f32 %v6368_v6, %v6366_v10  ;;  %v6384_v14 = vmul.f32 %v1914_v42, %v6109_v7 }
 0x213   : > { %7416 = vst [vmem:[#allocation61_spill] sm:$0xff] %v6371_v38  ;;  %v6386_v25 = vpop.f32.mrf.mxu1 }
 0x214   : > { %7417 = vst [vmem:[#allocation62_spill] sm:$0xff] %v6377_v11  ;;  %7418 = vst [vmem:[#allocation63_spill] sm:$0xff] %v6381_v35  ;;  %v6390_v39 = vadd.f32 %v6377_v11, %v6375_v0  ;;  %v4330_v35 = vld [vmem:[%s5410_s25 + $0x10] ss:$2 sm:$0xff] }
 0x215   : > { %7419 = vst [vmem:[#allocation64_spill] sm:$0xff] %v6384_v14  ;;  %v6394_v38 = vpop.f32.mrf.mxu1 }
 0x216   : > { %7420 = vst [vmem:[#allocation65_spill] sm:$0xff] %v6390_v39 }
 0x217   : > { %v6398_v20 = vpop.f32.mrf.mxu1 }
 0x219   : > { %v6402_v42 = vpop.f32.mrf.mxu1 }
 0x21b   : > { %v6406_v11 = vpop.f32.mrf.mxu1 }
 0x21d   : > { %v6410_v6 = vpop.f32.mrf.mxu1 }
 0x21e   : > { %7421 = vst [vmem:[#allocation66_spill] sm:$0xff] %v6410_v6  ;;  %v3802_v6 = vmul.f32 0.5, %v3790_v60 }
 0x21f   : > { %v6414_v7 = vpop.f32.mrf.mxu1 }
 0x220   : > { %7422 = vst [vmem:[#allocation67_spill] sm:$0xff] %v6414_v7  ;;  %v4342_v7 = vld [vmem:[%s5410_s25 + $0x11] ss:$2 sm:$0xff] }
 0x221   : > { %v6418_v14 = vpop.f32.mrf.mxu1  ;;  %v3542_v26 = vadd.f32 %v4342_v7, %v4330_v35  ;;  %v4374_v35 = vld [vmem:[%s5415_s12 + $0x20] ss:$2 sm:$0xff] }
 0x222   : > { %7423 = vst [vmem:[#allocation68_spill] sm:$0xff] %v6418_v14  ;;  %v3792_v9 = vadd.f32 %v4386_v34, %v4374_v35  ;;  %v4376_v34 = vld [vmem:[%s5415_s12 + $0x40] ss:$2 sm:$0xff] }
 0x223   : > { %v6422_v5 = vpop.f32.mrf.mxu1  ;;  %v3554_v54 = vmul.f32 0.5, %v3542_v26  ;;  %v4387_v26 = vld [vmem:[%s5415_s12 + $0x31] ss:$2 sm:$0xff] }
 0x224   : > { %7424 = vst [vmem:[#allocation69_spill] sm:$0xff] %v6422_v5  ;;  %v4373_v5 = vld [vmem:[%s5415_s12 + $0x10] ss:$2 sm:$0xff]  ;;  %v3793_v60 = vadd.f32 %v4387_v26, %v4375_v49 }
 0x225   : > { %v6426_v63 = vpop.f32.mrf.mxu1  ;;  %v3565_v24 = vpack.c.bf16 %v3554_v54, %v3553_v30  ;;  %v4345_v30 = vld [vmem:[%s5410_s25 + $0x41] ss:$2 sm:$0xff]  ;;  %v4346_v54 = vld [vmem:[%s5410_s25 + $0x51] ss:$2 sm:$0xff]  ;;  %v4377_v26 = vld [vmem:[%s5415_s12 + $0x50] ss:$2 sm:$0xff] }
 0x226   : > { %7425 = vst [vmem:[#allocation70_spill] sm:$0xff] %v6426_v63  ;;  %v4331_v63 = vld [vmem:[%s5410_s25 + $0x20] ss:$2 sm:$0xff]  ;;  %v3805_v33 = vmul.f32 0.5, %v3793_v60  ;;  %v3546_v49 = vadd.f32 %v4346_v54, %v4334_v23  ;;  %v4336_v60 = vld [vmem:[%s5410_s25 + $0x70] ss:$2 sm:$0xff] }
 0x227   : > { %v6430_v39 = vpop.f32.mrf.mxu1  ;;  %5010 = vmatprep.mubr.msk.bf16.mxu0 %vm568_vm0, %v3565_v24  ;;  %v4389_v24 = vld [vmem:[%s5415_s12 + $0x51] ss:$2 sm:$0xff] }
 0x228   : > { %7426 = vst [vmem:[#allocation71_spill] sm:$0xff] %v6430_v39  ;;  %v3791_v39 = vadd.f32 %v4385_v1, %v4373_v5  ;;  %v4348_v54 = vld [vmem:[%s5410_s25 + $0x71] ss:$2 sm:$0xff] }
 0x229   : > { %v6437_v14 = vpop.f32.mrf.mxu1 }
 0x22a   : > { %7427 = vst [vmem:[#allocation72_spill] sm:$0xff] %v6437_v14  ;;  %v4343_v14 = vld [vmem:[%s5410_s25 + $0x21] ss:$2 sm:$0xff]  ;;  %v3803_v32 = vmul.f32 0.5, %v3791_v39 }
 0x22b   : > { %v6445_v44 = vpop.f32.mrf.mxu1  ;;  %v3543_v53 = vadd.f32 %v4343_v14, %v4331_v63  ;;  %v4388_v39 = vld [vmem:[%s5415_s12 + $0x41] ss:$2 sm:$0xff] }
 0x22c   : > { %v3814_v14 = vpack.c.bf16 %v3803_v32, %v3802_v6  ;;  %v3545_v6 = vadd.f32 %v4345_v30, %v4333_v48  ;;  %v4347_v48 = vld [vmem:[%s5410_s25 + $0x61] ss:$2 sm:$0xff]  ;;  %v3795_v30 = vadd.f32 %v4389_v24, %v4377_v26 }
 0x22d   : > { %v6453_v7 = vpop.f32.mrf.mxu1  ;;  %v3555_v5 = vmul.f32 0.5, %v3543_v53  ;;  %v3804_v53 = vmul.f32 0.5, %v3792_v9  ;;  %v4335_v9 = vld [vmem:[%s5410_s25 + $0x60] ss:$2 sm:$0xff] }
 0x22e   : > { %7428 = vst [vmem:[#allocation73_spill] sm:$0xff] %v6453_v7  ;;  %5026 = vmatprep.mubr.msk.bf16.mxu1 %vm568_vm0, %v3814_v14  ;;  %v3557_v14 = vmul.f32 0.5, %v3545_v6  ;;  %v4391_v6 = vld [vmem:[%s5415_s12 + $0x71] ss:$2 sm:$0xff] }
 0x22f   : > { %v6460_v63 = vpop.f32.mrf.mxu1  ;;  %v3566_v32 = vpack.c.bf16 %v3556_v47, %v3555_v5  ;;  %v3815_v22 = vpack.c.bf16 %v3805_v33, %v3804_v53  ;;  %v3558_v47 = vmul.f32 0.5, %v3546_v49  ;;  %v3794_v5 = vadd.f32 %v4388_v39, %v4376_v34  ;;  %v4390_v33 = vld [vmem:[%s5415_s12 + $0x61] ss:$2 sm:$0xff] }
 0x230   : > { %7429 = vst [vmem:[#allocation74_spill] sm:$0xff] %v6460_v63  ;;  %v3547_v63 = vadd.f32 %v4347_v48, %v4335_v9  ;;  %v3807_v34 = vmul.f32 0.5, %v3795_v30  ;;  %v4337_v9 = vld [vmem:[%s5410_s25 + $0x80] ss:$2 sm:$0xff]  ;;  %v4338_v48 = vld [vmem:[%s5410_s25 + $0x90] ss:$2 sm:$0xff] }
 0x231   : > { %v6469_v35 = vpop.f32.mrf.mxu1  ;;  %5011 = vmatmul.mubr.msk.bf16.vlgmr.msra.gmra.mxu0 %vm568_vm0, %v3566_v32  ;;  %5027 = vmatmul.mubr.msk.bf16.vlgmr.msra.gmra.mxu1 %vm568_vm0, %v3815_v22  ;;  %v3567_v53 = vpack.c.bf16 %v3558_v47, %v3557_v14  ;;  %v3806_v39 = vmul.f32 0.5, %v3794_v5  ;;  %v3548_v32 = vadd.f32 %v4348_v54, %v4336_v60  ;;  %v3797_v14 = vadd.f32 %v4391_v6, %v4379_v50  ;;  %v4349_v47 = vld [vmem:[%s5410_s25 + $0x81] ss:$2 sm:$0xff]  ;;  %v4350_v5 = vld [vmem:[%s5410_s25 + $0x91] ss:$2 sm:$0xff] }
 0x232   : > { %7430 = vst [vmem:[#allocation75_spill] sm:$0xff] %v6469_v35  ;;  %v4378_v35 = vld [vmem:[%s5415_s12 + $0x60] ss:$2 sm:$0xff]  ;;  %v3559_v26 = vmul.f32 0.5, %v3547_v63  ;;  %v4392_v50 = vld [vmem:[%s5415_s12 + $0x81] ss:$2 sm:$0xff] }
 0x233   : > { %v6477_v1 = vpop.f32.mrf.mxu1  ;;  %v3796_v24 = vadd.f32 %v4390_v33, %v4378_v35  ;;  %5014 = vmatprep.mubr.msk.bf16.mxu0 %vm568_vm0, %v3567_v53  ;;  %v3560_v22 = vmul.f32 0.5, %v3548_v32  ;;  %v3816_v30 = vpack.c.bf16 %v3807_v34, %v3806_v39  ;;  %v3549_v35 = vadd.f32 %v4349_v47, %v4337_v9  ;;  %v4380_v54 = vld [vmem:[%s5415_s12 + $0x80] ss:$2 sm:$0xff]  ;;  %v4381_v33 = vld [vmem:[%s5415_s12 + $0x90] ss:$2 sm:$0xff] }
 0x234   : > { %v3809_v53 = vmul.f32 0.5, %v3797_v14  ;;  %v3550_v32 = vadd.f32 %v4350_v5, %v4338_v48  ;;  %v4393_v6 = vld [vmem:[%s5415_s12 + $0x91] ss:$2 sm:$0xff]  ;;  %v3798_v39 = vadd.f32 %v4392_v50, %v4380_v54  ;;  %v4340_v9 = vld [vmem:[%s5410_s25 + $0xb0] ss:$2 sm:$0xff] }
 0x235   : > { %v6487_v7 = vpop.f32.mrf.mxu1  ;;  %v3808_v63 = vmul.f32 0.5, %v3796_v24  ;;  %v3568_v37 = vpack.c.bf16 %v3560_v22, %v3559_v26  ;;  %5030 = vmatprep.mubr.msk.bf16.mxu1 %vm568_vm0, %v3816_v30  ;;  %v3561_v60 = vmul.f32 0.5, %v3549_v35  ;;  %v3799_v34 = vadd.f32 %v4393_v6, %v4381_v33  ;;  %v4339_v24 = vld [vmem:[%s5410_s25 + $0xa0] ss:$2 sm:$0xff]  ;;  %v4351_v48 = vld [vmem:[%s5410_s25 + $0xa1] ss:$2 sm:$0xff] }
 0x236   : > { %7431 = vst [vmem:[#allocation76_spill] sm:$0xff] %v6487_v7  ;;  %v3562_v22 = vmul.f32 0.5, %v3550_v32  ;;  %v4352_v14 = vld [vmem:[%s5410_s25 + $0xb1] ss:$2 sm:$0xff]  ;;  %v3810_v30 = vmul.f32 0.5, %v3798_v39  ;;  %v3551_v2 = vadd.f32 %v4351_v48, %v4339_v24  ;;  %s4194_s25 = sshll.u32 %s7616_s24, 2 }
 0x237   : > { %v6496_v23 = vpop.f32.mrf.mxu1  ;;  %v3817_v26 = vpack.c.bf16 %v3809_v53, %v3808_v63  ;;  %v3811_v35 = vmul.f32 0.5, %v3799_v34  ;;  %v4382_v54 = vld [vmem:[%s5415_s12 + $0xa0] ss:$2 sm:$0xff]  ;;  %v4383_v33 = vld [vmem:[%s5415_s12 + $0xb0] ss:$2 sm:$0xff]  ;;  %s7103_s18 = scalar_lea.vmem %s7265_s8, %s4194_s25  ;;  %s7160_s24 = scalar_lea.vmem [#allocation4], %s5038_s20 }
 0x238   : > { %7432 = vst [vmem:[#allocation77_spill] sm:$0xff] %v6496_v23  ;;  %v3569_v6 = vpack.c.bf16 %v3562_v22, %v3561_v60  ;;  %v3552_v23 = vadd.f32 %v4352_v14, %v4340_v9  ;;  %v3563_v32 = vmul.f32 0.5, %v3551_v2  ;;  %s4024_s20 = sshll.u32 %s7160_s24, 4  ;;  %s7174_s20 = int_to_ptr.vmem [resolvable:$true] %s4024_s20 }
 0x239   : > { %v6505_v49 = vpop.f32.mrf.mxu1  ;;  %5015 = vmatmul.mubr.msk.bf16.gmra.mxu0 %vm568_vm0, %v3568_v37  ;;  %5031 = vmatmul.mubr.msk.bf16.gmra.mxu1 %vm568_vm0, %v3817_v26  ;;  %v4394_v37 = vld [vmem:[%s5415_s12 + $0xa1] ss:$2 sm:$0xff]  ;;  %v3818_v53 = vpack.c.bf16 %v3811_v35, %v3810_v30  ;;  %v3194_v30 = vadd.f32 0.0001, %v6126_v59 }
 0x23a   : > { %7433 = vst [vmem:[#allocation78_spill] sm:$0xff] %v6505_v49  ;;  %v4395_v49 = vld [vmem:[%s5415_s12 + $0xb1] ss:$2 sm:$0xff]  ;;  %v3800_v7 = vadd.f32 %v4394_v37, %v4382_v54  ;;  %5018 = vmatprep.mubr.msk.bf16.mxu0 %vm568_vm0, %v3569_v6  ;;  %v3564_v39 = vmul.f32 0.5, %v3552_v23  ;;  %v3195_v37 = vadd.f32 0.0001, %v6154_v29  ;;  %v6565_v29 = vmul.f32 %v6083_v12, %v6083_v12  ;;  %s7098_s12 = scalar_lea.vmem %s7264_s7, %s4194_s25 }
 0x23b   : > { %v6512_v47 = vpop.f32.mrf.mxu1  ;;  %v3801_v34 = vadd.f32 %v4395_v49, %v4383_v33  ;;  %5034 = vmatprep.mubr.msk.bf16.mxu1 %vm568_vm0, %v3818_v53  ;;  %v3192_v33 = vadd.f32 0.0001, %v6135_v19  ;;  %v7435_v53 = vsub.f32 %v6394_v38, %v6122_v61  ;;  %v3193_v19 = vadd.f32 0.0001, %v6170_v27 }
 0x23c   : > { %v3812_v60 = vmul.f32 0.5, %v3800_v7  ;;  %v3570_v26 = vpack.c.bf16 %v3564_v39, %v3563_v32  ;;  %v7434_v7 = vsub.f32 %v6386_v25, %v6113_v15  ;;  %v3098_v25 = vmul.f32 2.0, %v6118_v8 }
 0x23d   : > { %v6521_v50 = vpop.f32.mrf.mxu1  ;;  %v3813_v22 = vmul.f32 0.5, %v3801_v34  ;;  %5115 = vrcp.f32 %v3194_v30  ;;  %v6569_v39 = vmul.f32 %v6250_v28, %v6250_v28  ;;  %v7436_v61 = vsub.f32 %v6398_v20, %v6139_v40 }
 0x23e   : > { %5117 = vrcp.f32 %v3192_v33  ;;  %v3099_v27 = vmul.f32 2.0, %v6144_v56  ;;  %v3198_v34 = vadd.f32 0.0001, %v6178_v51  ;;  %v7437_v40 = vsub.f32 %v6402_v42, %v6150_v57  ;;  %v7442_v33 = vld [vmem:[#allocation24_spill] sm:$0xff] }
 0x23f   : > { %v6528_v5 = vpop.f32.mrf.mxu1  ;;  %v3819_v14 = vpack.c.bf16 %v3813_v22, %v3812_v60  ;;  %v6581_v60 = vmul.f32 %v6095_v17, %v6095_v17  ;;  %5119 = vrcp.f32 %v3195_v37  ;;  %v3196_v22 = vadd.f32 0.0001, %v6187_v45  ;;  %v7443_v37 = vld [vmem:[#allocation66_spill] sm:$0xff] }
 0x240   : > { %v3199_v51 = vadd.f32 0.0001, %v6206_v58  ;;  %5121 = vrcp.f32 %v3193_v19  ;;  %v7439_v57 = vsub.f32 %v6406_v11, %v6161_v31  ;;  %v6604_v30 = vadd.f32 0.0001, %v3099_v27  ;;  %v7441_v58 = vld [vmem:[#allocation40_spill] sm:$0xff]  ;;  %v7448_v19 = vld [vmem:[#allocation10_spill] sm:$0xff] }
 0x241   : > { %v6534_v9 = vpop.f32.mrf.mxu1  ;;  %5019 = vmatmul.mubr.msk.bf16.gmra.mxu0 %vm568_vm0, %v3570_v26  ;;  %5035 = vmatmul.mubr.msk.bf16.gmra.mxu1 %vm568_vm0, %v3819_v14  ;;  %5123 = vrcp.f32 %v3198_v34  ;;  %v7450_v34 = vld [vmem:[#allocation67_spill] sm:$0xff] }
 0x242   : > { %7440 = vst [vmem:[#allocation80_spill] sm:$0xff] %v6604_v30  ;;  %5125 = vrcp.f32 %v3196_v22 }
 0x243   : > { %v4916_v48 = vpop.f32.mrf.mxu1  ;;  %5127 = vrcp.f32 %v3199_v51 }
 0x244   : > { %v2906_v23 = vsub.f32 %v4916_v48, %v6115_v43  ;;  %v6552_v43 = vmul.f32 %v6071_v46, %v6071_v46  ;;  %v6590_v48 = vadd.f32 0.0001, %v3098_v25  ;;  %v7447_v25 = vld [vmem:[#allocation11_spill] sm:$0xff] }
 0x245   : > { %v2254_v49 = vpop.f32.mrf.mxu1 }
 0x246   : > { %v6545_v35 = vadd.f32 %v2906_v23, %v7434_v7  ;;  %v2904_v54 = vsub.f32 %v2254_v49, %v6128_v62  ;;  %v3096_v62 = vmul.f32 2.0, %v6131_v4  ;;  %v3197_v49 = vadd.f32 0.0001, %v6222_v18 }
 0x247   : > { %v4917_v6 = vpop.f32.mrf.mxu1  ;;  %v3177_v45 = vadd.f32 %v6569_v39, %v6552_v43  ;;  %v3202_v7 = vadd.f32 0.0001, %v6230_v3  ;;  %v7449_v3 = vld [vmem:[#allocation28_spill] sm:$0xff] }
 0x248   : > { %v6557_v59 = vadd.f32 %v2904_v54, %v7435_v53  ;;  %v2907_v15 = vsub.f32 %v4917_v6, %v6141_v41  ;;  %v6592_v14 = vadd.f32 0.0001, %v3096_v62  ;;  %v6609_v54 = vmul.f32 %v7441_v58, %v7441_v58  ;;  %v7444_v53 = vld [vmem:[#allocation9_spill] sm:$0xff] }
 0x249   : > { %v2257_v32 = vpop.f32.mrf.mxu1  ;;  %v3200_v6 = vadd.f32 0.0001, %v7442_v33  ;;  %v7445_v31 = vsub.f32 %v7443_v37, %v7444_v53  ;;  %v3097_v62 = vmul.f32 2.0, %v7447_v25  ;;  %5129 = vrcp.f32 %v3197_v49  ;;  %v7456_v49 = vld [vmem:[#allocation36_spill] sm:$0xff] }
 0x24a   : > { %v6574_v41 = vadd.f32 %v2907_v15, %v7436_v61  ;;  %v2905_v38 = vsub.f32 %v2257_v32, %v6146_v21  ;;  %7438 = vst [vmem:[#allocation79_spill] sm:$0xff] %v6592_v14  ;;  %v7446_v15 = vld [vmem:[#allocation12_spill] sm:$0xff]  ;;  %v3102_v32 = vmul.f32 2.0, %v7448_v19  ;;  %v3203_v61 = vadd.f32 0.0001, %v7449_v3  ;;  %v7460_v3 = vld [vmem:[#allocation19_spill] sm:$0xff] }
 0x24b   : > { %v4924_v26 = vpop.f32.mrf.mxu1  ;;  %v3201_v27 = vadd.f32 0.0001, %v3177_v45  ;;  %5131 = vrcp.f32 %v3202_v7  ;;  %v3181_v51 = vadd.f32 %v6609_v54, %v6565_v29  ;;  %v3204_v45 = vadd.f32 0.0001, %v7456_v49  ;;  %v7457_v53 = vld [vmem:[#allocation68_spill] sm:$0xff]  ;;  %v7466_v49 = vld [vmem:[#allocation18_spill] sm:$0xff] }
 0x24c   : > { %v6587_v20 = vadd.f32 %v2905_v38, %v7437_v40  ;;  %v2910_v21 = vsub.f32 %v4924_v26, %v6163_v16  ;;  %v7451_v26 = vld [vmem:[#allocation13_spill] sm:$0xff]  ;;  %5133 = vrcp.f32 %v3200_v6 }
 0x24d   : > { %v2303_v23 = vpop.f32.mrf.mxu1  ;;  %v7452_v22 = vsub.f32 %v7450_v34, %v7451_v26  ;;  %v6643_v34 = vadd.f32 0.0001, %v3102_v32  ;;  %5135 = vrcp.f32 %v3203_v61  ;;  %v7463_v26 = vld [vmem:[#allocation41_spill] sm:$0xff]  ;;  %v3205_v32 = vadd.f32 0.0001, %v3181_v51 }
 0x24e   : > { %v6601_v42 = vadd.f32 %v2910_v21, %v7439_v57  ;;  %v2908_v16 = vsub.f32 %v2303_v23, %v6180_v55  ;;  %v7453_v21 = vld [vmem:[#allocation15_spill] sm:$0xff]  ;;  %v7454_v57 = vld [vmem:[#allocation33_spill] sm:$0xff]  ;;  %5137 = vrcp.f32 %v3201_v27 }
 0x24f   : > { %v4925_v18 = vpop.f32.mrf.mxu1  ;;  %7462 = vst [vmem:[#allocation24_spill] sm:$0xff] %v6643_v34  ;;  %v7465_v6 = vld [vmem:[#allocation69_spill] sm:$0xff] }
 0x250   : > { %v6615_v11 = vadd.f32 %v2908_v16, %v7445_v31  ;;  %v2911_v55 = vsub.f32 %v4925_v18, %v7446_v15  ;;  %v3206_v16 = vadd.f32 0.0001, %v7454_v57  ;;  %v7455_v18 = vld [vmem:[#allocation52_spill] sm:$0xff]  ;;  %v7467_v24 = vsub.f32 %v7465_v6, %v7466_v49  ;;  %v7472_v27 = vld [vmem:[#allocation45_spill] sm:$0xff]  ;;  %v7473_v6 = vld [vmem:[#allocation70_spill] sm:$0xff] }
 0x251   : > { %v2306_v38 = vpop.f32.mrf.mxu1  ;;  %v6630_v33 = vmul.f32 %v7455_v18, %v7455_v18  ;;  %v7458_v31 = vld [vmem:[#allocation16_spill] sm:$0xff] }
 0x252   : > { %v6624_v40 = vadd.f32 %v2911_v55, %v7452_v22  ;;  %v2909_v23 = vsub.f32 %v2306_v38, %v7453_v21  ;;  %v7459_v15 = vsub.f32 %v7457_v53, %v7458_v31  ;;  %v6641_v38 = vadd.f32 0.0001, %v3097_v62  ;;  %v7464_v57 = vld [vmem:[#allocation8_spill] sm:$0xff]  ;;  %v6653_v31 = vpop.eup %5115  ;;  %v7470_v62 = vld [vmem:[#allocation14_spill] sm:$0xff] }
 0x253   : > { %v4932_v37 = vpop.f32.mrf.mxu1  ;;  %v3207_v22 = vadd.f32 0.0001, %v7463_v26  ;;  %v3100_v2 = vmul.f32 2.0, %v7464_v57  ;;  %7469 = vst [vmem:[#allocation66_spill] sm:$0xff] %v6653_v31  ;;  %5139 = vrcp.f32 %v3206_v16  ;;  %v3185_v61 = vadd.f32 %v6630_v33, %v6581_v60  ;;  %v7478_v16 = vld [vmem:[#allocation17_spill] sm:$0xff] }
 0x254   : > { %v6638_v55 = vadd.f32 %v2909_v23, %v7459_v15  ;;  %v2914_v7 = vsub.f32 %v4932_v37, %v7460_v3  ;;  %7461 = vst [vmem:[#allocation40_spill] sm:$0xff] %v6641_v38  ;;  %v7468_v23 = vld [vmem:[#allocation22_spill] sm:$0xff]  ;;  %v3103_v37 = vmul.f32 2.0, %v7470_v62  ;;  %v6658_v3 = vpop.eup %5117  ;;  %5141 = vrcp.f32 %v3204_v45  ;;  %v7479_v38 = vld [vmem:[#allocation20_spill] sm:$0xff] }
 0x255   : > { %v2352_v21 = vpop.f32.mrf.mxu1  ;;  %7471 = vst [vmem:[#allocation9_spill] sm:$0xff] %v6658_v3  ;;  %v3210_v26 = vadd.f32 0.0001, %v7472_v27  ;;  %v6667_v34 = vpop.eup %5119  ;;  %v3101_v51 = vmul.f32 2.0, %v7478_v16  ;;  %v3106_v30 = vmul.f32 2.0, %v7479_v38  ;;  %5143 = vrcp.f32 %v3207_v22  ;;  %v7480_v62 = vld [vmem:[#allocation48_spill] sm:$0xff] }
 0x256   : > { %v6650_v63 = vadd.f32 %v2914_v7, %v7467_v24  ;;  %v2912_v53 = vsub.f32 %v2352_v21, %v7468_v23  ;;  %v7474_v24 = vld [vmem:[#allocation21_spill] sm:$0xff]  ;;  %v7476_v21 = vld [vmem:[#allocation26_spill] sm:$0xff]  ;;  %7477 = vst [vmem:[#allocation12_spill] sm:$0xff] %v6667_v34  ;;  %v3208_v31 = vadd.f32 0.0001, %v7480_v62  ;;  %v6672_v45 = vpop.eup %5121  ;;  %5145 = vrcp.f32 %v3205_v32 }
 0x257   : > { %v4933_v15 = vpop.f32.mrf.mxu1  ;;  %v7475_v7 = vsub.f32 %v7473_v6, %v7474_v24  ;;  %7481 = vst [vmem:[#allocation11_spill] sm:$0xff] %v6672_v45  ;;  %v7482_v27 = vld [vmem:[#allocation53_spill] sm:$0xff]  ;;  %v7483_v6 = vld [vmem:[#allocation72_spill] sm:$0xff]  ;;  %v7484_v24 = vld [vmem:[#allocation71_spill] sm:$0xff]  ;;  %v6683_v16 = vadd.f32 0.0001, %v3100_v2  ;;  %v6687_v45 = vpop.eup %5123  ;;  %5147 = vrcp.f32 %v3210_v26  ;;  %v6699_v2 = vmul.f32 %v6250_v28, %v6071_v46 }
 0x258   : > { %v2915_v23 = vsub.f32 %v4933_v15, %v7476_v21  ;;  %v3211_v57 = vadd.f32 0.0001, %v7482_v27  ;;  %v6685_v22 = vadd.f32 0.0001, %v3103_v37  ;;  %v3209_v62 = vadd.f32 0.0001, %v3185_v61 }
 0x259   : > { %v6664_v49 = vadd.f32 %v2912_v53, %v7475_v7  ;;  %v2355_v3 = vpop.f32.mrf.mxu1  ;;  %v2889_v53 = vsub.f32 %v7483_v6, %v6552_v43  ;;  %v7485_v7 = vld [vmem:[#allocation25_spill] sm:$0xff]  ;;  %7488 = vst [vmem:[#allocation28_spill] sm:$0xff] %v6687_v45  ;;  %v7489_v27 = vld [vmem:[#allocation56_spill] sm:$0xff]  ;;  %v7490_v6 = vld [vmem:[#allocation30_spill] sm:$0xff]  ;;  %5149 = vrcp.f32 %v3208_v31 }
 0x25a   : > { %v7486_v15 = vsub.f32 %v7484_v24, %v7485_v7  ;;  %v2913_v34 = vsub.f32 %v2355_v3, %v6569_v39  ;;  %7487 = vst [vmem:[#allocation10_spill] sm:$0xff] %v6685_v22  ;;  %v3214_v14 = vadd.f32 0.0001, %v7489_v27  ;;  %v6695_v7 = vadd.f32 0.0001, %v3101_v51  ;;  %v7492_v39 = vld [vmem:[#allocation59_spill] sm:$0xff] }
 0x25b   : > { %v4940_v38 = vpop.f32.mrf.mxu1  ;;  %v3212_v37 = vadd.f32 0.0001, %v7492_v39  ;;  %v6704_v3 = vadd.f32 0.0001, %v3106_v30  ;;  %5151 = vrcp.f32 %v3211_v57  ;;  %v7497_v51 = vld [vmem:[#allocation34_spill] sm:$0xff]  ;;  %v7499_v46 = vld [vmem:[#allocation23_spill] sm:$0xff] }
 0x25c   : > { %v6680_v21 = vadd.f32 %v2915_v23, %v7486_v15  ;;  %v6690_v43 = vadd.f32 %v2913_v34, %v2889_v53  ;;  %v2918_v24 = vsub.f32 %v4940_v38, %v7490_v6  ;;  %v6693_v23 = vpop.eup %5125  ;;  %7491 = vst [vmem:[#allocation67_spill] sm:$0xff] %v6695_v7  ;;  %v7495_v34 = vld [vmem:[#allocation29_spill] sm:$0xff]  ;;  %v3104_v28 = vmul.f32 2.0, %v7499_v46  ;;  %v7500_v31 = vld [vmem:[#allocation27_spill] sm:$0xff] }
 0x25d   : > { %v2401_v32 = vpop.f32.mrf.mxu1  ;;  %v6702_v61 = vpop.eup %5127  ;;  %7494 = vst [vmem:[#allocation15_spill] sm:$0xff] %v6704_v3  ;;  %v7496_v38 = vsub.f32 %v6445_v44, %v7495_v34  ;;  %v3107_v27 = vmul.f32 2.0, %v7500_v31  ;;  %v7501_v6 = vld [vmem:[#allocation63_spill] sm:$0xff]  ;;  %5153 = vrcp.f32 %v3209_v62  ;;  %v7503_v57 = vld [vmem:[#allocation65_spill] sm:$0xff]  ;;  %v3026_v62 = vadd.f32 0.0009, %v6545_v35 }
 0x25e   : > { %7493 = vst [vmem:[#allocation13_spill] sm:$0xff] %v6702_v61  ;;  %v2916_v53 = vsub.f32 %v2401_v32, %v7497_v51  ;;  %v6712_v15 = vpop.eup %5129  ;;  %v3215_v39 = vadd.f32 0.0001, %v7501_v6  ;;  %5155 = vrcp.f32 %v3214_v14  ;;  %v3213_v45 = vadd.f32 0.0001, %v7503_v57  ;;  %v7504_v44 = vld [vmem:[#allocation73_spill] sm:$0xff] }
 0x25f   : > { %v6709_v26 = vadd.f32 %v2918_v24, %v7496_v38  ;;  %7498 = vst [vmem:[#allocation33_spill] sm:$0xff] %v6712_v15  ;;  %v4941_v61 = vpop.f32.mrf.mxu1  ;;  %v6717_v30 = vpop.eup %5131  ;;  %v7505_v24 = vld [vmem:[#allocation32_spill] sm:$0xff]  ;;  %v7507_v32 = vld [vmem:[#allocation38_spill] sm:$0xff]  ;;  %v3105_v15 = vmul.f32 2.0, %v6699_v2  ;;  %v7509_v7 = vld [vmem:[#allocation31_spill] sm:$0xff]  ;;  %5157 = vrcp.f32 %v3212_v37 }
 0x260   : > { %7502 = vst [vmem:[#allocation52_spill] sm:$0xff] %v6717_v30  ;;  %v7506_v34 = vsub.f32 %v7504_v44, %v7505_v24  ;;  %v2919_v51 = vsub.f32 %v4941_v61, %v7507_v32  ;;  %v6726_v3 = vpop.eup %5133  ;;  %v3110_v6 = vmul.f32 2.0, %v7509_v7  ;;  %v7511_v57 = vld [vmem:[#allocation75_spill] sm:$0xff]  ;;  %v7512_v44 = vld [vmem:[#allocation74_spill] sm:$0xff]  ;;  %v7513_v24 = vld [vmem:[#allocation37_spill] sm:$0xff]  ;;  %5159 = vrcp.f32 %v3215_v39 }
 0x261   : > { %7508 = vst [vmem:[#allocation36_spill] sm:$0xff] %v6726_v3  ;;  %v2404_v30 = vpop.f32.mrf.mxu1  ;;  %v6731_v14 = vpop.eup %5135  ;;  %v2893_v22 = vsub.f32 %v7511_v57, %v6565_v29  ;;  %v7514_v61 = vsub.f32 %v7512_v44, %v7513_v24  ;;  %v6744_v37 = vadd.f32 0.0001, %v3104_v28  ;;  %v6746_v35 = vadd.f32 0.0001, %v3107_v27 }
 0x262   : > { %v6723_v38 = vadd.f32 %v2916_v53, %v7506_v34  ;;  %7510 = vst [vmem:[#allocation68_spill] sm:$0xff] %v6731_v14  ;;  %v3024_v53 = vadd.f32 0.0009, %v6557_v59  ;;  %v2917_v32 = vsub.f32 %v2404_v30, %v6609_v54  ;;  %v6742_v3 = vpop.eup %5137  ;;  %v3027_v14 = vadd.f32 0.0009, %v6574_v41 }
 0x263   : > { %v6739_v34 = vadd.f32 %v2919_v51, %v7514_v61  ;;  %v4948_v7 = vpop.f32.mrf.mxu1  ;;  %v6749_v29 = vpop.eup %5139  ;;  %5161 = vrcp.f32 %v3213_v45  ;;  %v3025_v59 = vadd.f32 0.0009, %v6587_v20  ;;  %v7516_v51 = vld [vmem:[#allocation42_spill] sm:$0xff]  ;;  %v6755_v54 = vadd.f32 0.0001, %v3105_v15  ;;  %v7520_v61 = vld [vmem:[#allocation35_spill] sm:$0xff] }
 0x264   : > { %7515 = vst [vmem:[#allocation16_spill] sm:$0xff] %v6749_v29  ;;  %v3013_v57 = vadd.f32 %v2917_v32, %v2893_v22  ;;  %v2922_v44 = vsub.f32 %v4948_v7, %v7516_v51  ;;  %v6753_v24 = vpop.eup %5141  ;;  %v6757_v28 = vadd.f32 0.0001, %v3110_v6  ;;  %5163 = vrcp.f32 %v3026_v62  ;;  %v7519_v7 = vld [vmem:[#allocation46_spill] sm:$0xff] }
 0x265   : > { %v3030_v27 = vadd.f32 0.0009, %v6601_v42  ;;  %v2450_v39 = vpop.f32.mrf.mxu1  ;;  %v6760_v41 = vpop.eup %5143  ;;  %5165 = vrcp.f32 %v3024_v53  ;;  %v3028_v45 = vadd.f32 0.0009, %v6615_v11  ;;  %v7518_v20 = vsub.f32 %v6477_v1, %v6299_v36  ;;  %v7521_v53 = vld [vmem:[#allocation76_spill] sm:$0xff] }
 0x266   : > { %7517 = vst [vmem:[#allocation19_spill] sm:$0xff] %v6760_v41  ;;  %v2920_v30 = vsub.f32 %v2450_v39, %v7519_v7  ;;  %v3108_v15 = vmul.f32 2.0, %v7520_v61  ;;  %v6770_v6 = vmul.f32 %v7441_v58, %v6083_v12  ;;  %5167 = vrcp.f32 %v3027_v14  ;;  %v6773_v32 = vpop.eup %5145  ;;  %v7522_v36 = vld [vmem:[#allocation44_spill] sm:$0xff]  ;;  %v7526_v7 = vld [vmem:[#allocation39_spill] sm:$0xff]  ;;  %v7527_v58 = vld [vmem:[#allocation78_spill] sm:$0xff] }
 0x267   : > { %v3018_v22 = vadd.f32 %v2922_v44, %v7518_v20  ;;  %v3031_v42 = vadd.f32 0.0009, %v6624_v40  ;;  %v4949_v62 = vpop.f32.mrf.mxu1  ;;  %5169 = vrcp.f32 %v3025_v59  ;;  %v3029_v11 = vadd.f32 0.0009, %v6638_v55  ;;  %v7524_v44 = vld [vmem:[#allocation50_spill] sm:$0xff]  ;;  %v6780_v20 = vpop.eup %5147 }
 0x268   : > { %v7523_v1 = vsub.f32 %v7521_v53, %v7522_v36  ;;  %v2923_v39 = vsub.f32 %v4949_v62, %v7524_v44  ;;  %7525 = vst [vmem:[#allocation41_spill] sm:$0xff] %v6780_v20  ;;  %v3111_v12 = vmul.f32 2.0, %v7526_v7  ;;  %v2897_v14 = vsub.f32 %v7527_v58, %v6581_v60  ;;  %v6786_v59 = vpop.eup %5149  ;;  %v7529_v53 = vld [vmem:[#allocation77_spill] sm:$0xff] }
 0x269   : > { %5171 = vrcp.f32 %v3030_v27  ;;  %v3034_v40 = vadd.f32 0.0009, %v6650_v63  ;;  %v2453_v41 = vpop.f32.mrf.mxu1  ;;  %7528 = vst [vmem:[#allocation69_spill] sm:$0xff] %v6786_v59  ;;  %v3032_v55 = vadd.f32 0.0009, %v6664_v49  ;;  %v6793_v44 = vpop.eup %5151  ;;  %v3109_v60 = vmul.f32 2.0, %v6770_v6 }
 0x26a   : > { %v3016_v51 = vadd.f32 %v2920_v30, %v7523_v1  ;;  %5173 = vrcp.f32 %v3028_v45  ;;  %v7530_v30 = vld [vmem:[#allocation49_spill] sm:$0xff]  ;;  %v2921_v1 = vsub.f32 %v2453_v41, %v6630_v33  ;;  %7532 = vst [vmem:[#allocation18_spill] sm:$0xff] %v6793_v44  ;;  %v6795_v20 = vadd.f32 0.0001, %v3108_v15  ;;  %v6799_v58 = vpop.eup %5153  ;;  %v7536_v41 = vld [vmem:[#allocation43_spill] sm:$0xff] }
 0x26b   : > { %v7531_v36 = vsub.f32 %v7529_v53, %v7530_v30  ;;  %5175 = vrcp.f32 %v3031_v42  ;;  %v3035_v63 = vadd.f32 0.0009, %v6680_v21  ;;  %v4956_v27 = vpop.f32.mrf.mxu1  ;;  %7533 = vst [vmem:[#allocation22_spill] sm:$0xff] %v6799_v58  ;;  %v3033_v49 = vadd.f32 0.0009, %v6690_v43  ;;  %v7534_v53 = vld [vmem:[#allocation54_spill] sm:$0xff]  ;;  %v6803_v30 = vpop.eup %5155 }
 0x26c   : > { %5177 = vrcp.f32 %v3029_v11  ;;  %v3017_v45 = vadd.f32 %v2921_v1, %v2897_v14  ;;  %7535 = vst [vmem:[#allocation45_spill] sm:$0xff] %v6803_v30  ;;  %v6805_v33 = vadd.f32 0.0001, %v3111_v12  ;;  %v3114_v15 = vmul.f32 2.0, %v7536_v41  ;;  %v6809_v21 = vpop.eup %5157  ;;  %v7539_v1 = vld [vmem:[#allocation57_spill] sm:$0xff]  ;;  %v7540_v12 = vld [vmem:[#allocation47_spill] sm:$0xff] }
 0x26d   : > { %v3019_v62 = vadd.f32 %v2923_v39, %v7531_v36  ;;  %v2926_v39 = vsub.f32 %v4956_v27, %v7534_v53  ;;  %5179 = vrcp.f32 %v3034_v40  ;;  %v3038_v42 = vadd.f32 0.0009, %v6709_v26  ;;  %v2499_v36 = vpop.f32.mrf.mxu1  ;;  %7537 = vst [vmem:[#allocation70_spill] sm:$0xff] %v6809_v21  ;;  %v6820_v44 = vpop.eup %5159 }
 0x26e   : > { %5181 = vrcp.f32 %v3032_v55  ;;  %v3036_v11 = vadd.f32 0.0009, %v6723_v38  ;;  %v7538_v43 = vsub.f32 %v6512_v47, %v6340_v52  ;;  %v2924_v27 = vsub.f32 %v2499_v36, %v7539_v1  ;;  %7541 = vst [vmem:[#allocation21_spill] sm:$0xff] %v6820_v44  ;;  %v7543_v52 = vld [vmem:[#allocation60_spill] sm:$0xff] }
 0x26f   : > { %v6816_v53 = vadd.f32 0.0001, %v3109_v60  ;;  %v3112_v30 = vmul.f32 2.0, %v7540_v12  ;;  %5183 = vrcp.f32 %v3035_v63  ;;  %v3039_v40 = vadd.f32 0.0009, %v6739_v34  ;;  %v4957_v26 = vpop.f32.mrf.mxu1  ;;  %v7545_v60 = vld [vmem:[#allocation51_spill] sm:$0xff] }
 0x270   : > { %v3022_v14 = vadd.f32 %v2926_v39, %v7538_v43  ;;  %5185 = vrcp.f32 %v3033_v49  ;;  %v3037_v55 = vadd.f32 0.0009, %v3013_v57  ;;  %v7542_v38 = vsub.f32 %v6521_v50, %v6349_v13  ;;  %v6826_v39 = vpop.eup %5161  ;;  %v7548_v49 = vld [vmem:[#allocation62_spill] sm:$0xff] }
 0x271   : > { %v2927_v47 = vsub.f32 %v4957_v26, %v7543_v52  ;;  %7544 = vst [vmem:[#allocation26_spill] sm:$0xff] %v6826_v39  ;;  %v3115_v36 = vmul.f32 2.0, %v7545_v60  ;;  %v6831_v63 = vmul.f32 %v7455_v18, %v6095_v17  ;;  %5187 = vrcp.f32 %v3038_v42  ;;  %v2502_v43 = vpop.f32.mrf.mxu1  ;;  %v5164_v1 = vpop.eup %5163 }
 0x272   : > { %v3020_v21 = vadd.f32 %v2924_v27, %v7542_v38  ;;  %v3042_v34 = vadd.f32 0.0009, %v3018_v22  ;;  %5189 = vrcp.f32 %v3036_v11  ;;  %v3040_v57 = vadd.f32 0.0009, %v3016_v51  ;;  %v5166_v26 = vpop.eup %5165 }
 0x273   : > { %7546 = vst [vmem:[#allocation48_spill] sm:$0xff] %v6831_v63  ;;  %v7547_v13 = vsub.f32 %v6528_v5, %v6366_v10  ;;  %v2925_v27 = vsub.f32 %v2502_v43, %v7548_v49  ;;  %v6837_v38 = vadd.f32 0.0001, %v3114_v15  ;;  %v6839_v52 = vadd.f32 0.0001, %v3112_v30  ;;  %v4964_v18 = vpop.f32.mrf.mxu1  ;;  %v5168_v42 = vpop.eup %5167  ;;  %v7552_v43 = vld [vmem:[#allocation55_spill] sm:$0xff] }
 0x274   : > { %5191 = vrcp.f32 %v3039_v40  ;;  %v3043_v17 = vadd.f32 0.0009, %v3019_v62  ;;  %v3041_v22 = vadd.f32 0.0009, %v3017_v45  ;;  %v7550_v51 = vsub.f32 %v6534_v9, %v6375_v0  ;;  %v6845_v5 = vpop.eup %5169  ;;  %v7554_v49 = vld [vmem:[#allocation61_spill] sm:$0xff] }
 0x275   : > { %v3023_v50 = vadd.f32 %v2927_v47, %v7547_v13  ;;  %7549 = vst [vmem:[#allocation53_spill] sm:$0xff] %v6839_v52  ;;  %5193 = vrcp.f32 %v3037_v55  ;;  %v2930_v10 = vsub.f32 %v4964_v18, %v6118_v8  ;;  %v6847_v47 = vadd.f32 0.0001, %v3115_v36  ;;  %v2548_v40 = vpop.f32.mrf.mxu1  ;;  %v7553_v8 = vld [vmem:[#allocation58_spill] sm:$0xff]  ;;  %v7571_v52 = vld [vmem:[#allocation11_spill] sm:$0xff] }
 0x276   : > { %v3021_v11 = vadd.f32 %v2925_v27, %v7550_v51  ;;  %v3113_v15 = vmul.f32 2.0, %v6831_v63  ;;  %5195 = vrcp.f32 %v3042_v34  ;;  %v3046_v30 = vadd.f32 0.0009, %v3022_v14  ;;  %v6850_v62 = vpop.eup %5171 }
 0x277   : > { %7551 = vst [vmem:[#allocation72_spill] sm:$0xff] %v6847_v47  ;;  %v3118_v55 = vmul.f32 2.0, %v7552_v43  ;;  %5197 = vrcp.f32 %v3040_v57  ;;  %v2954_v45 = vmul.f32 2.0, %v2930_v10  ;;  %v2928_v0 = vsub.f32 %v2548_v40, %v6131_v4  ;;  %v6854_v9 = vpop.eup %5173  ;;  %v4965_v18 = vpop.f32.mrf.mxu1  ;;  %v7556_v4 = vld [vmem:[#allocation64_spill] sm:$0xff] }
 0x278   : > { %v3116_v13 = vmul.f32 2.0, %v7553_v8  ;;  %v3119_v36 = vmul.f32 2.0, %v7554_v49  ;;  %5199 = vrcp.f32 %v3043_v17  ;;  %v3044_v27 = vadd.f32 0.0009, %v3020_v21  ;;  %v6858_v34 = vpop.eup %5175 }
 0x279   : > { %5201 = vrcp.f32 %v3041_v22  ;;  %v2978_v14 = vadd.f32 0.0009, %v2954_v45  ;;  %v2952_v51 = vmul.f32 2.0, %v2928_v0  ;;  %v2931_v44 = vsub.f32 %v4965_v18, %v6144_v56  ;;  %v6861_v57 = vpop.eup %5177  ;;  %v2551_v29 = vpop.f32.mrf.mxu1 }
 0x27a   : > { %v6863_v10 = vadd.f32 0.0001, %v3113_v15  ;;  %v3117_v40 = vmul.f32 2.0, %v7556_v4  ;;  %5203 = vrcp.f32 %v3046_v30  ;;  %v3047_v39 = vadd.f32 0.0009, %v3023_v50  ;;  %v6866_v58 = vpop.eup %5179 }
 0x27b   : > { %v3074_v21 = vmul.f32 %v5164_v1, %v2978_v14  ;;  %v2976_v17 = vadd.f32 0.0009, %v2952_v51  ;;  %v2955_v49 = vmul.f32 2.0, %v2931_v44  ;;  %v2929_v22 = vsub.f32 %v2551_v29, %v7447_v25  ;;  %v6869_v45 = vpop.eup %5181  ;;  %v4972_v18 = vpop.f32.mrf.mxu1 }
 0x27c   : > { %7555 = vst [vmem:[#allocation71_spill] sm:$0xff] %v6863_v10  ;;  %v6871_v0 = vadd.f32 0.0001, %v3118_v55  ;;  %v6873_v56 = vadd.f32 0.0001, %v3116_v13  ;;  %5205 = vrcp.f32 %v3044_v27  ;;  %v6877_v30 = vpop.eup %5183  ;;  %v2934_v55 = vsub.f32 %v4972_v18, %v7448_v19  ;;  %v7561_v27 = vld [vmem:[#allocation79_spill] sm:$0xff] }
 0x27d   : > { %v6875_v15 = vadd.f32 0.0001, %v3119_v36  ;;  %v3146_v50 = vmul.f32 %v6590_v48, %v3074_v21  ;;  %v3072_v4 = vmul.f32 %v5166_v26, %v2976_v17  ;;  %v2979_v1 = vadd.f32 0.0009, %v2955_v49  ;;  %v6880_v44 = vpop.eup %5185  ;;  %v2597_v13 = vpop.f32.mrf.mxu1  ;;  %v7564_v18 = vld [vmem:[#allocation9_spill] sm:$0xff]  ;;  %v7565_v10 = vld [vmem:[#allocation14_spill] sm:$0xff] }
 0x27e   : > { %7557 = vst [vmem:[#allocation25_spill] sm:$0xff] %v6871_v0  ;;  %7558 = vst [vmem:[#allocation56_spill] sm:$0xff] %v6873_v56  ;;  %v2953_v14 = vmul.f32 2.0, %v2929_v22  ;;  %v6882_v25 = vadd.f32 0.0001, %v3117_v40  ;;  %5207 = vrcp.f32 %v3047_v39  ;;  %v6887_v36 = vpop.eup %5187  ;;  %v7562_v56 = vld [vmem:[#allocation8_spill] sm:$0xff] }
 0x27f   : > { %7559 = vst [vmem:[#allocation30_spill] sm:$0xff] %v6875_v15  ;;  %v6884_v29 = vadd.f32 0.0009, %v3021_v11  ;;  %v3144_v51 = vmul.f32 %v7561_v27, %v3072_v4  ;;  %v2932_v48 = vsub.f32 %v2597_v13, %v7562_v56  ;;  %v3075_v26 = vmul.f32 %v5168_v42, %v2979_v1  ;;  %v6891_v49 = vpop.eup %5189  ;;  %v4973_v22 = vpop.f32.mrf.mxu1  ;;  %v7563_v11 = vld [vmem:[#allocation66_spill] sm:$0xff]  ;;  %v7566_v13 = vld [vmem:[#allocation80_spill] sm:$0xff] }
 0x280   : > { %7560 = vst [vmem:[#allocation59_spill] sm:$0xff] %v6882_v25  ;;  %v2977_v15 = vadd.f32 0.0009, %v2953_v14  ;;  %v2958_v17 = vmul.f32 2.0, %v2934_v55  ;;  %v3280_v40 = vsel %vm568_vm0, %v3072_v4, 0.0  ;;  %v3283_v39 = vsel %vm568_vm0, %v3074_v21, 0.0 }
 0x281   : > { %v3242_v25 = vmul.f32 %v7563_v11, %v3146_v50  ;;  %v6896_v19 = vpop.eup %5191  ;;  %v3240_v0 = vmul.f32 %v7564_v18, %v3144_v51  ;;  %v2956_v14 = vmul.f32 2.0, %v2932_v48  ;;  %v2935_v56 = vsub.f32 %v4973_v22, %v7565_v10  ;;  %v2600_v55 = vpop.f32.mrf.mxu1  ;;  %v7567_v11 = vld [vmem:[#allocation40_spill] sm:$0xff] }
 0x282   : > { %v3073_v27 = vmul.f32 %v6845_v5, %v2977_v15  ;;  %v6901_v42 = vpop.eup %5193  ;;  %v2982_v1 = vadd.f32 0.0009, %v2958_v17  ;;  %v3147_v8 = vmul.f32 %v7566_v13, %v3075_v26  ;;  %v3285_v4 = vsel %vm568_vm0, %v3075_v26, 0.0  ;;  %v7568_v5 = vld [vmem:[#allocation17_spill] sm:$0xff]  ;;  %v7570_v13 = vld [vmem:[#allocation12_spill] sm:$0xff] }
 0x283   : > { %v3267_v21 = vsel %vm568_vm0, %v3242_v25, 0.0  ;;  %v6906_v50 = vpop.eup %5195  ;;  %v2980_v51 = vadd.f32 0.0009, %v2956_v14  ;;  %v2959_v18 = vmul.f32 2.0, %v2935_v56  ;;  %v2933_v15 = vsub.f32 %v2600_v55, %v7568_v5  ;;  %v4980_v17 = vpop.f32.mrf.mxu1  ;;  %v7573_v5 = vld [vmem:[#allocation24_spill] sm:$0xff] }
 0x284   : > { %v3145_v47 = vmul.f32 %v7567_v11, %v3073_v27  ;;  %v6910_v48 = vpop.eup %5197  ;;  %v3078_v10 = vmul.f32 %v6850_v62, %v2982_v1  ;;  %v3281_v22 = vsel %vm568_vm0, %v3073_v27, 0.0  ;;  %v3243_v59 = vmul.f32 %v7570_v13, %v3147_v8  ;;  %v7574_v62 = vld [vmem:[#allocation20_spill] sm:$0xff] }
 0x285   : > { %7569 = vst [vmem:[#allocation29_spill] sm:$0xff] %v6910_v48  ;;  %v3264_v26 = vsel %vm568_vm0, %v3240_v0, 0.0  ;;  %v6916_v25 = vpop.eup %5199  ;;  %v3076_v14 = vmul.f32 %v6854_v9, %v2980_v51  ;;  %v2983_v56 = vadd.f32 0.0009, %v2959_v18  ;;  %v2957_v11 = vmul.f32 2.0, %v2933_v15  ;;  %v2646_v27 = vpop.f32.mrf.mxu1 }
 0x286   : > { %v3241_v43 = vmul.f32 %v7571_v52, %v3145_v47  ;;  %v6920_v55 = vpop.eup %5201  ;;  %v6923_v48 = vmul.f32 %v7573_v5, %v3078_v10  ;;  %v2938_v1 = vsub.f32 %v4980_v17, %v7574_v62  ;;  %v3282_v63 = vadd.f32 %v3281_v22, %v3280_v40 }
 0x287   : > { %7572 = vst [vmem:[#allocation34_spill] sm:$0xff] %v6920_v55  ;;  %v3269_v8 = vsel %vm568_vm0, %v3243_v59, 0.0  ;;  %v6927_v0 = vpop.eup %5203  ;;  %v3148_v13 = vmul.f32 %v6683_v16, %v3076_v14  ;;  %v2981_v52 = vadd.f32 0.0009, %v2957_v11  ;;  %v2936_v47 = vsub.f32 %v2646_v27, %v7499_v46  ;;  %v4981_v18 = vpop.f32.mrf.mxu1 }
 0x288   : > { %v3265_v9 = vsel %vm568_vm0, %v3241_v43, 0.0  ;;  %v2962_v51 = vmul.f32 2.0, %v2938_v1  ;;  %v3284_v15 = vadd.f32 %v3283_v39, %v3282_v63  ;;  %v3079_v55 = vmul.f32 %v6858_v34, %v2983_v56  ;;  %v7575_v1 = vld [vmem:[#allocation10_spill] sm:$0xff]  ;;  %v7576_v39 = vld [vmem:[#allocation67_spill] sm:$0xff] }
 0x289   : > { %v3266_v5 = vadd.f32 %v3265_v9, %v3264_v26  ;;  %v6933_v17 = vpop.eup %5205  ;;  %v6936_v40 = vmul.f32 %v6693_v23, %v3148_v13  ;;  %v3077_v59 = vmul.f32 %v6861_v57, %v2981_v52  ;;  %v2960_v22 = vmul.f32 2.0, %v2936_v47  ;;  %v2649_v62 = vpop.f32.mrf.mxu1  ;;  %v7577_v52 = vld [vmem:[#allocation33_spill] sm:$0xff] }
 0x28a   : > { %v2939_v16 = vsub.f32 %v4981_v18, %v7500_v31  ;;  %v2986_v11 = vadd.f32 0.0009, %v2962_v51  ;;  %v3286_v46 = vadd.f32 %v3285_v4, %v3284_v15  ;;  %v3151_v27 = vmul.f32 %v7575_v1, %v3079_v55  ;;  %v7580_v1 = vld [vmem:[#allocation36_spill] sm:$0xff] }
 0x28b   : > { %v3268_v43 = vadd.f32 %v3267_v21, %v3266_v5  ;;  %v6941_v63 = vpop.eup %5207  ;;  %v3149_v34 = vmul.f32 %v7576_v39, %v3077_v59  ;;  %v2984_v26 = vadd.f32 0.0009, %v2960_v22  ;;  %v2937_v23 = vsub.f32 %v2649_v62, %v6699_v2  ;;  %v4988_v57 = vpop.f32.mrf.mxu1  ;;  %v7578_v2 = vld [vmem:[#allocation15_spill] sm:$0xff] }
 0x28c   : > { %v2963_v56 = vmul.f32 2.0, %v2939_v16  ;;  %v6946_v13 = vmul.f32 %v6866_v58, %v2986_v11  ;;  %3287 = vadd.xlane.f32.xlu0 %v3286_v46  ;;  %v3316_v4 = vsel %vm568_vm0, %v3076_v14, 0.0  ;;  %v3317_v21 = vsel %vm568_vm0, %v3077_v59, 0.0  ;;  %v7579_v58 = vld [vmem:[#allocation31_spill] sm:$0xff] }
 0x28d   : > { %v3270_v31 = vadd.f32 %v3269_v8, %v3268_v43  ;;  %v3245_v47 = vmul.f32 %v7577_v52, %v3149_v34  ;;  %v3080_v9 = vmul.f32 %v6869_v45, %v2984_v26  ;;  %v2961_v18 = vmul.f32 2.0, %v2937_v23  ;;  %v2695_v22 = vpop.f32.mrf.mxu1 }
 0x28e   : > { %v2987_v51 = vadd.f32 0.0009, %v2963_v56  ;;  %5209 = vrcp.f32 %v6884_v29  ;;  %v6955_v15 = vmul.f32 %v7578_v2, %v6946_v13  ;;  %v2942_v5 = vsub.f32 %v4988_v57, %v7579_v58 }
 0x28f   : > { %v3318_v8 = vadd.f32 %v3317_v21, %v3316_v4  ;;  %v3152_v14 = vmul.f32 %v6744_v37, %v3080_v9  ;;  %v2985_v16 = vadd.f32 0.0009, %v2961_v18  ;;  %v3319_v45 = vsel %vm568_vm0, %v3078_v10, 0.0  ;;  %v4989_v46 = vpop.f32.mrf.mxu1 }
 0x290   : > { %v6960_v59 = vmul.f32 %v6877_v30, %v2987_v51  ;;  %v2966_v11 = vmul.f32 2.0, %v2942_v5  ;;  %3271 = vadd.xlane.f32.xlu0 %v3270_v31  ;;  %v2940_v29 = vsub.f32 %v2695_v22, %v7520_v61  ;;  %v3321_v43 = vsel %vm568_vm0, %v3079_v55, 0.0  ;;  %v7581_v61 = vld [vmem:[#allocation28_spill] sm:$0xff]  ;;  %v7582_v51 = vld [vmem:[#allocation13_spill] sm:$0xff] }
 0x291   : > { %v3320_v62 = vadd.f32 %v3319_v45, %v3318_v8  ;;  %v6966_v39 = vmul.f32 %v7580_v1, %v3152_v14  ;;  %v3081_v30 = vmul.f32 %v6880_v44, %v2985_v16  ;;  %v2943_v34 = vsub.f32 %v4989_v46, %v7526_v7  ;;  %v2698_v23 = vpop.f32.mrf.mxu1 }
 0x292   : > { %v6970_v37 = vmul.f32 %v6746_v35, %v6960_v59  ;;  %v2990_v10 = vadd.f32 0.0009, %v2966_v11  ;;  %v2964_v26 = vmul.f32 2.0, %v2940_v29  ;;  %v3246_v57 = vmul.f32 %v7581_v61, %v6923_v48 }
 0x293   : > { %v3322_v56 = vadd.f32 %v3321_v43, %v3320_v62  ;;  %v3354_v55 = vsel %vm568_vm0, %v3080_v9, 0.0  ;;  %v3153_v31 = vmul.f32 %v6755_v54, %v3081_v30  ;;  %v2967_v4 = vmul.f32 2.0, %v2943_v34  ;;  %v4996_v52 = vpop.f32.mrf.mxu1 }
 0x294   : > { %v2941_v21 = vsub.f32 %v2698_v23, %v6770_v6  ;;  %v3355_v35 = vsel %vm568_vm0, %v3081_v30, 0.0  ;;  %v6981_v44 = vmul.f32 %v6887_v36, %v2990_v10  ;;  %v2988_v7 = vadd.f32 0.0009, %v2964_v26 }
 0x295   : > { %3323 = vadd.xlane.f32.xlu1 %v3322_v56  ;;  %v3247_v18 = vmul.f32 %v7582_v51, %v3151_v27  ;;  %v3249_v2 = vmul.f32 %v6742_v3, %v3153_v31  ;;  %v2991_v48 = vadd.f32 0.0009, %v2967_v4  ;;  %v2946_v9 = vsub.f32 %v4996_v52, %v7536_v41  ;;  %v2744_v22 = vpop.f32.mrf.mxu1  ;;  %v7585_v4 = vld [vmem:[#allocation55_spill] sm:$0xff] }
 0x296   : > { %v2965_v58 = vmul.f32 2.0, %v2941_v21  ;;  %v6988_v54 = vmul.f32 %v6757_v28, %v6981_v44  ;;  %v3084_v6 = vmul.f32 %v6891_v49, %v2988_v7  ;;  %v3300_v36 = vsel %vm568_vm0, %v6936_v40, 0.0 }
 0x297   : > { %v3301_v5 = vsel %vm568_vm0, %v3245_v47, 0.0  ;;  %v6995_v27 = vmul.f32 %v6896_v19, %v2991_v48  ;;  %v2970_v8 = vmul.f32 2.0, %v2946_v9  ;;  %v3303_v16 = vsel %vm568_vm0, %v3246_v57, 0.0  ;;  %v4997_v45 = vpop.f32.mrf.mxu1  ;;  %v7584_v57 = vld [vmem:[#allocation29_spill] sm:$0xff] }
 0x298   : > { %v2989_v3 = vadd.f32 0.0009, %v2965_v58  ;;  %v3302_v14 = vadd.f32 %v3301_v5, %v3300_v36  ;;  %v3156_v41 = vmul.f32 %v6795_v20, %v3084_v6  ;;  %v3305_v28 = vsel %vm568_vm0, %v3247_v18, 0.0  ;;  %v7588_v18 = vld [vmem:[#allocation53_spill] sm:$0xff] }
 0x299   : > { %v2944_v49 = vsub.f32 %v2744_v22, %v7540_v12  ;;  %v7003_v40 = vmul.f32 %v6805_v33, %v6995_v27  ;;  %v2994_v19 = vadd.f32 0.0009, %v2970_v8  ;;  %v2947_v20 = vsub.f32 %v4997_v45, %v7545_v60  ;;  %v2747_v43 = vpop.f32.mrf.mxu1  ;;  %v7589_v8 = vld [vmem:[#allocation69_spill] sm:$0xff]  ;;  %v7592_v45 = vld [vmem:[#allocation58_spill] sm:$0xff] }
 0x29a   : > { %v3085_v47 = vmul.f32 %v6901_v42, %v2989_v3  ;;  %v3304_v11 = vadd.f32 %v3303_v16, %v3302_v14  ;;  %v7007_v29 = vmul.f32 %v6753_v24, %v3156_v41  ;;  %v3356_v62 = vadd.f32 %v3355_v35, %v3354_v55 }
 0x29b   : > { %v2968_v46 = vmul.f32 2.0, %v2944_v49  ;;  %v7010_v1 = vpop.eup %5209  ;;  %v3392_v12 = vsel %vm568_vm0, %v3084_v6, 0.0  ;;  %v7015_v33 = vmul.f32 %v6906_v50, %v2994_v19  ;;  %v2971_v10 = vmul.f32 2.0, %v2947_v20  ;;  %v5004_v26 = vpop.f32.mrf.mxu1  ;;  %v7583_v50 = vld [vmem:[#allocation48_spill] sm:$0xff] }
 0x29c   : > { %v3157_v30 = vmul.f32 %v6816_v53, %v3085_v47  ;;  %v3306_v42 = vadd.f32 %v3305_v28, %v3304_v11  ;;  %v3357_v24 = vsel %vm568_vm0, %v6946_v13, 0.0  ;;  %v3359_v60 = vsel %vm568_vm0, %v6960_v59, 0.0  ;;  %v7586_v13 = vld [vmem:[#allocation52_spill] sm:$0xff] }
 0x29d   : > { %v2992_v34 = vadd.f32 0.0009, %v2968_v46  ;;  %v7024_v23 = vmul.f32 %v6837_v38, %v7015_v33  ;;  %v3358_v53 = vadd.f32 %v3357_v24, %v3356_v62  ;;  %v2945_v61 = vsub.f32 %v2747_v43, %v7583_v50  ;;  %v2793_v59 = vpop.f32.mrf.mxu1  ;;  %v7587_v38 = vld [vmem:[#allocation68_spill] sm:$0xff] }
 0x29e   : > { %v3253_v56 = vmul.f32 %v6773_v32, %v3157_v30  ;;  %3307 = vadd.xlane.f32.xlu1 %v3306_v42  ;;  %v2995_v31 = vadd.f32 0.0009, %v2971_v10  ;;  %v2950_v21 = vsub.f32 %v5004_v26, %v7585_v4  ;;  %v3250_v35 = vmul.f32 %v7586_v13, %v6955_v15  ;;  %v7594_v30 = vld [vmem:[#allocation71_spill] sm:$0xff]  ;;  %v7596_v50 = vld [vmem:[#allocation64_spill] sm:$0xff] }
 0x29f   : > { %v3088_v55 = vmul.f32 %v7584_v57, %v2992_v34  ;;  %v3393_v7 = vsel %vm568_vm0, %v3085_v47, 0.0  ;;  %v3360_v32 = vadd.f32 %v3359_v60, %v3358_v53  ;;  %v2969_v52 = vmul.f32 2.0, %v2945_v61  ;;  %v5005_v36 = vpop.f32.mrf.mxu1  ;;  %v7595_v60 = vld [vmem:[#allocation25_spill] sm:$0xff] }
 0x2a0   : > { %v3251_v51 = vmul.f32 %v7587_v38, %v6970_v37  ;;  %v3091_v58 = vmul.f32 %v6916_v25, %v2995_v31  ;;  %v2974_v9 = vmul.f32 2.0, %v2950_v21  ;;  %v3338_v6 = vsel %vm568_vm0, %v6966_v39, 0.0  ;;  %v7590_v37 = vld [vmem:[#allocation72_spill] sm:$0xff]  ;;  %v7591_v25 = vld [vmem:[#allocation34_spill] sm:$0xff]  ;;  %v7593_v39 = vld [vmem:[#allocation61_spill] sm:$0xff] }
 0x2a1   : > { %v3160_v48 = vmul.f32 %v7588_v18, %v3088_v55  ;;  %v2993_v5 = vadd.f32 0.0009, %v2969_v52  ;;  %v3339_v15 = vsel %vm568_vm0, %v3249_v2, 0.0  ;;  %v3341_v22 = vsel %vm568_vm0, %v3250_v35, 0.0  ;;  %v2796_v46 = vpop.f32.mrf.mxu1 }
 0x2a2   : > { %3361 = vadd.xlane.f32.xlu1 %v3360_v32  ;;  %v3343_v3 = vsel %vm568_vm0, %v3251_v51, 0.0  ;;  %v3163_v41 = vmul.f32 %v7590_v37, %v3091_v58  ;;  %v2998_v16 = vadd.f32 0.0009, %v2974_v9  ;;  %v3340_v28 = vadd.f32 %v3339_v15, %v3338_v6  ;;  %v7600_v9 = vld [vmem:[#allocation56_spill] sm:$0xff]  ;;  %v7603_v37 = vld [vmem:[#allocation41_spill] sm:$0xff] }
 0x2a3   : > { %v3256_v14 = vmul.f32 %v7589_v8, %v3160_v48  ;;  %v3089_v49 = vmul.f32 %v7591_v25, %v2993_v5  ;;  %v2948_v47 = vsub.f32 %v2793_v59, %v7592_v45  ;;  %v2951_v19 = vsub.f32 %v5005_v36, %v7593_v39  ;;  %v7599_v59 = vld [vmem:[#allocation19_spill] sm:$0xff]  ;;  %v7601_v36 = vld [vmem:[#allocation30_spill] sm:$0xff] }
 0x2a4   : > { %v3394_v11 = vadd.f32 %v3393_v7, %v3392_v12  ;;  %v3094_v2 = vmul.f32 %v6927_v0, %v2998_v16  ;;  %v3342_v20 = vadd.f32 %v3341_v22, %v3340_v28  ;;  %v3395_v62 = vsel %vm568_vm0, %v6981_v44, 0.0  ;;  %v7597_v0 = vld [vmem:[#allocation22_spill] sm:$0xff]  ;;  %v7598_v44 = vld [vmem:[#allocation16_spill] sm:$0xff] }
 0x2a5   : > { %v3397_v43 = vsel %vm568_vm0, %v6995_v27, 0.0  ;;  %v3161_v42 = vmul.f32 %v7594_v30, %v3089_v49  ;;  %v3431_v34 = vsel %vm568_vm0, %v3089_v49, 0.0  ;;  %v2972_v10 = vmul.f32 2.0, %v2948_v47  ;;  %v7602_v22 = vld [vmem:[#allocation70_spill] sm:$0xff]  ;;  %v7605_v49 = vld [vmem:[#allocation59_spill] sm:$0xff] }
 0x2a6   : > { %v2975_v24 = vmul.f32 2.0, %v2951_v19  ;;  %v3166_v26 = vmul.f32 %v7595_v60, %v3094_v2  ;;  %v3344_v53 = vadd.f32 %v3343_v3, %v3342_v20  ;;  %v3396_v12 = vadd.f32 %v3395_v62, %v3394_v11  ;;  %v7604_v28 = vld [vmem:[#allocation18_spill] sm:$0xff] }
 0x2a7   : > { %v2949_v61 = vsub.f32 %v2796_v46, %v7596_v50  ;;  %v3257_v57 = vmul.f32 %v7597_v0, %v3161_v42  ;;  %v2996_v31 = vadd.f32 0.0009, %v2972_v10  ;;  %v3254_v21 = vmul.f32 %v7598_v44, %v6988_v54  ;;  %v7606_v46 = vld [vmem:[#allocation26_spill] sm:$0xff]  ;;  %v7608_v42 = vld [vmem:[#allocation21_spill] sm:$0xff] }
 0x2a8   : > { %v2999_v4 = vadd.f32 0.0009, %v2975_v24  ;;  %v3430_v27 = vsel %vm568_vm0, %v3088_v55, 0.0  ;;  %3345 = vadd.xlane.f32.xlu0 %v3344_v53  ;;  %v3398_v13 = vadd.f32 %v3397_v43, %v3396_v12  ;;  %v3255_v7 = vmul.f32 %v7599_v59, %v7003_v40  ;;  %v7607_v43 = vld [vmem:[#allocation45_spill] sm:$0xff] }
 0x2a9   : > { %v2973_v35 = vmul.f32 2.0, %v2949_v61  ;;  %v3092_v32 = vmul.f32 %v6933_v17, %v2996_v31  ;;  %v3376_v38 = vsel %vm568_vm0, %v7007_v29, 0.0  ;;  %v3377_v51 = vsel %vm568_vm0, %v3253_v56, 0.0 }
 0x2aa   : > { %v3095_v52 = vmul.f32 %v6941_v63, %v2999_v4  ;;  %3399 = vadd.xlane.f32.xlu1 %v3398_v13  ;;  %v3378_v54 = vadd.f32 %v3377_v51, %v3376_v38  ;;  %v3379_v55 = vsel %vm568_vm0, %v3254_v21, 0.0  ;;  %v3432_v48 = vadd.f32 %v3431_v34, %v3430_v27 }
 0x2ab   : > { %v2997_v18 = vadd.f32 0.0009, %v2973_v35  ;;  %v3164_v6 = vmul.f32 %v7600_v9, %v3092_v32  ;;  %v3381_v40 = vsel %vm568_vm0, %v3255_v7, 0.0  ;;  %v3433_v17 = vsel %vm568_vm0, %v7015_v33, 0.0 }
 0x2ac   : > { %v3167_v5 = vmul.f32 %v7601_v36, %v3095_v52  ;;  %v3468_v63 = vsel %vm568_vm0, %v3092_v32, 0.0  ;;  %v3380_v56 = vadd.f32 %v3379_v55, %v3378_v54  ;;  %v3434_v15 = vadd.f32 %v3433_v17, %v3432_v48 }
 0x2ad   : > { %v3093_v29 = vmul.f32 %v7010_v1, %v2997_v18  ;;  %v3260_v3 = vmul.f32 %v7602_v22, %v3164_v6  ;;  %v3435_v8 = vsel %vm568_vm0, %v3091_v58, 0.0  ;;  %v3258_v16 = vmul.f32 %v7603_v37, %v7024_v23 }
 0x2ae   : > { %v3259_v25 = vmul.f32 %v7604_v28, %v3163_v41  ;;  %v3382_v33 = vadd.f32 %v3381_v40, %v3380_v56  ;;  %v3436_v39 = vadd.f32 %v3435_v8, %v3434_v15  ;;  %v3414_v19 = vsel %vm568_vm0, %v3256_v14, 0.0 }
 0x2af   : > { %v3165_v45 = vmul.f32 %v7605_v49, %v3093_v29  ;;  %v3469_v47 = vsel %vm568_vm0, %v3093_v29, 0.0  ;;  %v3415_v1 = vsel %vm568_vm0, %v3257_v57, 0.0  ;;  %v3471_v23 = vsel %vm568_vm0, %v3094_v2, 0.0 }
 0x2b0   : > { %v3470_v11 = vadd.f32 %v3469_v47, %v3468_v63  ;;  %3383 = vadd.xlane.f32.xlu0 %v3382_v33  ;;  %3437 = vadd.xlane.f32.xlu1 %v3436_v39  ;;  %v3416_v58 = vadd.f32 %v3415_v1, %v3414_v19  ;;  %v3417_v41 = vsel %vm568_vm0, %v3258_v16, 0.0  ;;  %v3262_v30 = vmul.f32 %v7607_v43, %v3166_v26 }
 0x2b1   : > { %v3261_v20 = vmul.f32 %v7606_v46, %v3165_v45  ;;  %v3263_v34 = vmul.f32 %v7608_v42, %v3167_v5  ;;  %v3473_v14 = vsel %vm568_vm0, %v3095_v52, 0.0  ;;  %v3452_v24 = vsel %vm568_vm0, %v3260_v3, 0.0 }
 0x2b2   : > { %v3472_v62 = vadd.f32 %v3471_v23, %v3470_v11  ;;  %v3418_v10 = vadd.f32 %v3417_v41, %v3416_v58  ;;  %v3419_v53 = vsel %vm568_vm0, %v3259_v25, 0.0  ;;  %v3455_v61 = vsel %vm568_vm0, %v3262_v30, 0.0 }
 0x2b3   : > { %v3453_v60 = vsel %vm568_vm0, %v3261_v20, 0.0  ;;  %v3457_v26 = vsel %vm568_vm0, %v3263_v34, 0.0 }
 0x2b4   : > { %v3474_v12 = vadd.f32 %v3473_v14, %v3472_v62  ;;  %v3454_v50 = vadd.f32 %v3453_v60, %v3452_v24  ;;  %v3420_v2 = vadd.f32 %v3419_v53, %v3418_v10 }
 0x2b6   : > { %3475 = vadd.xlane.f32.xlu1 %v3474_v12  ;;  %v3456_v0 = vadd.f32 %v3455_v61, %v3454_v50  ;;  %3421 = vadd.xlane.f32.xlu0 %v3420_v2 }
 0x2b8   : > { %v3458_v57 = vadd.f32 %v3457_v26, %v3456_v0 }
 0x2ba   : > { %3459 = vadd.xlane.f32.xlu0 %v3458_v57 }
 0x2f1   : > { %v5012_v31 = vpop.f32.mrf.mxu0  ;;  %v5028_v44 = vpop.f32.mrf.mxu1 }
 0x2f2   : > { %v4420_v4 = vpack.c.bf16 %v5012_v31, %v5012_v31  ;;  %v4432_v27 = vpack.c.bf16 %v5028_v44, %v5028_v44 }
 0x2f3   : > { %v3635_v21 = vpop.f32.mrf.mxu0  ;;  %v3872_v35 = vpop.f32.mrf.mxu1 }
 0x2f4   : > { %3733 = vst.msk [vmem:[%s7098_s12 + $0x8] sm:$0xf] %vm3730_vm1, %v4420_v4  ;;  %v4418_v13 = vpack.c.bf16 %v3635_v21, %v3635_v21  ;;  %3969 = vst.msk [vmem:[%s7103_s18 + $0x8] sm:$0xf] %vm3730_vm1, %v4432_v27  ;;  %v4430_v7 = vpack.c.bf16 %v3872_v35, %v3872_v35 }
 0x2f5   : > { %v5013_v59 = vpop.f32.mrf.mxu0  ;;  %v5029_v52 = vpop.f32.mrf.mxu1 }
 0x2f6   : > { %3731 = vst.msk [vmem:[%s7098_s12] sm:$0xf] %vm3730_vm1, %v4418_v13  ;;  %v4421_v32 = vpack.c.bf16 %v5013_v59, %v5013_v59  ;;  %3967 = vst.msk [vmem:[%s7103_s18] sm:$0xf] %vm3730_vm1, %v4430_v7  ;;  %v4433_v51 = vpack.c.bf16 %v5029_v52, %v5029_v52 }
 0x2f7   : > { %v3638_v38 = vpop.f32.mrf.mxu0  ;;  %v3875_v54 = vpop.f32.mrf.mxu1 }
 0x2f8   : > { %3734 = vst.msk [vmem:[%s7098_s12 + $0xc] sm:$0xf] %vm3730_vm1, %v4421_v32  ;;  %v4419_v18 = vpack.c.bf16 %v3638_v38, %v3638_v38  ;;  %3970 = vst.msk [vmem:[%s7103_s18 + $0xc] sm:$0xf] %vm3730_vm1, %v4433_v51  ;;  %v4431_v48 = vpack.c.bf16 %v3875_v54, %v3875_v54 }
 0x2f9   : > { %v5016_v55 = vpop.f32.mrf.mxu0  ;;  %v5032_v6 = vpop.f32.mrf.mxu1 }
 0x2fa   : > { %3732 = vst.msk [vmem:[%s7098_s12 + $0x4] sm:$0xf] %vm3730_vm1, %v4419_v18  ;;  %v4424_v9 = vpack.c.bf16 %v5016_v55, %v5016_v55  ;;  %3968 = vst.msk [vmem:[%s7103_s18 + $0x4] sm:$0xf] %vm3730_vm1, %v4431_v48  ;;  %v4436_v5 = vpack.c.bf16 %v5032_v6, %v5032_v6 }
 0x2fb   : > { %v3651_v36 = vpop.f32.mrf.mxu0  ;;  %v3888_v17 = vpop.f32.mrf.mxu1 }
 0x2fc   : > { %3737 = vst.msk [vmem:[%s7098_s12 + $0x18] sm:$0xf] %vm3730_vm1, %v4424_v9  ;;  %v4422_v40 = vpack.c.bf16 %v3651_v36, %v3651_v36  ;;  %3973 = vst.msk [vmem:[%s7103_s18 + $0x18] sm:$0xf] %vm3730_vm1, %v4436_v5  ;;  %v4434_v29 = vpack.c.bf16 %v3888_v17, %v3888_v17 }
 0x2fd   : > { %v5017_v63 = vpop.f32.mrf.mxu0  ;;  %v5033_v15 = vpop.f32.mrf.mxu1 }
 0x2fe   : > { %3735 = vst.msk [vmem:[%s7098_s12 + $0x10] sm:$0xf] %vm3730_vm1, %v4422_v40  ;;  %v4425_v56 = vpack.c.bf16 %v5017_v63, %v5017_v63  ;;  %3971 = vst.msk [vmem:[%s7103_s18 + $0x10] sm:$0xf] %vm3730_vm1, %v4434_v29  ;;  %v4437_v3 = vpack.c.bf16 %v5033_v15, %v5033_v15 }
 0x2ff   : > { %v3654_v22 = vpop.f32.mrf.mxu0  ;;  %v3891_v37 = vpop.f32.mrf.mxu1 }
 0x300   : > { %3738 = vst.msk [vmem:[%s7098_s12 + $0x1c] sm:$0xf] %vm3730_vm1, %v4425_v56  ;;  %v4423_v8 = vpack.c.bf16 %v3654_v22, %v3654_v22  ;;  %3974 = vst.msk [vmem:[%s7103_s18 + $0x1c] sm:$0xf] %vm3730_vm1, %v4437_v3  ;;  %v4435_v28 = vpack.c.bf16 %v3891_v37, %v3891_v37 }
 0x301   : > { %v5020_v16 = vpop.f32.mrf.mxu0  ;;  %v5036_v49 = vpop.f32.mrf.mxu1 }
 0x302   : > { %3736 = vst.msk [vmem:[%s7098_s12 + $0x14] sm:$0xf] %vm3730_vm1, %v4423_v8  ;;  %v4428_v25 = vpack.c.bf16 %v5020_v16, %v5020_v16  ;;  %3972 = vst.msk [vmem:[%s7103_s18 + $0x14] sm:$0xf] %vm3730_vm1, %v4435_v28  ;;  %v4440_v47 = vpack.c.bf16 %v5036_v49, %v5036_v49 }
 0x303   : > { %v3667_v45 = vpop.f32.mrf.mxu0  ;;  %v3904_v39 = vpop.f32.mrf.mxu1 }
 0x304   : > { %3741 = vst.msk [vmem:[%s7098_s12 + $0x28] sm:$0xf] %vm3730_vm1, %v4428_v25  ;;  %v4426_v33 = vpack.c.bf16 %v3667_v45, %v3667_v45  ;;  %3977 = vst.msk [vmem:[%s7103_s18 + $0x28] sm:$0xf] %vm3730_vm1, %v4440_v47  ;;  %v4438_v1 = vpack.c.bf16 %v3904_v39, %v3904_v39 }
 0x305   : > { %v5021_v19 = vpop.f32.mrf.mxu0  ;;  %v5037_v46 = vpop.f32.mrf.mxu1 }
 0x306   : > { %3739 = vst.msk [vmem:[%s7098_s12 + $0x20] sm:$0xf] %vm3730_vm1, %v4426_v33  ;;  %v4429_v11 = vpack.c.bf16 %v5021_v19, %v5021_v19  ;;  %3975 = vst.msk [vmem:[%s7103_s18 + $0x20] sm:$0xf] %vm3730_vm1, %v4438_v1  ;;  %v4441_v58 = vpack.c.bf16 %v5037_v46, %v5037_v46 }
 0x307   : > { %v3670_v20 = vpop.f32.mrf.mxu0  ;;  %v3907_v41 = vpop.f32.mrf.mxu1 }
 0x308   : > { %3742 = vst.msk [vmem:[%s7098_s12 + $0x2c] sm:$0xf] %vm3730_vm1, %v4429_v11  ;;  %v4427_v23 = vpack.c.bf16 %v3670_v20, %v3670_v20  ;;  %3978 = vst.msk [vmem:[%s7103_s18 + $0x2c] sm:$0xf] %vm3730_vm1, %v4441_v58  ;;  %v4439_v62 = vpack.c.bf16 %v3907_v41, %v3907_v41 }
 0x30a   : > { %3740 = vst.msk [vmem:[%s7098_s12 + $0x24] sm:$0xf] %vm3730_vm1, %v4427_v23  ;;  %3976 = vst.msk [vmem:[%s7103_s18 + $0x24] sm:$0xf] %vm3730_vm1, %v4439_v62  ;;  %s4008_s18 = sshll.u32 %s7157_s23, 4  ;;  %s7172_s18 = int_to_ptr.vmem [resolvable:$true] %s4008_s18 }
 0x315   : > { %v3288_v43 = vpop.xlane.xlu0 %3287 }
 0x316   : > { %v3289_v30 = vrot.slane %v3288_v43, 4 }
 0x318   : > { %v3290_v42 = vadd.f32 %v3289_v30, %v3288_v43 }
 0x319   : > { %v3272_v34 = vpop.xlane.xlu0 %3271 }
 0x31a   : > { %v3291_v10 = vrot.slane %v3290_v42, 2  ;;  %v3273_v14 = vrot.slane %v3272_v34, 4 }
 0x31c   : > { %v3274_v24 = vadd.f32 %v3273_v14, %v3272_v34  ;;  %v3292_v53 = vadd.f32 %v3291_v10, %v3290_v42 }
 0x31e   : > { %v3324_v60 = vpop.xlane.xlu1 %3323  ;;  %v3275_v12 = vrot.slane %v3274_v24, 2  ;;  %v3293_v61 = vrot.slane %v3292_v53, 1 }
 0x31f   : > { %v3325_v50 = vrot.slane %v3324_v60, 4 }
 0x320   : > { %v3276_v2 = vadd.f32 %v3275_v12, %v3274_v24  ;;  %v3294_v31 = vadd.f32 %v3293_v61, %v3292_v53 }
 0x321   : > { %v3326_v0 = vadd.f32 %v3325_v50, %v3324_v60 }
 0x322   : > { %v3277_v26 = vrot.slane %v3276_v2, 1 }
 0x323   : > { %v3327_v4 = vrot.slane %v3326_v0, 2 }
 0x324   : > { %v3278_v57 = vadd.f32 %v3277_v26, %v3276_v2 }
 0x325   : > { %v3328_v35 = vadd.f32 %v3327_v4, %v3326_v0 }
 0x326   : > { %5039 = vpush %v3278_v57 }
 0x327   : > { %v3308_v44 = vpop.xlane.xlu1 %3307  ;;  %5041 = vpush %v3294_v31  ;;  %v3329_v38 = vrot.slane %v3328_v35, 1 }
 0x328   : > { %v3309_v21 = vrot.slane %v3308_v44, 4 }
 0x329   : > { %v3330_v9 = vadd.f32 %v3329_v38, %v3328_v35 }
 0x32a   : > { %v3310_v27 = vadd.f32 %v3309_v21, %v3308_v44 }
 0x32b   : > { %v3362_v13 = vpop.xlane.xlu1 %3361 }
 0x32c   : > { %v3311_v59 = vrot.slane %v3310_v27, 2  ;;  %v3363_v7 = vrot.slane %v3362_v13, 4 }
 0x32e   : > { %v3364_v32 = vadd.f32 %v3363_v7, %v3362_v13  ;;  %v3312_v52 = vadd.f32 %v3311_v59, %v3310_v27 }
 0x330   : > { %v3313_v51 = vrot.slane %v3312_v52, 1  ;;  %v3365_v18 = vrot.slane %v3364_v32, 2 }
 0x331   : > { %v3346_v54 = vpop.xlane.xlu0 %3345 }
 0x332   : > { %v3314_v55 = vadd.f32 %v3313_v51, %v3312_v52  ;;  %v3347_v48 = vrot.slane %v3346_v54, 4  ;;  %v3366_v40 = vadd.f32 %v3365_v18, %v3364_v32 }
 0x333   : > { %v3400_v6 = vpop.xlane.xlu1 %3399 }
 0x334   : > { %5043 = vpush %v3314_v55  ;;  %v3348_v36 = vadd.f32 %v3347_v48, %v3346_v54  ;;  %v3401_v5 = vrot.slane %v3400_v6, 4  ;;  %v3367_v3 = vrot.slane %v3366_v40, 1 }
 0x335   : > { %5045 = vpush %v3330_v9 }
 0x336   : > { %v3349_v17 = vrot.slane %v3348_v36, 2  ;;  %v3402_v63 = vadd.f32 %v3401_v5, %v3400_v6  ;;  %v3368_v45 = vadd.f32 %v3367_v3, %v3366_v40 }
 0x338   : > { %v3350_v29 = vadd.f32 %v3349_v17, %v3348_v36  ;;  %v3403_v56 = vrot.slane %v3402_v63, 2 }
 0x339   : > { %v3384_v15 = vpop.xlane.xlu0 %3383  ;;  %v3438_v22 = vpop.xlane.xlu1 %3437 }
 0x33a   : > { %v3385_v8 = vrot.slane %v3384_v15, 4  ;;  %v3439_v37 = vrot.slane %v3438_v22, 4  ;;  %v3351_v16 = vrot.slane %v3350_v29, 1  ;;  %v3404_v47 = vadd.f32 %v3403_v56, %v3402_v63 }
 0x33c   : > { %v3386_v28 = vadd.f32 %v3385_v8, %v3384_v15  ;;  %v3440_v25 = vadd.f32 %v3439_v37, %v3438_v22  ;;  %v3352_v49 = vadd.f32 %v3351_v16, %v3350_v29  ;;  %v3405_v23 = vrot.slane %v3404_v47, 1 }
 0x33e   : > { %v3387_v33 = vrot.slane %v3386_v28, 2  ;;  %5047 = vpush %v3352_v49  ;;  %v3441_v19 = vrot.slane %v3440_v25, 2  ;;  %v3406_v24 = vadd.f32 %v3405_v23, %v3404_v47 }
 0x33f   : > { %v3476_v39 = vpop.xlane.xlu1 %3475  ;;  %5049 = vpush %v3368_v45  ;;  %v3422_v1 = vpop.xlane.xlu0 %3421 }
 0x340   : > { %v3477_v11 = vrot.slane %v3476_v39, 4  ;;  %v3423_v46 = vrot.slane %v3422_v1, 4  ;;  %v3388_v20 = vadd.f32 %v3387_v33, %v3386_v28  ;;  %v3442_v42 = vadd.f32 %v3441_v19, %v3440_v25 }
 0x342   : > { %v3478_v58 = vadd.f32 %v3477_v11, %v3476_v39  ;;  %v3424_v41 = vadd.f32 %v3423_v46, %v3422_v1  ;;  %v3389_v62 = vrot.slane %v3388_v20, 1  ;;  %v3443_v50 = vrot.slane %v3442_v42, 1 }
 0x343   : > { %v3460_v30 = vpop.xlane.xlu0 %3459 }
 0x344   : > { %v3479_v43 = vrot.slane %v3478_v58, 2  ;;  %v3425_v34 = vrot.slane %v3424_v41, 2  ;;  %v3390_v10 = vadd.f32 %v3389_v62, %v3388_v20  ;;  %v3461_v14 = vrot.slane %v3460_v30, 4 }
 0x345   : > { %v3444_v57 = vadd.f32 %v3443_v50, %v3442_v42 }
 0x346   : > { %5051 = vpush %v3390_v10  ;;  %v3462_v60 = vadd.f32 %v3461_v14, %v3460_v30  ;;  %v3426_v53 = vadd.f32 %v3425_v34, %v3424_v41  ;;  %v3480_v12 = vadd.f32 %v3479_v43, %v3478_v58 }
 0x347   : > { %5053 = vpush %v3406_v24 }
 0x348   : > { %v3463_v2 = vrot.slane %v3462_v60, 2  ;;  %v3427_v61 = vrot.slane %v3426_v53, 1  ;;  %v3481_v31 = vrot.slane %v3480_v12, 1 }
 0x34a   : > { %v3464_v0 = vadd.f32 %v3463_v2, %v3462_v60  ;;  %v3428_v26 = vadd.f32 %v3427_v61, %v3426_v53  ;;  %v3482_v21 = vadd.f32 %v3481_v31, %v3480_v12 }
 0x34c   : > { %5055 = vpush %v3428_v26  ;;  %v3465_v4 = vrot.slane %v3464_v0, 1 }
 0x34d   : > { %5057 = vpush %v3444_v57 }
 0x34e   : > { %v3466_v44 = vadd.f32 %v3465_v4, %v3464_v0 }
 0x350   : > { %5059 = vpush %v3466_v44 }
 0x351   : > { %5061 = vpush %v3482_v21 }
 0x357   : > { %s5040_s21 = spop %5039 }
 0x358   : > { %v3296_v27 = vstv %s5040_s21  ;;  %s5042_s22 = spop %5041 }
 0x359   : > { %3297 = vst [vmem:[%s7157_s23] sm:$0x1] %v3296_v27  ;;  %v3298_v13 = vstv %s5042_s22  ;;  %s4442_s22 = smul.u32 96, %s5373_s9 }
 0x35a   : > { %3299 = vst [vmem:[%s7160_s24] sm:$0x1] %v3298_v13 }
 0x35b   : > { %s7186_s0 = scalar_lea.hbm %s7263_s6, %s4442_s22 }
 0x365   : > { %s5044_s25 = spop %5043 }
 0x366   : > { %v3332_v35 = vstv %s5044_s25  ;;  %s5046_s26 = spop %5045 }
 0x367   : > { %4320 = vst [vmem:[%s7157_s23 + $0x1] sm:$0x1] %v3332_v35  ;;  %v3335_v59 = vstv %s5046_s26 }
 0x368   : > { %4321 = vst [vmem:[%s7160_s24 + $0x1] sm:$0x1] %v3335_v59 }
 0x36f   : > { %s5048_s10 = spop %5047 }
 0x370   : > { %v3370_v7 = vstv %s5048_s10  ;;  %s5050_s12 = spop %5049  ;;  %s5303_s10 = smov [#allocation2]  }
 0x371   : > { %4322 = vst [vmem:[%s7157_s23 + $0x2] sm:$0x1] %v3370_v7  ;;  %v3373_v32 = vstv %s5050_s12  ;;  %s5215_s12 = sshll.u32 %s5303_s10, 4  ;;  %s5216_s12 = int_to_ptr.vmem [resolvable:$false] %s5215_s12 }
 0x372   : > { %4323 = vst [vmem:[%s7160_s24 + $0x2] sm:$0x1] %v3373_v32  ;;  %s5217_s2 = scalar_lea.vmem %s5216_s12, 192  ;;  %p5218_p1 = scmp.lt.s32.totalorder %s7172_s18, %s5216_s12 }
 0x377   : > { %s5052_s13 = spop %5051 }
 0x378   : > { %v3408_v52 = vstv %s5052_s13  ;;  %s5054_s17 = spop %5053  ;;  %s7181_s13 = scalar_lea.hbm %s7262_s5, %s4442_s22 }
 0x379   : > { %4324 = vst [vmem:[%s7157_s23 + $0x3] sm:$0x1] %v3408_v52  ;;  %v3411_v38 = vstv %s5054_s17 }
 0x37a   : > { %4325 = vst [vmem:[%s7160_s24 + $0x3] sm:$0x1] %v3411_v38 }
 0x37d   : > { %s5056_s21 = spop %5055 }
 0x37e   : > { %v3446_v51 = vstv %s5056_s21  ;;  %s5058_s25 = spop %5057 }
 0x37f   : > { %4326 = vst [vmem:[%s7157_s23 + $0x4] sm:$0x1] %v3446_v51  ;;  %v3449_v18 = vstv %s5058_s25  ;;  %s5211_s25 = scalar_lea.vmem %s7172_s18, 96 }
 0x380   : > { %4327 = vst [vmem:[%s7160_s24 + $0x4] sm:$0x1] %v3449_v18  ;;  %p5212_p12 = scmp.ne.s32.totalorder %s7172_s18, %s5211_s25  ;;  %p5219_p2 = scmp.lt.s32.totalorder %s5217_s2, %s5211_s25 }
 0x381   : > { %s5060_s26 = spop %5059 }
 0x382   : > { %v3484_v54 = vstv %s5060_s26  ;;  %s5062_s9 = spop %5061  ;;  %p5213_p13 = pnand %p5212_p12, %p5390_p5 }
 0x383   : > { %4328 = vst [vmem:[%s7157_s23 + $0x5] sm:$0x1] %v3484_v54  ;;  %v3487_v55 = vstv %s5062_s9  ;;  %p5220_p3 = por %p5219_p2, %p5218_p1 }
 0x384   : > { %4329 = vst [vmem:[%s7160_s24 + $0x5] sm:$0x1] %v3487_v55  ;;  %p5214_p0 = pneg %p5213_p13 }
 0x386   : > { %p5221_p4 = pnand %p5220_p3, %p5214_p0 }
 0x388   : > { %5224 = shalt.err (!%p5221_p4)
}
 0x389   : > { %s5225_s23 = scalar_lea.hbm %s7181_s13, 96  ;;  %s5229_s26 = scalar_lea.hbm %s7262_s5, 192 }
 0x38a   : > { %p5226_p7 = scmp.ne.s32.totalorder %s7181_s13, %s5225_s23  ;;  %p5230_p10 = scmp.lt.s32.totalorder %s7181_s13, %s7262_s5 }
 0x38b   : > { %p5231_p11 = scmp.lt.s32.totalorder %s5229_s26, %s5225_s23 }
 0x38c   : > { %p5227_p8 = pnand %p5226_p7, %p5390_p5 }
 0x38d   : > { %p5232_p12 = por %p5231_p11, %p5230_p10 }
 0x38e   : > { %p5228_p9 = pneg %p5227_p8 }
 0x390   : > { %p5233_p13 = pnand %p5232_p12, %p5228_p9 }
 0x392   : > { %5236 = shalt.err (!%p5233_p13)
}
 0x393   : > { %s5304_s2 = smov 16   ;;  %s5305_s21 = smov 1  }
 0x394   : > { %5063 = dma.vmem_to_hbm [thread:$0]  (%p5390_p5), %s7172_s18, 96, %s7181_s13, %s3980_s1, %s5304_s2, %s5304_s2, %s5305_s21  }
 0x395   : > { %s3985_s25 = scalar_lea.sflag [#allocation5], %s7154_s19  ;;  %s5237_s10 = scalar_lea.vmem %s7174_s20, 96 }
 0x396   : > { %p5238_p0 = scmp.ne.s32.totalorder %s7174_s20, %s5237_s10  ;;  %s5306_s12 = smov [#allocation4]  }
 0x397   : > { %s5241_s23 = sshll.u32 %s5306_s12, 4  ;;  %s5242_s23 = int_to_ptr.vmem [resolvable:$false] %s5241_s23 }
 0x398   : > { %p5239_p1 = pnand %p5238_p0, %p5390_p5  ;;  %s5243_s24 = scalar_lea.vmem %s5242_s23, 192 }
 0x399   : > { %p5244_p3 = scmp.lt.s32.totalorder %s7174_s20, %s5242_s23  ;;  %p5245_p4 = scmp.lt.s32.totalorder %s5243_s24, %s5237_s10 }
 0x39a   : > { %p5240_p2 = pneg %p5239_p1 }
 0x39b   : > { %p5246_p7 = por %p5245_p4, %p5244_p3 }
 0x39d   : > { %p5247_p8 = pnand %p5246_p7, %p5240_p2 }
 0x39f   : > { %5250 = shalt.err (!%p5247_p8)
}
 0x3a0   : > { %s5251_s1 = scalar_lea.hbm %s7186_s0, 96  ;;  %s5255_s13 = scalar_lea.hbm %s7263_s6, 192 }
 0x3a1   : > { %p5252_p9 = scmp.ne.s32.totalorder %s7186_s0, %s5251_s1  ;;  %p5256_p12 = scmp.lt.s32.totalorder %s7186_s0, %s7263_s6 }
 0x3a2   : > { %p5257_p13 = scmp.lt.s32.totalorder %s5255_s13, %s5251_s1 }
 0x3a3   : > { %p5253_p10 = pnand %p5252_p9, %p5390_p5 }
 0x3a4   : > { %p5258_p0 = por %p5257_p13, %p5256_p12 }
 0x3a5   : > { %p5254_p11 = pneg %p5253_p10 }
 0x3a7   : > { %p5259_p1 = pnand %p5258_p0, %p5254_p11 }
 0x3a9   : > { %5262 = shalt.err (!%p5259_p1)
}
 0x3aa   : > { %5064 = dma.vmem_to_hbm [thread:$0]  (%p5390_p5), %s7174_s20, 96, %s7186_s0, %s3985_s25, %s5304_s2, %s5304_s2, %s5305_s21  }
 0x3ab PF: > { %p5074_p2 = scmp.ge.s32.totalorder %s5301_s30, 2  ;;  %s4047_s9 = sand.u32 1, %s5289_s27  }
 0x3ac   : > { %s4048_s17 = scalar_lea.sflag [#allocation3], %s4047_s9 }
 0x3ad   : > { %p5068_p3 = pnand %p5074_p2, %p5394_p6 }
 0x3af   : > { %p5069_p4 = pneg %p5068_p3 }
 0x3b1   : > { %5280 = dma.done.wait (%p5069_p4), %s4048_s17, 96  }
 0x3b2   : > { %5282 = vsyncadd (%p5069_p4), %s4048_s17, 4294967200  ;;  %s4057_s10 = scalar_lea.sflag [#allocation5], %s4047_s9 }
 0x3b3   : > { %5284 = dma.done.wait (%p5069_p4), %s4057_s10, 96  }
 0x3b4   : > { %5286 = vsyncadd (%p5069_p4), %s4057_s10, 4294967200  ;;  %p22_p5 = scmp.ge.s32.totalorder %s5377_s11, 4   ;;  %s7609_s27 = smov %s5293_s28 }
 0x3b5   : > { %s7610_s28 = smov %s5297_s29  ;;  %s7611_s29 = smov %s5388_s14 }
 0x3b6   : > { %s7612_s30 = smov %s5377_s11  ;;  %24 = sbr.rel (!%p22_p5) target bundleno = 9 (0x9), region = 175 }
 0x3bb   :  { %4078 = vsyncpa [#allocation3], 1 }
 0x3bc   :  { %4080 = vsyncpa [#allocation3 + $0x1], 1 }
 0x3bd   :  { %4081 = vsyncpa [#allocation5], 1 }
 0x3be   :  { %4083 = vsyncpa [#allocation5 + $0x1], 1 }

</bundles_post_ra>
